<compile_context>
chip_gen: v7x
topology: tpu7x:2x2x1
jax: 0.10.0
libtpu: 0.0.40
codegen_flags: <defaults>
</compile_context>

<pallas_src>
import functools
import math

import jax
import jax.numpy as jnp
from jax.experimental import pallas as pl
from jax.experimental.pallas import tpu as pltpu

LANE = 128
# 40 MiB scoped VMEM: leaves headroom on v7x (64 MiB physical per TensorCore).
# On v5e/v6e (128 MiB) this can be raised toward ~96 MiB when sweeping larger tiles.
VMEM_LIMIT_BYTES = 40 * 1024 * 1024


def _round_up(v, m):
    return ((v + m - 1) // m) * m


def _pad2(x, rows, cols):
    return jnp.pad(x, ((0, rows - x.shape[0]), (0, cols - x.shape[1])))


def _compiler_params():
    # Node-row axis is embarrassingly parallel (2 TCs on v7x); contraction axis is a
    # sequential reduction; explicit VMEM limit.
    return pltpu.CompilerParams(
        dimension_semantics=("parallel", "arbitrary"),
        vmem_limit_bytes=VMEM_LIMIT_BYTES)


# ---------------------------------------------------------------------------
# Kernels
# ---------------------------------------------------------------------------
def _propagate_kernel(a_ref, p_ref, o_ref, acc_ref):
    """One graph hop, contraction-tiled: acc[i] += A[i,k] @ P[k]; store at k == last."""
    k = pl.program_id(1)

    @pl.when(k == 0)
    def _():
        acc_ref[...] = jnp.zeros_like(acc_ref)

    acc_ref[...] += jnp.dot(a_ref[...], p_ref[...],
                            preferred_element_type=jnp.float32)

    @pl.when(k == pl.num_programs(1) - 1)
    def _():
        o_ref[...] = acc_ref[...].astype(o_ref.dtype)


def _make_layer_kernel(num_class=None):
    """Fused last graph hop + TAGConv combine + ELU (+ Linear head + log_softmax).

    Ref order: a, p_prefix, p_last_src, w_prefix, w_last, b, [wl, bl], out, acc.
    """
    final = num_class is not None

    def kernel(*refs):
        a_ref, pfx_ref, plast_ref, w_pfx_ref, w_last_ref, b_ref = refs[:6]
        if final:
            wl_ref, bl_ref, o_ref, acc_ref = refs[6:]
        else:
            o_ref, acc_ref = refs[6:]

        k = pl.program_id(1)

        @pl.when(k == 0)
        def _():
            acc_ref[...] = jnp.zeros_like(acc_ref)

        # Fused last hop: A[tile, cols] @ P_{K-1}[cols, :], f32 accumulation.
        acc_ref[...] += jnp.dot(a_ref[...], plast_ref[...],
                                preferred_element_type=jnp.float32)

        @pl.when(k == pl.num_programs(1) - 1)
        def _():
            # Hops 0..K-1 as ONE concatenated-contraction MXU dot.
            z = jnp.dot(pfx_ref[...], w_pfx_ref[...],
                        preferred_element_type=jnp.float32)
            z = z + jnp.dot(acc_ref[...].astype(jnp.bfloat16), w_last_ref[...],
                            preferred_element_type=jnp.float32)
            z = z + b_ref[...]
            # ELU in f32 (exp runs on the EUP slot); eval-mode dropout == identity.
            h = jnp.where(z > 0.0, z, jnp.exp(jnp.minimum(z, 0.0)) - 1.0)
            if not final:
                o_ref[...] = h.astype(o_ref.dtype)
            else:
                logits = jnp.dot(h.astype(jnp.bfloat16), wl_ref[...],
                                 preferred_element_type=jnp.float32) + bl_ref[...]
                # Padded class lanes -> -1e30 so the 128-wide lane-dense store is inert.
                col = jax.lax.broadcasted_iota(jnp.int32, logits.shape, 1)
                logits = jnp.where(col < num_class, logits, -1e30)
                m = jnp.max(logits, axis=1, keepdims=True)
                s = logits - m
                lse = jnp.log(jnp.sum(jnp.exp(s), axis=1, keepdims=True))
                o_ref[...] = (s - lse).astype(o_ref.dtype)

    return kernel


# ---------------------------------------------------------------------------
# pallas_call wrappers (node rows tiled; A contraction tiled; weights resident)
# ---------------------------------------------------------------------------
def propagate_hop(a, p_all, hop, d_pad, tm, tk):
    """P_all[:, hop-slab] = A @ P_all[:, (hop-1)-slab], written in place via aliasing."""
    n = a.shape[0]
    return pl.pallas_call(
        _propagate_kernel,
        out_shape=jax.ShapeDtypeStruct(p_all.shape, p_all.dtype),
        grid=(n // tm, n // tk),
        in_specs=[
            pl.BlockSpec((tm, tk), lambda i, k: (i, k)),           # A: streamed tiles
            pl.BlockSpec((tk, d_pad), lambda i, k: (k, hop - 1)),  # previous-hop slab
        ],
        out_specs=pl.BlockSpec((tm, d_pad), lambda i, k: (i, hop)),
        scratch_shapes=[pltpu.VMEM((tm, d_pad), jnp.float32)],
        input_output_aliases={1: 0},   # write hop slab into the same buffer
        compiler_params=_compiler_params(),
    )(a, p_all)


def tag_layer(a, p_all, w_pfx, w_last, b, tm, tk, head=None, num_class=None):
    """One TAGConv layer tile: fused last hop + combine + ELU (+ head + log_softmax)."""
    n = a.shape[0]
    d_in = w_last.shape[0]
    kd = p_all.shape[1]
    k_hops = kd // d_in

    in_specs = [
        pl.BlockSpec((tm, tk), lambda i, k: (i, k)),                # A: streamed tiles
        pl.BlockSpec((tm, kd), lambda i, k: (i, 0)),                # P_0..P_{K-1} slab
        pl.BlockSpec((tk, d_in), lambda i, k: (k, k_hops - 1)),     # P_{K-1}: fused hop
        pl.BlockSpec(w_pfx.shape, lambda i, k: (0, 0)),             # resident weights
        pl.BlockSpec(w_last.shape, lambda i, k: (0, 0)),
        pl.BlockSpec(b.shape, lambda i, k: (0, 0)),
    ]
    args = [a, p_all, p_all, w_pfx, w_last, b]
    if head is None:
        out_dim, out_dtype = w_last.shape[1], jnp.bfloat16
        kern = _make_layer_kernel(None)
    else:
        wl, bl = head
        in_specs += [pl.BlockSpec(wl.shape, lambda i, k: (0, 0)),
                     pl.BlockSpec(bl.shape, lambda i, k: (0, 0))]
        args += [wl, bl]
        out_dim, out_dtype = wl.shape[1], jnp.float32
        kern = _make_layer_kernel(num_class)

    return pl.pallas_call(
        kern,
        out_shape=jax.ShapeDtypeStruct((n, out_dim), out_dtype),
        grid=(n // tm, n // tk),
        in_specs=in_specs,
        out_specs=pl.BlockSpec((tm, out_dim), lambda i, k: (i, 0)),
        scratch_shapes=[pltpu.VMEM((tm, d_in), jnp.float32)],
        compiler_params=_compiler_params(),
    )(*args)


# ---------------------------------------------------------------------------
# Wrapper: graph preprocessing + padding + layer orchestration
# ---------------------------------------------------------------------------
def gcn_norm_dense(edge_index, edge_weight, num_nodes):
    """Symmetric GCN normalization (no self-loops; PyG TAGConv default), densified."""
    src, dst = edge_index[0], edge_index[1]
    deg = jnp.zeros((num_nodes,), jnp.float32).at[dst].add(edge_weight)
    dis = jnp.where(deg > 0, jax.lax.rsqrt(deg), 0.0)
    w = dis[src] * edge_weight * dis[dst]
    # A[target, source]: message flows source -> target.
    return jnp.zeros((num_nodes, num_nodes), jnp.float32).at[dst, src].add(w)


def tag_linear_forward(x, edge_index, edge_weight, params, *,
                       num_class, num_layers, k_hops, tm=256, tk=512):
    """params = ((W0, b0), (W1, b1), (Wl, bl)); W0: (K+1, F, H), W1: (K+1, H, H),
    Wl: (H, C), biases (1, dim). Returns (N, num_class) log-probabilities.

    tm/tk: node-row tile and A contraction tile. Sweep tm 512-1024 on v5e/v6e
    (larger VMEM); keep the default budget on v7x."""
    (w0, b0), (w1, b1), (wl, bl) = params
    n, f = x.shape
    h_dim = w0.shape[-1]

    n_pad = _round_up(n, math.lcm(tm, tk))
    f_pad = _round_up(f, LANE)
    h_pad = _round_up(h_dim, LANE)
    c_pad = _round_up(num_class, LANE)

    a = gcn_norm_dense(edge_index, edge_weight, n)

    # Zero padding is mathematically inert (elu(0) == 0, zero adjacency rows/cols);
    # only the class dim needs the in-kernel -1e30 mask before log_softmax.
    a_p = _pad2(a, n_pad, n_pad).astype(jnp.bfloat16)
    x_p = _pad2(x, n_pad, f_pad).astype(jnp.bfloat16)

    def split_conv(w, b, din_pad):
        # w: (K+1, din, dout) stacked hop weights (for x @ W); b: (1, dout).
        wp = jnp.pad(w, ((0, 0), (0, din_pad - w.shape[1]), (0, h_pad - w.shape[2])))
        w_pfx = wp[:k_hops].reshape(k_hops * din_pad, h_pad).astype(jnp.bfloat16)
        w_last = wp[k_hops].astype(jnp.bfloat16)
        return w_pfx, w_last, _pad2(b, 1, h_pad).astype(jnp.float32)

    conv_params = [split_conv(w0, b0, f_pad), split_conv(w1, b1, h_pad)]
    wlp = _pad2(wl, h_pad, c_pad).astype(jnp.bfloat16)
    blp = _pad2(bl, 1, c_pad).astype(jnp.float32)

    h = x_p
    out = None
    for layer in range(num_layers):
        w_pfx, w_last, bp = conv_params[0] if layer == 0 else conv_params[1]
        d_in = h.shape[1]
        # Column-slab buffer P_all = [P_0 | P_1 | ... | P_{K-1}]; slab 0 seeded with
        # the layer input, slabs 1..K-1 filled in place by propagate_hop; the K-th hop
        # is fused into the combine/final kernel (never round-trips HBM).
        p_all = jnp.pad(h, ((0, 0), (0, (k_hops - 1) * d_in)))
        for hop in range(1, k_hops):
            p_all = propagate_hop(a_p, p_all, hop, d_in, tm, tk)
        if layer < num_layers - 1:
            h = tag_layer(a_p, p_all, w_pfx, w_last, bp, tm, tk)
        else:
            out = tag_layer(a_p, p_all, w_pfx, w_last, bp, tm, tk,
                            head=(wlp, blp), num_class=num_class)
    return out[:n, :num_class]


def init_params(key, num_feature, num_class, hidden, k_hops):
    """Stacked TAGConv weights (K+1, in, out) stored for x @ W; biases (1, out)."""
    def lin(k, din, dout, stacked=None):
        kw, kb = jax.random.split(k)
        shape = (din, dout) if stacked is None else (stacked, din, dout)
        w = jax.random.normal(kw, shape, jnp.float32) / jnp.sqrt(float(din))
        b = 0.1 * jax.random.normal(kb, (1, dout), jnp.float32)
        return w, b
    k0, k1, k2 = jax.random.split(key, 3)
    return (lin(k0, num_feature, hidden, stacked=k_hops + 1),
            lin(k1, hidden, hidden, stacked=k_hops + 1),
            lin(k2, hidden, num_class))


def reference_forward(x, edge_index, edge_weight, params, *,
                      num_layers, k_hops):
    """Plain-JAX reference with the same dtype policy (bf16 matmul operands, f32 acc)."""
    (w0, b0), (w1, b1), (wl, bl) = params
    n = x.shape[0]
    a = gcn_norm_dense(edge_index, edge_weight, n).astype(jnp.bfloat16)
    h = x.astype(jnp.bfloat16)
    for layer in range(num_layers):
        w, b = (w0, b0) if layer == 0 else (w1, b1)
        wb = w.astype(jnp.bfloat16)
        p = h
        acc = jnp.dot(p, wb[0], preferred_element_type=jnp.float32)
        for k in range(1, k_hops + 1):
            p = jnp.dot(a, p, preferred_element_type=jnp.float32).astype(jnp.bfloat16)
            acc = acc + jnp.dot(p, wb[k], preferred_element_type=jnp.float32)
        acc = acc + b
        h32 = jnp.where(acc > 0.0, acc, jnp.exp(jnp.minimum(acc, 0.0)) - 1.0)
        h = h32.astype(jnp.bfloat16)
    logits = jnp.dot(h, wl.astype(jnp.bfloat16),
                     preferred_element_type=jnp.float32) + bl
    return jax.nn.log_softmax(logits, axis=1)


if __name__ == "__main__":
    # Module defaults: num_layers=2, hidden=64; TAGConv K defaults to 3.
    num_feature, num_class, num_layers, hidden, k_hops = 16, 7, 2, 64, 3
    n_nodes, n_edges = 200, 800

    key = jax.random.PRNGKey(0)
    key, kx, ks, kd, kw = jax.random.split(key, 5)
    x = jax.random.normal(kx, (n_nodes, num_feature), jnp.float32)           # data.x
    src = jax.random.randint(ks, (n_edges,), 0, n_nodes)
    dst = jax.random.randint(kd, (n_edges,), 0, n_nodes)
    edge_index = jnp.stack([src, dst])                                       # data.edge_index
    edge_attr = jax.random.uniform(kw, (n_edges, 1), minval=0.5, maxval=1.5) # data.edge_attr
    edge_weight = edge_attr.squeeze(1)                                       # .squeeze(1) as in forward

    params = init_params(key, num_feature, num_class, hidden, k_hops)

    fwd = jax.jit(functools.partial(
        tag_linear_forward, num_class=num_class, num_layers=num_layers,
        k_hops=k_hops, tm=256, tk=256))
    out = jax.block_until_ready(fwd(x, edge_index, edge_weight, params))

    ref = reference_forward(x, edge_index, edge_weight, params,
                            num_layers=num_layers, k_hops=k_hops)
    assert out.shape == (n_nodes, num_class)
    err = float(jnp.max(jnp.abs(out - ref)))
    assert jnp.allclose(out, ref, atol=2e-2, rtol=2e-2), f"mismatch vs reference: {err}"

    print("KERNEL_OK")
</pallas_src>

<mosaic_0001>
module attributes {stable_mosaic.version = 11 : i64} {
  func.func private @main(%arg0: i32) attributes {dimension_semantics = [#tpu.dimension_semantics<core_parallel>], iteration_bounds = array<i64: 2>, tpu.core_type = #tpu.core_type<sc_scalar_subcore>, window_params = []} {
    return
  }
}

module attributes {stable_mosaic.version = 11 : i64} {
  func.func private @main(%arg0: i32) attributes {dimension_semantics = [#tpu.dimension_semantics<core_parallel>], iteration_bounds = array<i64: 2>, tpu.core_type = #tpu.core_type<sc_scalar_subcore>, window_params = []} {
    return
  }
}

module attributes {stable_mosaic.version = 11 : i64} {
  func.func @_propagate_kernel(%arg0: i32, %arg1: i32, %arg2: memref<256x256xbf16, #tpu.memory_space<vmem>>, %arg3: memref<256x128xbf16, #tpu.memory_space<vmem>>, %arg4: memref<256x128xbf16, #tpu.memory_space<vmem>>, %arg5: memref<256x128xf32, #tpu.memory_space<vmem>>) attributes {dimension_semantics = [#tpu.dimension_semantics<parallel>, #tpu.dimension_semantics<arbitrary>], iteration_bounds = array<i64: 1, 1>, scalar_prefetch = 0 : i64, scratch_operands = 1 : i64, tpu.core_type = #tpu.core_type<tc>, window_params = [{transform_indices = @transform_0, window_bounds = array<i64: 256, 256>}, {transform_indices = @transform_1, window_bounds = array<i64: 256, 128>}, {transform_indices = @transform_2, window_bounds = array<i64: 256, 128>}]} {
    %c0_i32 = arith.constant 0 : i32
    %0 = arith.cmpi eq, %arg1, %c0_i32 : i32
    %1 = arith.extui %0 : i1 to i32
    %c0_i32_0 = arith.constant 0 : i32
    %2 = arith.cmpi ne, %1, %c0_i32_0 : i32
    scf.if %2 {
      %cst_10 = arith.constant 0.000000e+00 : f32
      %12 = vector.broadcast %cst_10 : f32 to vector<256x128xf32>
      %c0_11 = arith.constant 0 : index
      %c0_12 = arith.constant 0 : index
      %13 = vector.load %arg5[%c0_11, %c0_12] : memref<256x128xf32, #tpu.memory_space<vmem>>, vector<256x128xf32>
      tpu.vector_store %arg5[%c0_11, %c0_12], %12 {strides = array<i32>} : memref<256x128xf32, #tpu.memory_space<vmem>>, vector<256x128xf32>,
    } else {
    }
    %c0 = arith.constant 0 : index
    %c0_1 = arith.constant 0 : index
    %3 = vector.load %arg5[%c0, %c0_1] : memref<256x128xf32, #tpu.memory_space<vmem>>, vector<256x128xf32>
    %c0_2 = arith.constant 0 : index
    %c0_3 = arith.constant 0 : index
    %4 = vector.load %arg2[%c0_2, %c0_3] : memref<256x256xbf16, #tpu.memory_space<vmem>>, vector<256x256xbf16>
    %c0_4 = arith.constant 0 : index
    %c0_5 = arith.constant 0 : index
    %5 = vector.load %arg3[%c0_4, %c0_5] : memref<256x128xbf16, #tpu.memory_space<vmem>>, vector<256x128xbf16>
    %cst = arith.constant dense<0.000000e+00> : vector<256x128xf32>
    %6 = tpu.matmul %4, %5, %cst {dimension_numbers = #tpu.dot_dimension_numbers<[1], [0], [0], [1], [0, 0, 1, 1], [], []>} : vector<256x256xbf16>, vector<256x128xbf16>, vector<256x128xf32> -> vector<256x128xf32>
    %7 = arith.addf %3, %6 : vector<256x128xf32>
    %c0_6 = arith.constant 0 : index
    %c0_7 = arith.constant 0 : index
    %8 = vector.load %arg5[%c0_6, %c0_7] : memref<256x128xf32, #tpu.memory_space<vmem>>, vector<256x128xf32>
    tpu.vector_store %arg5[%c0_6, %c0_7], %7 {strides = array<i32>} : memref<256x128xf32, #tpu.memory_space<vmem>>, vector<256x128xf32>,
    %c0_i32_8 = arith.constant 0 : i32
    %9 = arith.cmpi eq, %arg1, %c0_i32_8 : i32
    %10 = arith.extui %9 : i1 to i32
    %c0_i32_9 = arith.constant 0 : i32
    %11 = arith.cmpi ne, %10, %c0_i32_9 : i32
    scf.if %11 {
      %c0_10 = arith.constant 0 : index
      %c0_11 = arith.constant 0 : index
      %12 = vector.load %arg5[%c0_10, %c0_11] : memref<256x128xf32, #tpu.memory_space<vmem>>, vector<256x128xf32>
      %13 = arith.truncf %12 : vector<256x128xf32> to vector<256x128xbf16>
      %c0_12 = arith.constant 0 : index
      %c0_13 = arith.constant 0 : index
      %14 = vector.load %arg4[%c0_12, %c0_13] : memref<256x128xbf16, #tpu.memory_space<vmem>>, vector<256x128xbf16>
      tpu.vector_store %arg4[%c0_12, %c0_13], %13 {strides = array<i32>} : memref<256x128xbf16, #tpu.memory_space<vmem>>, vector<256x128xbf16>,
    } else {
    }
    return
  }
  func.func @transform_0(%arg0: i32, %arg1: i32) -> (i32, i32) {
    %c0_i32 = arith.constant 0 : i32
    return %arg0, %arg1 : i32, i32
  }
  func.func @transform_1(%arg0: i32, %arg1: i32) -> (i32, i32) {
    %c1_i32 = arith.constant 1 : i32
    %c0_i32 = arith.constant 0 : i32
    return %arg1, %c1_i32 : i32, i32
  }
  func.func @transform_2(%arg0: i32, %arg1: i32) -> (i32, i32) {
    %c2_i32 = arith.constant 2 : i32
    %c0_i32 = arith.constant 0 : i32
    return %arg0, %c2_i32 : i32, i32
  }
}

module attributes {stable_mosaic.version = 11 : i64} {
  func.func @_propagate_kernel(%arg0: i32, %arg1: i32, %arg2: memref<256x256xbf16, #tpu.memory_space<vmem>>, %arg3: memref<256x128xbf16, #tpu.memory_space<vmem>>, %arg4: memref<256x128xbf16, #tpu.memory_space<vmem>>, %arg5: memref<256x128xf32, #tpu.memory_space<vmem>>) attributes {dimension_semantics = [#tpu.dimension_semantics<parallel>, #tpu.dimension_semantics<arbitrary>], iteration_bounds = array<i64: 1, 1>, scalar_prefetch = 0 : i64, scratch_operands = 1 : i64, tpu.core_type = #tpu.core_type<tc>, window_params = [{transform_indices = @transform_0, window_bounds = array<i64: 256, 256>}, {transform_indices = @transform_1, window_bounds = array<i64: 256, 128>}, {transform_indices = @transform_2, window_bounds = array<i64: 256, 128>}]} {
    %c0_i32 = arith.constant 0 : i32
    %0 = arith.cmpi eq, %arg1, %c0_i32 : i32
    %1 = arith.extui %0 : i1 to i32
    %c0_i32_0 = arith.constant 0 : i32
    %2 = arith.cmpi ne, %1, %c0_i32_0 : i32
    scf.if %2 {
      %cst_10 = arith.constant 0.000000e+00 : f32
      %12 = vector.broadcast %cst_10 : f32 to vector<256x128xf32>
      %c0_11 = arith.constant 0 : index
      %c0_12 = arith.constant 0 : index
      %13 = vector.load %arg5[%c0_11, %c0_12] : memref<256x128xf32, #tpu.memory_space<vmem>>, vector<256x128xf32>
      tpu.vector_store %arg5[%c0_11, %c0_12], %12 {strides = array<i32>} : memref<256x128xf32, #tpu.memory_space<vmem>>, vector<256x128xf32>,
    } else {
    }
    %c0 = arith.constant 0 : index
    %c0_1 = arith.constant 0 : index
    %3 = vector.load %arg5[%c0, %c0_1] : memref<256x128xf32, #tpu.memory_space<vmem>>, vector<256x128xf32>
    %c0_2 = arith.constant 0 : index
    %c0_3 = arith.constant 0 : index
    %4 = vector.load %arg2[%c0_2, %c0_3] : memref<256x256xbf16, #tpu.memory_space<vmem>>, vector<256x256xbf16>
    %c0_4 = arith.constant 0 : index
    %c0_5 = arith.constant 0 : index
    %5 = vector.load %arg3[%c0_4, %c0_5] : memref<256x128xbf16, #tpu.memory_space<vmem>>, vector<256x128xbf16>
    %cst = arith.constant dense<0.000000e+00> : vector<256x128xf32>
    %6 = tpu.matmul %4, %5, %cst {dimension_numbers = #tpu.dot_dimension_numbers<[1], [0], [0], [1], [0, 0, 1, 1], [], []>} : vector<256x256xbf16>, vector<256x128xbf16>, vector<256x128xf32> -> vector<256x128xf32>
    %7 = arith.addf %3, %6 : vector<256x128xf32>
    %c0_6 = arith.constant 0 : index
    %c0_7 = arith.constant 0 : index
    %8 = vector.load %arg5[%c0_6, %c0_7] : memref<256x128xf32, #tpu.memory_space<vmem>>, vector<256x128xf32>
    tpu.vector_store %arg5[%c0_6, %c0_7], %7 {strides = array<i32>} : memref<256x128xf32, #tpu.memory_space<vmem>>, vector<256x128xf32>,
    %c0_i32_8 = arith.constant 0 : i32
    %9 = arith.cmpi eq, %arg1, %c0_i32_8 : i32
    %10 = arith.extui %9 : i1 to i32
    %c0_i32_9 = arith.constant 0 : i32
    %11 = arith.cmpi ne, %10, %c0_i32_9 : i32
    scf.if %11 {
      %c0_10 = arith.constant 0 : index
      %c0_11 = arith.constant 0 : index
      %12 = vector.load %arg5[%c0_10, %c0_11] : memref<256x128xf32, #tpu.memory_space<vmem>>, vector<256x128xf32>
      %13 = arith.truncf %12 : vector<256x128xf32> to vector<256x128xbf16>
      %c0_12 = arith.constant 0 : index
      %c0_13 = arith.constant 0 : index
      %14 = vector.load %arg4[%c0_12, %c0_13] : memref<256x128xbf16, #tpu.memory_space<vmem>>, vector<256x128xbf16>
      tpu.vector_store %arg4[%c0_12, %c0_13], %13 {strides = array<i32>} : memref<256x128xbf16, #tpu.memory_space<vmem>>, vector<256x128xbf16>,
    } else {
    }
    return
  }
  func.func @transform_0(%arg0: i32, %arg1: i32) -> (i32, i32) {
    %c0_i32 = arith.constant 0 : i32
    return %arg0, %arg1 : i32, i32
  }
  func.func @transform_1(%arg0: i32, %arg1: i32) -> (i32, i32) {
    %c0_i32 = arith.constant 0 : i32
    %c0_i32_0 = arith.constant 0 : i32
    return %arg1, %c0_i32 : i32, i32
  }
  func.func @transform_2(%arg0: i32, %arg1: i32) -> (i32, i32) {
    %c1_i32 = arith.constant 1 : i32
    %c0_i32 = arith.constant 0 : i32
    return %arg0, %c1_i32 : i32, i32
  }
}

module attributes {stable_mosaic.version = 11 : i64} {
  func.func @kernel(%arg0: i32, %arg1: i32, %arg2: memref<256x256xbf16, #tpu.memory_space<vmem>>, %arg3: memref<256x384xbf16, #tpu.memory_space<vmem>>, %arg4: memref<256x128xbf16, #tpu.memory_space<vmem>>, %arg5: memref<384x128xbf16, #tpu.memory_space<vmem>>, %arg6: memref<128x128xbf16, #tpu.memory_space<vmem>>, %arg7: memref<1x128xf32, #tpu.memory_space<vmem>>, %arg8: memref<256x128xbf16, #tpu.memory_space<vmem>>, %arg9: memref<256x128xf32, #tpu.memory_space<vmem>>) attributes {dimension_semantics = [#tpu.dimension_semantics<parallel>, #tpu.dimension_semantics<arbitrary>], iteration_bounds = array<i64: 1, 1>, scalar_prefetch = 0 : i64, scratch_operands = 1 : i64, tpu.core_type = #tpu.core_type<tc>, window_params = [{transform_indices = @transform_0, window_bounds = array<i64: 256, 256>}, {transform_indices = @transform_1, window_bounds = array<i64: 256, 384>}, {transform_indices = @transform_2, window_bounds = array<i64: 256, 128>}, {pipeline_mode = #tpu.pipeline_mode<synchronous>, transform_indices = @transform_3, window_bounds = array<i64: 384, 128>}, {pipeline_mode = #tpu.pipeline_mode<synchronous>, transform_indices = @transform_4, window_bounds = array<i64: 128, 128>}, {pipeline_mode = #tpu.pipeline_mode<synchronous>, transform_indices = @transform_5, window_bounds = array<i64: 1, 128>}, {transform_indices = @transform_6, window_bounds = array<i64: 256, 128>}]} {
    %c0_i32 = arith.constant 0 : i32
    %0 = arith.cmpi eq, %arg1, %c0_i32 : i32
    %1 = arith.extui %0 : i1 to i32
    %c0_i32_0 = arith.constant 0 : i32
    %2 = arith.cmpi ne, %1, %c0_i32_0 : i32
    scf.if %2 {
      %cst_10 = arith.constant 0.000000e+00 : f32
      %12 = vector.broadcast %cst_10 : f32 to vector<256x128xf32>
      %c0_11 = arith.constant 0 : index
      %c0_12 = arith.constant 0 : index
      %13 = vector.load %arg9[%c0_11, %c0_12] : memref<256x128xf32, #tpu.memory_space<vmem>>, vector<256x128xf32>
      tpu.vector_store %arg9[%c0_11, %c0_12], %12 {strides = array<i32>} : memref<256x128xf32, #tpu.memory_space<vmem>>, vector<256x128xf32>,
    } else {
    }
    %c0 = arith.constant 0 : index
    %c0_1 = arith.constant 0 : index
    %3 = vector.load %arg9[%c0, %c0_1] : memref<256x128xf32, #tpu.memory_space<vmem>>, vector<256x128xf32>
    %c0_2 = arith.constant 0 : index
    %c0_3 = arith.constant 0 : index
    %4 = vector.load %arg2[%c0_2, %c0_3] : memref<256x256xbf16, #tpu.memory_space<vmem>>, vector<256x256xbf16>
    %c0_4 = arith.constant 0 : index
    %c0_5 = arith.constant 0 : index
    %5 = vector.load %arg4[%c0_4, %c0_5] : memref<256x128xbf16, #tpu.memory_space<vmem>>, vector<256x128xbf16>
    %cst = arith.constant dense<0.000000e+00> : vector<256x128xf32>
    %6 = tpu.matmul %4, %5, %cst {dimension_numbers = #tpu.dot_dimension_numbers<[1], [0], [0], [1], [0, 0, 1, 1], [], []>} : vector<256x256xbf16>, vector<256x128xbf16>, vector<256x128xf32> -> vector<256x128xf32>
    %7 = arith.addf %3, %6 : vector<256x128xf32>
    %c0_6 = arith.constant 0 : index
    %c0_7 = arith.constant 0 : index
    %8 = vector.load %arg9[%c0_6, %c0_7] : memref<256x128xf32, #tpu.memory_space<vmem>>, vector<256x128xf32>
    tpu.vector_store %arg9[%c0_6, %c0_7], %7 {strides = array<i32>} : memref<256x128xf32, #tpu.memory_space<vmem>>, vector<256x128xf32>,
    %c0_i32_8 = arith.constant 0 : i32
    %9 = arith.cmpi eq, %arg1, %c0_i32_8 : i32
    %10 = arith.extui %9 : i1 to i32
    %c0_i32_9 = arith.constant 0 : i32
    %11 = arith.cmpi ne, %10, %c0_i32_9 : i32
    scf.if %11 {
      %c0_10 = arith.constant 0 : index
      %c0_11 = arith.constant 0 : index
      %12 = vector.load %arg3[%c0_10, %c0_11] : memref<256x384xbf16, #tpu.memory_space<vmem>>, vector<256x384xbf16>
      %c0_12 = arith.constant 0 : index
      %c0_13 = arith.constant 0 : index
      %13 = vector.load %arg5[%c0_12, %c0_13] : memref<384x128xbf16, #tpu.memory_space<vmem>>, vector<384x128xbf16>
      %cst_14 = arith.constant dense<0.000000e+00> : vector<256x128xf32>
      %14 = tpu.matmul %12, %13, %cst_14 {dimension_numbers = #tpu.dot_dimension_numbers<[1], [0], [0], [1], [0, 0, 1, 1], [], []>} : vector<256x384xbf16>, vector<384x128xbf16>, vector<256x128xf32> -> vector<256x128xf32>
      %c0_15 = arith.constant 0 : index
      %c0_16 = arith.constant 0 : index
      %15 = vector.load %arg9[%c0_15, %c0_16] : memref<256x128xf32, #tpu.memory_space<vmem>>, vector<256x128xf32>
      %16 = arith.truncf %15 : vector<256x128xf32> to vector<256x128xbf16>
      %c0_17 = arith.constant 0 : index
      %c0_18 = arith.constant 0 : index
      %17 = vector.load %arg6[%c0_17, %c0_18] : memref<128x128xbf16, #tpu.memory_space<vmem>>, vector<128x128xbf16>
      %cst_19 = arith.constant dense<0.000000e+00> : vector<256x128xf32>
      %18 = tpu.matmul %16, %17, %cst_19 {dimension_numbers = #tpu.dot_dimension_numbers<[1], [0], [0], [1], [0, 0, 1, 1], [], []>} : vector<256x128xbf16>, vector<128x128xbf16>, vector<256x128xf32> -> vector<256x128xf32>
      %19 = arith.addf %14, %18 : vector<256x128xf32>
      %c0_20 = arith.constant 0 : index
      %c0_21 = arith.constant 0 : index
      %20 = vector.load %arg7[%c0_20, %c0_21] : memref<1x128xf32, #tpu.memory_space<vmem>>, vector<1x128xf32>
      %21 = vector.broadcast %20 : vector<1x128xf32> to vector<256x128xf32>
      %22 = arith.addf %19, %21 : vector<256x128xf32>
      %cst_22 = arith.constant 0.000000e+00 : f32
      %23 = vector.broadcast %cst_22 : f32 to vector<256x128xf32>
      %24 = arith.cmpf ogt, %22, %23 : vector<256x128xf32>
      %cst_23 = arith.constant 0.000000e+00 : f32
      %25 = vector.broadcast %cst_23 : f32 to vector<256x128xf32>
      %26 = arith.minimumf %22, %25 : vector<256x128xf32>
      %27 = math.exp %26 : vector<256x128xf32>
      %cst_24 = arith.constant 1.000000e+00 : f32
      %28 = vector.broadcast %cst_24 : f32 to vector<256x128xf32>
      %29 = arith.subf %27, %28 : vector<256x128xf32>
      %30 = arith.select %24, %22, %29 : vector<256x128xi1>, vector<256x128xf32>
      %31 = arith.truncf %30 : vector<256x128xf32> to vector<256x128xbf16>
      %c0_25 = arith.constant 0 : index
      %c0_26 = arith.constant 0 : index
      %32 = vector.load %arg8[%c0_25, %c0_26] : memref<256x128xbf16, #tpu.memory_space<vmem>>, vector<256x128xbf16>
      tpu.vector_store %arg8[%c0_25, %c0_26], %31 {strides = array<i32>} : memref<256x128xbf16, #tpu.memory_space<vmem>>, vector<256x128xbf16>,
    } else {
    }
    return
  }
  func.func @transform_0(%arg0: i32, %arg1: i32) -> (i32, i32) {
    %c0_i32 = arith.constant 0 : i32
    return %arg0, %arg1 : i32, i32
  }
  func.func @transform_1(%arg0: i32, %arg1: i32) -> (i32, i32) {
    %c0_i32 = arith.constant 0 : i32
    %c0_i32_0 = arith.constant 0 : i32
    return %arg0, %c0_i32 : i32, i32
  }
  func.func @transform_2(%arg0: i32, %arg1: i32) -> (i32, i32) {
    %c2_i32 = arith.constant 2 : i32
    %c0_i32 = arith.constant 0 : i32
    return %arg1, %c2_i32 : i32, i32
  }
  func.func @transform_3(%arg0: i32, %arg1: i32) -> (i32, i32) {
    %c0_i32 = arith.constant 0 : i32
    %c0_i32_0 = arith.constant 0 : i32
    %c0_i32_1 = arith.constant 0 : i32
    return %c0_i32, %c0_i32_0 : i32, i32
  }
  func.func @transform_4(%arg0: i32, %arg1: i32) -> (i32, i32) {
    %c0_i32 = arith.constant 0 : i32
    %c0_i32_0 = arith.constant 0 : i32
    %c0_i32_1 = arith.constant 0 : i32
    return %c0_i32, %c0_i32_0 : i32, i32
  }
  func.func @transform_5(%arg0: i32, %arg1: i32) -> (i32, i32) {
    %c0_i32 = arith.constant 0 : i32
    %c0_i32_0 = arith.constant 0 : i32
    %c0_i32_1 = arith.constant 0 : i32
    return %c0_i32, %c0_i32_0 : i32, i32
  }
  func.func @transform_6(%arg0: i32, %arg1: i32) -> (i32, i32) {
    %c0_i32 = arith.constant 0 : i32
    %c0_i32_0 = arith.constant 0 : i32
    return %arg0, %c0_i32 : i32, i32
  }
}

module attributes {stable_mosaic.version = 11 : i64} {
  func.func @kernel(%arg0: i32, %arg1: i32, %arg2: memref<256x256xbf16, #tpu.memory_space<vmem>>, %arg3: memref<256x384xbf16, #tpu.memory_space<vmem>>, %arg4: memref<256x128xbf16, #tpu.memory_space<vmem>>, %arg5: memref<384x128xbf16, #tpu.memory_space<vmem>>, %arg6: memref<128x128xbf16, #tpu.memory_space<vmem>>, %arg7: memref<1x128xf32, #tpu.memory_space<vmem>>, %arg8: memref<128x128xbf16, #tpu.memory_space<vmem>>, %arg9: memref<1x128xf32, #tpu.memory_space<vmem>>, %arg10: memref<256x128xf32, #tpu.memory_space<vmem>>, %arg11: memref<256x128xf32, #tpu.memory_space<vmem>>) attributes {dimension_semantics = [#tpu.dimension_semantics<parallel>, #tpu.dimension_semantics<arbitrary>], iteration_bounds = array<i64: 1, 1>, scalar_prefetch = 0 : i64, scratch_operands = 1 : i64, tpu.core_type = #tpu.core_type<tc>, window_params = [{transform_indices = @transform_0, window_bounds = array<i64: 256, 256>}, {transform_indices = @transform_1, window_bounds = array<i64: 256, 384>}, {transform_indices = @transform_2, window_bounds = array<i64: 256, 128>}, {pipeline_mode = #tpu.pipeline_mode<synchronous>, transform_indices = @transform_3, window_bounds = array<i64: 384, 128>}, {pipeline_mode = #tpu.pipeline_mode<synchronous>, transform_indices = @transform_4, window_bounds = array<i64: 128, 128>}, {pipeline_mode = #tpu.pipeline_mode<synchronous>, transform_indices = @transform_5, window_bounds = array<i64: 1, 128>}, {pipeline_mode = #tpu.pipeline_mode<synchronous>, transform_indices = @transform_6, window_bounds = array<i64: 128, 128>}, {pipeline_mode = #tpu.pipeline_mode<synchronous>, transform_indices = @transform_7, window_bounds = array<i64: 1, 128>}, {transform_indices = @transform_8, window_bounds = array<i64: 256, 128>}]} {
    %c0_i32 = arith.constant 0 : i32
    %0 = arith.cmpi eq, %arg1, %c0_i32 : i32
    %1 = arith.extui %0 : i1 to i32
    %c0_i32_0 = arith.constant 0 : i32
    %2 = arith.cmpi ne, %1, %c0_i32_0 : i32
    scf.if %2 {
      %cst_10 = arith.constant 0.000000e+00 : f32
      %12 = vector.broadcast %cst_10 : f32 to vector<256x128xf32>
      %c0_11 = arith.constant 0 : index
      %c0_12 = arith.constant 0 : index
      %13 = vector.load %arg11[%c0_11, %c0_12] : memref<256x128xf32, #tpu.memory_space<vmem>>, vector<256x128xf32>
      tpu.vector_store %arg11[%c0_11, %c0_12], %12 {strides = array<i32>} : memref<256x128xf32, #tpu.memory_space<vmem>>, vector<256x128xf32>,
    } else {
    }
    %c0 = arith.constant 0 : index
    %c0_1 = arith.constant 0 : index
    %3 = vector.load %arg11[%c0, %c0_1] : memref<256x128xf32, #tpu.memory_space<vmem>>, vector<256x128xf32>
    %c0_2 = arith.constant 0 : index
    %c0_3 = arith.constant 0 : index
    %4 = vector.load %arg2[%c0_2, %c0_3] : memref<256x256xbf16, #tpu.memory_space<vmem>>, vector<256x256xbf16>
    %c0_4 = arith.constant 0 : index
    %c0_5 = arith.constant 0 : index
    %5 = vector.load %arg4[%c0_4, %c0_5] : memref<256x128xbf16, #tpu.memory_space<vmem>>, vector<256x128xbf16>
    %cst = arith.constant dense<0.000000e+00> : vector<256x128xf32>
    %6 = tpu.matmul %4, %5, %cst {dimension_numbers = #tpu.dot_dimension_numbers<[1], [0], [0], [1], [0, 0, 1, 1], [], []>} : vector<256x256xbf16>, vector<256x128xbf16>, vector<256x128xf32> -> vector<256x128xf32>
    %7 = arith.addf %3, %6 : vector<256x128xf32>
    %c0_6 = arith.constant 0 : index
    %c0_7 = arith.constant 0 : index
    %8 = vector.load %arg11[%c0_6, %c0_7] : memref<256x128xf32, #tpu.memory_space<vmem>>, vector<256x128xf32>
    tpu.vector_store %arg11[%c0_6, %c0_7], %7 {strides = array<i32>} : memref<256x128xf32, #tpu.memory_space<vmem>>, vector<256x128xf32>,
    %c0_i32_8 = arith.constant 0 : i32
    %9 = arith.cmpi eq, %arg1, %c0_i32_8 : i32
    %10 = arith.extui %9 : i1 to i32
    %c0_i32_9 = arith.constant 0 : i32
    %11 = arith.cmpi ne, %10, %c0_i32_9 : i32
    scf.if %11 {
      %c0_10 = arith.constant 0 : index
      %c0_11 = arith.constant 0 : index
      %12 = vector.load %arg3[%c0_10, %c0_11] : memref<256x384xbf16, #tpu.memory_space<vmem>>, vector<256x384xbf16>
      %c0_12 = arith.constant 0 : index
      %c0_13 = arith.constant 0 : index
      %13 = vector.load %arg5[%c0_12, %c0_13] : memref<384x128xbf16, #tpu.memory_space<vmem>>, vector<384x128xbf16>
      %cst_14 = arith.constant dense<0.000000e+00> : vector<256x128xf32>
      %14 = tpu.matmul %12, %13, %cst_14 {dimension_numbers = #tpu.dot_dimension_numbers<[1], [0], [0], [1], [0, 0, 1, 1], [], []>} : vector<256x384xbf16>, vector<384x128xbf16>, vector<256x128xf32> -> vector<256x128xf32>
      %c0_15 = arith.constant 0 : index
      %c0_16 = arith.constant 0 : index
      %15 = vector.load %arg11[%c0_15, %c0_16] : memref<256x128xf32, #tpu.memory_space<vmem>>, vector<256x128xf32>
      %16 = arith.truncf %15 : vector<256x128xf32> to vector<256x128xbf16>
      %c0_17 = arith.constant 0 : index
      %c0_18 = arith.constant 0 : index
      %17 = vector.load %arg6[%c0_17, %c0_18] : memref<128x128xbf16, #tpu.memory_space<vmem>>, vector<128x128xbf16>
      %cst_19 = arith.constant dense<0.000000e+00> : vector<256x128xf32>
      %18 = tpu.matmul %16, %17, %cst_19 {dimension_numbers = #tpu.dot_dimension_numbers<[1], [0], [0], [1], [0, 0, 1, 1], [], []>} : vector<256x128xbf16>, vector<128x128xbf16>, vector<256x128xf32> -> vector<256x128xf32>
      %19 = arith.addf %14, %18 : vector<256x128xf32>
      %c0_20 = arith.constant 0 : index
      %c0_21 = arith.constant 0 : index
      %20 = vector.load %arg7[%c0_20, %c0_21] : memref<1x128xf32, #tpu.memory_space<vmem>>, vector<1x128xf32>
      %21 = vector.broadcast %20 : vector<1x128xf32> to vector<256x128xf32>
      %22 = arith.addf %19, %21 : vector<256x128xf32>
      %cst_22 = arith.constant 0.000000e+00 : f32
      %23 = vector.broadcast %cst_22 : f32 to vector<256x128xf32>
      %24 = arith.cmpf ogt, %22, %23 : vector<256x128xf32>
      %cst_23 = arith.constant 0.000000e+00 : f32
      %25 = vector.broadcast %cst_23 : f32 to vector<256x128xf32>
      %26 = arith.minimumf %22, %25 : vector<256x128xf32>
      %27 = math.exp %26 : vector<256x128xf32>
      %cst_24 = arith.constant 1.000000e+00 : f32
      %28 = vector.broadcast %cst_24 : f32 to vector<256x128xf32>
      %29 = arith.subf %27, %28 : vector<256x128xf32>
      %30 = arith.select %24, %22, %29 : vector<256x128xi1>, vector<256x128xf32>
      %31 = arith.truncf %30 : vector<256x128xf32> to vector<256x128xbf16>
      %c0_25 = arith.constant 0 : index
      %c0_26 = arith.constant 0 : index
      %32 = vector.load %arg8[%c0_25, %c0_26] : memref<128x128xbf16, #tpu.memory_space<vmem>>, vector<128x128xbf16>
      %cst_27 = arith.constant dense<0.000000e+00> : vector<256x128xf32>
      %33 = tpu.matmul %31, %32, %cst_27 {dimension_numbers = #tpu.dot_dimension_numbers<[1], [0], [0], [1], [0, 0, 1, 1], [], []>} : vector<256x128xbf16>, vector<128x128xbf16>, vector<256x128xf32> -> vector<256x128xf32>
      %c0_28 = arith.constant 0 : index
      %c0_29 = arith.constant 0 : index
      %34 = vector.load %arg9[%c0_28, %c0_29] : memref<1x128xf32, #tpu.memory_space<vmem>>, vector<1x128xf32>
      %35 = vector.broadcast %34 : vector<1x128xf32> to vector<256x128xf32>
      %36 = arith.addf %33, %35 : vector<256x128xf32>
      %37 = tpu.iota {dimensions = array<i32: 1>} : vector<256x128xi32>
      %c7_i32 = arith.constant 7 : i32
      %38 = vector.broadcast %c7_i32 : i32 to vector<256x128xi32>
      %39 = arith.cmpi slt, %37, %38 : vector<256x128xi32>
      %cst_30 = arith.constant -1.000000e+30 : f32
      %40 = vector.broadcast %cst_30 : f32 to vector<256x128xf32>
      %41 = arith.select %39, %36, %40 : vector<256x128xi1>, vector<256x128xf32>
      %cst_31 = arith.constant dense<0xFF800000> : vector<256xf32>
      %42 = vector.multi_reduction <maximumf>, %41, %cst_31 [1] : vector<256x128xf32> to vector<256xf32>
      %43 = vector.shape_cast %42 : vector<256xf32> to vector<256x1xf32>
      %44 = vector.broadcast %43 : vector<256x1xf32> to vector<256x128xf32>
      %45 = arith.subf %41, %44 : vector<256x128xf32>
      %46 = math.exp %45 : vector<256x128xf32>
      %cst_32 = arith.constant dense<0.000000e+00> : vector<256xf32>
      %47 = vector.multi_reduction <add>, %46, %cst_32 [1] : vector<256x128xf32> to vector<256xf32>
      %48 = vector.shape_cast %47 : vector<256xf32> to vector<256x1xf32>
      %49 = math.log %48 : vector<256x1xf32>
      %50 = vector.broadcast %49 : vector<256x1xf32> to vector<256x128xf32>
      %51 = arith.subf %45, %50 : vector<256x128xf32>
      %c0_33 = arith.constant 0 : index
      %c0_34 = arith.constant 0 : index
      %52 = vector.load %arg10[%c0_33, %c0_34] : memref<256x128xf32, #tpu.memory_space<vmem>>, vector<256x128xf32>
      tpu.vector_store %arg10[%c0_33, %c0_34], %51 {strides = array<i32>} : memref<256x128xf32, #tpu.memory_space<vmem>>, vector<256x128xf32>,
    } else {
    }
    return
  }
  func.func @transform_0(%arg0: i32, %arg1: i32) -> (i32, i32) {
    %c0_i32 = arith.constant 0 : i32
    return %arg0, %arg1 : i32, i32
  }
  func.func @transform_1(%arg0: i32, %arg1: i32) -> (i32, i32) {
    %c0_i32 = arith.constant 0 : i32
    %c0_i32_0 = arith.constant 0 : i32
    return %arg0, %c0_i32 : i32, i32
  }
  func.func @transform_2(%arg0: i32, %arg1: i32) -> (i32, i32) {
    %c2_i32 = arith.constant 2 : i32
    %c0_i32 = arith.constant 0 : i32
    return %arg1, %c2_i32 : i32, i32
  }
  func.func @transform_3(%arg0: i32, %arg1: i32) -> (i32, i32) {
    %c0_i32 = arith.constant 0 : i32
    %c0_i32_0 = arith.constant 0 : i32
    %c0_i32_1 = arith.constant 0 : i32
    return %c0_i32, %c0_i32_0 : i32, i32
  }
  func.func @transform_4(%arg0: i32, %arg1: i32) -> (i32, i32) {
    %c0_i32 = arith.constant 0 : i32
    %c0_i32_0 = arith.constant 0 : i32
    %c0_i32_1 = arith.constant 0 : i32
    return %c0_i32, %c0_i32_0 : i32, i32
  }
  func.func @transform_5(%arg0: i32, %arg1: i32) -> (i32, i32) {
    %c0_i32 = arith.constant 0 : i32
    %c0_i32_0 = arith.constant 0 : i32
    %c0_i32_1 = arith.constant 0 : i32
    return %c0_i32, %c0_i32_0 : i32, i32
  }
  func.func @transform_6(%arg0: i32, %arg1: i32) -> (i32, i32) {
    %c0_i32 = arith.constant 0 : i32
    %c0_i32_0 = arith.constant 0 : i32
    %c0_i32_1 = arith.constant 0 : i32
    return %c0_i32, %c0_i32_0 : i32, i32
  }
  func.func @transform_7(%arg0: i32, %arg1: i32) -> (i32, i32) {
    %c0_i32 = arith.constant 0 : i32
    %c0_i32_0 = arith.constant 0 : i32
    %c0_i32_1 = arith.constant 0 : i32
    return %c0_i32, %c0_i32_0 : i32, i32
  }
  func.func @transform_8(%arg0: i32, %arg1: i32) -> (i32, i32) {
    %c0_i32 = arith.constant 0 : i32
    %c0_i32_0 = arith.constant 0 : i32
    return %arg0, %c0_i32 : i32, i32
  }
}

</mosaic_0001>

<bundles_post_ra>
// kernel: tag_linear_forward.7
= control target key start
LH: loop header
LB: loop body
LE: loop exit
PB: predicated region body
PF: predicated region fallthrough
CT: control target
= control target key end

     0   :  { %s1928_s0 = inlined_call_operand.vmem [shape: bf16[256,256], index: 0, kind: input, shape index: {}]   ;;  %s1929_s1 = inlined_call_operand.vmem [shape: bf16[256,384], index: 1, kind: input, shape index: {}, may-alias: {1,2}]   ;;  %s1930_s2 = inlined_call_operand.vmem [shape: bf16[256,384], index: 2, kind: output, shape index: {}, may-alias: {1,2}]  }
   0x1   :  { %v1178_v0 = vld [vmem:[%s1929_s1 + $0xc4] sm:$0xf]  ;;  %v1179_v1 = vld [vmem:[%s1929_s1 + $0xd0] sm:$0xf]  ;;  %v1180_v4 = vld [vmem:[%s1929_s1 + $0xdc] sm:$0xf] }
   0x2   :  { %v1162_v2 = vld [vmem:[%s1929_s1 + $0x4] sm:$0xf]  ;;  %60 = vst [vmem:[#allocation3 + $0x40] sm:$0xf] %v1178_v0  ;;  %62 = vst [vmem:[#allocation3 + $0x44] sm:$0xf] %v1179_v1 }
   0x3   :  { %28 = vst [vmem:[#allocation3] sm:$0xf] %v1162_v2  ;;  %v1163_v3 = vld [vmem:[%s1929_s1 + $0x10] sm:$0xf]  ;;  %v1181_v5 = vld [vmem:[%s1929_s1 + $0xe8] sm:$0xf] }
   0x4   :  { %30 = vst [vmem:[#allocation3 + $0x4] sm:$0xf] %v1163_v3  ;;  %64 = vst [vmem:[#allocation3 + $0x48] sm:$0xf] %v1180_v4  ;;  %v1164_v6 = vld [vmem:[%s1929_s1 + $0x1c] sm:$0xf] }
   0x5   :  { %66 = vst [vmem:[#allocation3 + $0x4c] sm:$0xf] %v1181_v5  ;;  %v1165_v7 = vld [vmem:[%s1929_s1 + $0x28] sm:$0xf]  ;;  %v1182_v8 = vld [vmem:[%s1929_s1 + $0xf4] sm:$0xf] }
   0x6   :  { %32 = vst [vmem:[#allocation3 + $0x8] sm:$0xf] %v1164_v6  ;;  %34 = vst [vmem:[#allocation3 + $0xc] sm:$0xf] %v1165_v7  ;;  %v1183_v9 = vld [vmem:[%s1929_s1 + $0x100] sm:$0xf] }
   0x7   :  { %68 = vst [vmem:[#allocation3 + $0x50] sm:$0xf] %v1182_v8  ;;  %v1166_v10 = vld [vmem:[%s1929_s1 + $0x34] sm:$0xf]  ;;  %v1167_v11 = vld [vmem:[%s1929_s1 + $0x40] sm:$0xf] }
   0x8   :  { %70 = vst [vmem:[#allocation3 + $0x54] sm:$0xf] %v1183_v9  ;;  %36 = vst [vmem:[#allocation3 + $0x10] sm:$0xf] %v1166_v10  ;;  %v1184_v12 = vld [vmem:[%s1929_s1 + $0x10c] sm:$0xf] }
   0x9   :  { %38 = vst [vmem:[#allocation3 + $0x14] sm:$0xf] %v1167_v11  ;;  %v1185_v13 = vld [vmem:[%s1929_s1 + $0x118] sm:$0xf]  ;;  %v1168_v14 = vld [vmem:[%s1929_s1 + $0x4c] sm:$0xf] }
   0xa   :  { %72 = vst [vmem:[#allocation3 + $0x58] sm:$0xf] %v1184_v12  ;;  %74 = vst [vmem:[#allocation3 + $0x5c] sm:$0xf] %v1185_v13  ;;  %v1169_v15 = vld [vmem:[%s1929_s1 + $0x58] sm:$0xf] }
   0xb   :  { %40 = vst [vmem:[#allocation3 + $0x18] sm:$0xf] %v1168_v14  ;;  %v1186_v16 = vld [vmem:[%s1929_s1 + $0x124] sm:$0xf]  ;;  %v1187_v17 = vld [vmem:[%s1929_s1 + $0x130] sm:$0xf] }
   0xc   :  { %42 = vst [vmem:[#allocation3 + $0x1c] sm:$0xf] %v1169_v15  ;;  %76 = vst [vmem:[#allocation3 + $0x60] sm:$0xf] %v1186_v16  ;;  %v1170_v18 = vld [vmem:[%s1929_s1 + $0x64] sm:$0xf] }
   0xd   :  { %78 = vst [vmem:[#allocation3 + $0x64] sm:$0xf] %v1187_v17  ;;  %v1171_v19 = vld [vmem:[%s1929_s1 + $0x70] sm:$0xf]  ;;  %v1188_v20 = vld [vmem:[%s1929_s1 + $0x13c] sm:$0xf] }
   0xe   :  { %44 = vst [vmem:[#allocation3 + $0x20] sm:$0xf] %v1170_v18  ;;  %46 = vst [vmem:[#allocation3 + $0x24] sm:$0xf] %v1171_v19  ;;  %v1189_v21 = vld [vmem:[%s1929_s1 + $0x148] sm:$0xf] }
   0xf   :  { %80 = vst [vmem:[#allocation3 + $0x68] sm:$0xf] %v1188_v20  ;;  %v1172_v22 = vld [vmem:[%s1929_s1 + $0x7c] sm:$0xf]  ;;  %v1173_v23 = vld [vmem:[%s1929_s1 + $0x88] sm:$0xf] }
  0x10   :  { %v1561_v24 = vld [vmem:[#allocation3 + $0x40] sm:$0xff]   ;;  %82 = vst [vmem:[#allocation3 + $0x6c] sm:$0xf] %v1189_v21  ;;  %48 = vst [vmem:[#allocation3 + $0x28] sm:$0xf] %v1172_v22  ;;  %v1563_v26 = vld [vmem:[#allocation3 + $0x48] sm:$0xff]  }
  0x11   :  { %50 = vst [vmem:[#allocation3 + $0x2c] sm:$0xf] %v1173_v23  ;;  %v1562_v25 = vld [vmem:[#allocation3] sm:$0xff]   ;;  %1433 = vmatprep.subr.bf16.mxu0 %v1561_v24  ;;  %1545 = vmatprep.subr.bf16.mxu1 %v1561_v24  ;;  %v1564_v27 = vld [vmem:[#allocation3 + $0x8] sm:$0xff]   ;;  %v1565_v28 = vld [vmem:[#allocation3 + $0x50] sm:$0xff]  }
  0x12   :  { %1434 = vmatpush3.bf16.msra.mxu0 %v1562_v25  ;;  %1553 = vmatpush3.bf16.msra.mxu1 %v1562_v25  ;;  %v1566_v29 = vld [vmem:[#allocation3 + $0x10] sm:$0xff]   ;;  %v1567_v30 = vld [vmem:[#allocation3 + $0x58] sm:$0xff]   ;;  %v1191_v34 = vld [vmem:[%s1929_s1 + $0x160] sm:$0xf] }
  0x13   :  { %1435 = vmatprep.subr.bf16.mxu0 %v1563_v26  ;;  %1546 = vmatprep.subr.bf16.mxu1 %v1563_v26  ;;  %v1568_v31 = vld [vmem:[#allocation3 + $0x18] sm:$0xff]   ;;  %v1190_v33 = vld [vmem:[%s1929_s1 + $0x154] sm:$0xf]  ;;  %86 = vst [vmem:[#allocation3 + $0x74] sm:$0xf] %v1191_v34 }
  0x14   :  { %v1569_v32 = vld [vmem:[#allocation3 + $0x60] sm:$0xff]   ;;  %v1174_v35 = vld [vmem:[%s1929_s1 + $0x94] sm:$0xf]  ;;  %84 = vst [vmem:[#allocation3 + $0x70] sm:$0xf] %v1190_v33 }
  0x15   :  { %52 = vst [vmem:[#allocation3 + $0x30] sm:$0xf] %v1174_v35  ;;  %v1175_v36 = vld [vmem:[%s1929_s1 + $0xa0] sm:$0xf]  ;;  %v1192_v37 = vld [vmem:[%s1929_s1 + $0x16c] sm:$0xf] }
  0x16   :  { %1436 = vmatpush3.bf16.msra.mxu0 %v1564_v27  ;;  %1554 = vmatpush3.bf16.msra.mxu1 %v1564_v27  ;;  %v1193_v38 = vld [vmem:[%s1929_s1 + $0x178] sm:$0xf]  ;;  %54 = vst [vmem:[#allocation3 + $0x34] sm:$0xf] %v1175_v36  ;;  %88 = vst [vmem:[#allocation3 + $0x78] sm:$0xf] %v1192_v37 }
  0x17   :  { %1437 = vmatprep.subr.bf16.mxu0 %v1565_v28  ;;  %1547 = vmatprep.subr.bf16.mxu1 %v1565_v28  ;;  %90 = vst [vmem:[#allocation3 + $0x7c] sm:$0xf] %v1193_v38  ;;  %v1176_v39 = vld [vmem:[%s1929_s1 + $0xac] sm:$0xf]  ;;  %v1177_v40 = vld [vmem:[%s1929_s1 + $0xb8] sm:$0xf] }
  0x18   :  { %v1570_v41 = vld [vmem:[#allocation3 + $0x20] sm:$0xff]   ;;  %56 = vst [vmem:[#allocation3 + $0x38] sm:$0xf] %v1176_v39  ;;  %58 = vst [vmem:[#allocation3 + $0x3c] sm:$0xf] %v1177_v40  ;;  %v1571_v43 = vld [vmem:[#allocation3 + $0x68] sm:$0xff]  }
  0x19   :  { %v1579_v42 = vld [vmem:[%s1928_s0 + $0x4] ss:$8 sps:$4 sm:$0xff]   ;;  %v1577_v50 = vld [vmem:[%s1928_s0] ss:$8 sps:$4 sm:$0xff]   ;;  %v1583_v52 = vld [vmem:[%s1928_s0 + $0x14] ss:$8 sps:$4 sm:$0xff]  }
  0x1a   :  { %1438 = vmatpush3.bf16.msra.mxu0 %v1566_v29  ;;  %1555 = vmatpush3.bf16.msra.mxu1 %v1566_v29  ;;  %v1582_v44 = vld [vmem:[%s1928_s0 + $0x84] ss:$8 sps:$4 sm:$0xff]   ;;  %v1580_v51 = vld [vmem:[%s1928_s0 + $0x80] ss:$8 sps:$4 sm:$0xff]   ;;  %v1585_v53 = vld [vmem:[%s1928_s0 + $0x94] ss:$8 sps:$4 sm:$0xff]  }
  0x1b   :  { %1439 = vmatprep.subr.bf16.mxu0 %v1567_v30  ;;  %1548 = vmatprep.subr.bf16.mxu1 %v1567_v30  ;;  %v1572_v45 = vld [vmem:[#allocation3 + $0x28] sm:$0xff]   ;;  %v1573_v46 = vld [vmem:[#allocation3 + $0x70] sm:$0xff]  }
  0x1c   :  { %598 = vmatprep.mubr.bf16.mxu0 %v1579_v42  ;;  %662 = vmatprep.mubr.bf16.mxu1 %v1582_v44  ;;  %v1587_v54 = vld [vmem:[%s1928_s0 + $0x10] ss:$8 sps:$4 sm:$0xff]   ;;  %v1589_v56 = vld [vmem:[%s1928_s0 + $0x24] ss:$8 sps:$4 sm:$0xff]   ;;  %v1593_v58 = vld [vmem:[%s1928_s0 + $0x20] ss:$8 sps:$4 sm:$0xff]  }
  0x1d   :  { %v1574_v47 = vld [vmem:[#allocation3 + $0x30] sm:$0xff]   ;;  %v1591_v57 = vld [vmem:[%s1928_s0 + $0xa4] ss:$8 sps:$4 sm:$0xff]   ;;  %v1594_v59 = vld [vmem:[%s1928_s0 + $0xa0] ss:$8 sps:$4 sm:$0xff]  }
  0x1e   :  { %1440 = vmatpush3.bf16.msra.mxu0 %v1568_v31  ;;  %1556 = vmatpush3.bf16.msra.mxu1 %v1568_v31  ;;  %v1575_v48 = vld [vmem:[#allocation3 + $0x78] sm:$0xff]   ;;  %v1601_v0 = vld [vmem:[%s1928_s0 + $0x44] ss:$8 sps:$4 sm:$0xff]   ;;  %v1605_v2 = vld [vmem:[%s1928_s0 + $0x40] ss:$8 sps:$4 sm:$0xff]  }
  0x1f   :  { %1441 = vmatprep.subr.bf16.mxu0 %v1569_v32  ;;  %1549 = vmatprep.subr.bf16.mxu1 %v1569_v32  ;;  %v1576_v49 = vld [vmem:[#allocation3 + $0x38] sm:$0xff]   ;;  %v1603_v1 = vld [vmem:[%s1928_s0 + $0xc4] ss:$8 sps:$4 sm:$0xff]   ;;  %v1606_v3 = vld [vmem:[%s1928_s0 + $0xc0] ss:$8 sps:$4 sm:$0xff]  }
  0x20   :  { %v1588_v55 = vld [vmem:[%s1928_s0 + $0x90] ss:$8 sps:$4 sm:$0xff]   ;;  %v1595_v60 = vld [vmem:[%s1928_s0 + $0x34] ss:$8 sps:$4 sm:$0xff]   ;;  %v1613_v8 = vld [vmem:[%s1928_s0 + $0x64] ss:$8 sps:$4 sm:$0xff]  }
  0x21   :  { %v1597_v61 = vld [vmem:[%s1928_s0 + $0xb4] ss:$8 sps:$4 sm:$0xff]   ;;  %v1599_v62 = vld [vmem:[%s1928_s0 + $0x30] ss:$8 sps:$4 sm:$0xff]   ;;  %v1615_v9 = vld [vmem:[%s1928_s0 + $0xe4] ss:$8 sps:$4 sm:$0xff]  }
  0x22   :  { %1442 = vmatpush3.bf16.msra.mxu0 %v1570_v41  ;;  %1557 = vmatpush3.bf16.msra.mxu1 %v1570_v41  ;;  %v1600_v63 = vld [vmem:[%s1928_s0 + $0xb0] ss:$8 sps:$4 sm:$0xff]   ;;  %v1607_v4 = vld [vmem:[%s1928_s0 + $0x54] ss:$8 sps:$4 sm:$0xff]   ;;  %v1617_v10 = vld [vmem:[%s1928_s0 + $0x60] ss:$8 sps:$4 sm:$0xff]  }
  0x23   :  { %1443 = vmatprep.subr.bf16.mxu0 %v1571_v43  ;;  %1550 = vmatprep.subr.bf16.mxu1 %v1571_v43  ;;  %v1609_v5 = vld [vmem:[%s1928_s0 + $0xd4] ss:$8 sps:$4 sm:$0xff]   ;;  %v1611_v6 = vld [vmem:[%s1928_s0 + $0x50] ss:$8 sps:$4 sm:$0xff]   ;;  %v1618_v11 = vld [vmem:[%s1928_s0 + $0xe0] ss:$8 sps:$4 sm:$0xff]  }
  0x24   :  { %v1612_v7 = vld [vmem:[%s1928_s0 + $0xd0] ss:$8 sps:$4 sm:$0xff]   ;;  %v1619_v12 = vld [vmem:[%s1928_s0 + $0x74] ss:$8 sps:$4 sm:$0xff]  }
  0x25   :  { %v1621_v13 = vld [vmem:[%s1928_s0 + $0xf4] ss:$8 sps:$4 sm:$0xff]   ;;  %v1623_v14 = vld [vmem:[%s1928_s0 + $0x70] ss:$8 sps:$4 sm:$0xff]  }
  0x26   :  { %1444 = vmatpush3.bf16.msra.mxu0 %v1572_v45  ;;  %1558 = vmatpush3.bf16.msra.mxu1 %v1572_v45  ;;  %v1624_v15 = vld [vmem:[%s1928_s0 + $0xf0] ss:$8 sps:$4 sm:$0xff]  }
  0x27   :  { %1445 = vmatprep.subr.bf16.mxu0 %v1573_v46  ;;  %1551 = vmatprep.subr.bf16.mxu1 %v1573_v46 }
  0x2a   :  { %1446 = vmatpush3.bf16.msra.mxu0 %v1574_v47  ;;  %1559 = vmatpush3.bf16.msra.mxu1 %v1574_v47 }
  0x2b   :  { %1447 = vmatprep.subr.bf16.mxu0 %v1575_v48  ;;  %1552 = vmatprep.subr.bf16.mxu1 %v1575_v48 }
  0x2e   :  { %1448 = vmatpush3.bf16.msra.mxu0 %v1576_v49  ;;  %1560 = vmatpush3.bf16.msra.mxu1 %v1576_v49 }
  0x31   :  { %599 = vmatmul.mubr.bf16.vlgmr.msra.gmra.mrb[0].mxu0 %v1577_v50  ;;  %663 = vmatmul.mubr.bf16.vlgmr.msra.gmra.mrb[0].mxu1 %v1580_v51 }
  0x32   :  { %606 = vmatprep.mubr.bf16.mxu0 %v1583_v52  ;;  %670 = vmatprep.mubr.bf16.mxu1 %v1585_v53 }
  0x39   :  { %607 = vmatmul.mubr.bf16.gmra.mrb[4].mxu0 %v1587_v54  ;;  %671 = vmatmul.mubr.bf16.gmra.mrb[4].mxu1 %v1588_v55 }
  0x3a   :  { %614 = vmatprep.mubr.bf16.mxu0 %v1589_v56  ;;  %678 = vmatprep.mubr.bf16.mxu1 %v1591_v57 }
  0x41   :  { %615 = vmatmul.mubr.bf16.gmra.mrb[8].mxu0 %v1593_v58  ;;  %679 = vmatmul.mubr.bf16.gmra.mrb[8].mxu1 %v1594_v59 }
  0x42   :  { %622 = vmatprep.mubr.bf16.mxu0 %v1595_v60  ;;  %686 = vmatprep.mubr.bf16.mxu1 %v1597_v61 }
  0x49   :  { %623 = vmatmul.mubr.bf16.gmra.mrb[12].mxu0 %v1599_v62  ;;  %687 = vmatmul.mubr.bf16.gmra.mrb[12].mxu1 %v1600_v63 }
  0x4a   :  { %630 = vmatprep.mubr.bf16.mxu0 %v1601_v0  ;;  %694 = vmatprep.mubr.bf16.mxu1 %v1603_v1 }
  0x51   :  { %631 = vmatmul.mubr.bf16.gmra.mrb[16].mxu0 %v1605_v2  ;;  %695 = vmatmul.mubr.bf16.gmra.mrb[16].mxu1 %v1606_v3 }
  0x52   :  { %638 = vmatprep.mubr.bf16.mxu0 %v1607_v4  ;;  %702 = vmatprep.mubr.bf16.mxu1 %v1609_v5 }
  0x59   :  { %639 = vmatmul.mubr.bf16.gmra.mrb[20].mxu0 %v1611_v6  ;;  %703 = vmatmul.mubr.bf16.gmra.mrb[20].mxu1 %v1612_v7 }
  0x5a   :  { %646 = vmatprep.mubr.bf16.mxu0 %v1613_v8  ;;  %710 = vmatprep.mubr.bf16.mxu1 %v1615_v9 }
  0x61   :  { %647 = vmatmul.mubr.bf16.gmra.mrb[24].mxu0 %v1617_v10  ;;  %711 = vmatmul.mubr.bf16.gmra.mrb[24].mxu1 %v1618_v11 }
  0x62   :  { %654 = vmatprep.mubr.bf16.mxu0 %v1619_v12  ;;  %718 = vmatprep.mubr.bf16.mxu1 %v1621_v13 }
  0x69   :  { %655 = vmatmul.mubr.bf16.gmra.mrb[28].mxu0 %v1623_v14  ;;  %719 = vmatmul.mubr.bf16.gmra.mrb[28].mxu1 %v1624_v15 }
 0x104   :  { %v1449_v16 = vpop.f32.mrb[0].mxu0  ;;  %v1497_v17 = vpop.f32.mrb[0].mxu1 }
 0x105   :  { %v1450_v18 = vpop.f32.mrb[1].mxu0  ;;  %v1498_v19 = vpop.f32.mrb[1].mxu1 }
 0x106   :  { %v1451_v20 = vadd.f32 %v1450_v18, %v1449_v16  ;;  %v1499_v21 = vadd.f32 %v1498_v19, %v1497_v17  ;;  %v1452_v22 = vpop.f32.mrb[2].mxu0  ;;  %v1500_v23 = vpop.f32.mrb[2].mxu1 }
 0x107   :  { %v1453_v24 = vpop.f32.mrb[3].mxu0  ;;  %v1501_v25 = vpop.f32.mrb[3].mxu1 }
 0x108   :  { %v1454_v26 = vadd.f32 %v1453_v24, %v1452_v22  ;;  %v1502_v27 = vadd.f32 %v1501_v25, %v1500_v23 }
 0x10a   :  { %v1341_v28 = vpack.c.bf16 %v1454_v26, %v1451_v20  ;;  %v1381_v29 = vpack.c.bf16 %v1502_v27, %v1499_v21 }
 0x10c   :  { %1342 = vst [vmem:[#allocation4] sm:$0xff] %v1341_v28   ;;  %1425 = vst [vmem:[#allocation4 + $0x40] sm:$0xff] %v1381_v29   ;;  %v1455_v30 = vpop.f32.mrb[4].mxu0  ;;  %v1503_v31 = vpop.f32.mrb[4].mxu1 }
 0x10d   :  { %v1456_v32 = vpop.f32.mrb[5].mxu0  ;;  %v1504_v33 = vpop.f32.mrb[5].mxu1 }
 0x10e   :  { %v1457_v34 = vadd.f32 %v1456_v32, %v1455_v30  ;;  %v1505_v35 = vadd.f32 %v1504_v33, %v1503_v31  ;;  %v1458_v36 = vpop.f32.mrb[6].mxu0  ;;  %v1506_v37 = vpop.f32.mrb[6].mxu1 }
 0x10f   :  { %v1459_v38 = vpop.f32.mrb[7].mxu0  ;;  %v1507_v39 = vpop.f32.mrb[7].mxu1 }
 0x110   :  { %v1460_v40 = vadd.f32 %v1459_v38, %v1458_v36  ;;  %v1508_v41 = vadd.f32 %v1507_v39, %v1506_v37 }
 0x112   :  { %v1346_v42 = vpack.c.bf16 %v1460_v40, %v1457_v34  ;;  %v1386_v43 = vpack.c.bf16 %v1508_v41, %v1505_v35 }
 0x113   :  { %v1004_v44 = vld [vmem:[#allocation4] sm:$0xf]  ;;  %v1006_v45 = vld [vmem:[#allocation4 + $0x4] sm:$0xf] }
 0x114   :  { %v1036_v46 = vld [vmem:[#allocation4 + $0x40] sm:$0xf]  ;;  %1274 = vst [vmem:[%s1930_s2 + $0x8] sm:$0xf] %v1004_v44  ;;  %1275 = vst [vmem:[%s1930_s2 + $0x14] sm:$0xf] %v1006_v45 }
 0x115   :  { %1290 = vst [vmem:[%s1930_s2 + $0xc8] sm:$0xf] %v1036_v46  ;;  %v1038_v47 = vld [vmem:[#allocation4 + $0x44] sm:$0xf]  ;;  %1418 = vst [vmem:[#allocation4 + $0x8] sm:$0xff] %v1346_v42   ;;  %v1461_v48 = vpop.f32.mrb[8].mxu0 }
 0x116   :  { %1426 = vst [vmem:[#allocation4 + $0x48] sm:$0xff] %v1386_v43   ;;  %v1509_v49 = vpop.f32.mrb[8].mxu1  ;;  %1291 = vst [vmem:[%s1930_s2 + $0xd4] sm:$0xf] %v1038_v47  ;;  %v1462_v50 = vpop.f32.mrb[9].mxu0 }
 0x117   :  { %v1510_v51 = vpop.f32.mrb[9].mxu1  ;;  %v1463_v52 = vadd.f32 %v1462_v50, %v1461_v48  ;;  %v1464_v54 = vpop.f32.mrb[10].mxu0 }
 0x118   :  { %v1511_v53 = vadd.f32 %v1510_v51, %v1509_v49  ;;  %v1512_v55 = vpop.f32.mrb[10].mxu1  ;;  %v1465_v56 = vpop.f32.mrb[11].mxu0 }
 0x119   :  { %v1513_v57 = vpop.f32.mrb[11].mxu1  ;;  %v1466_v58 = vadd.f32 %v1465_v56, %v1464_v54 }
 0x11a   :  { %v1514_v59 = vadd.f32 %v1513_v57, %v1512_v55 }
 0x11b   :  { %v1351_v60 = vpack.c.bf16 %v1466_v58, %v1463_v52 }
 0x11c   :  { %v1391_v61 = vpack.c.bf16 %v1514_v59, %v1511_v53  ;;  %v1008_v62 = vld [vmem:[#allocation4 + $0x8] sm:$0xf]  ;;  %v1010_v63 = vld [vmem:[#allocation4 + $0xc] sm:$0xf]  ;;  %v1467_v2 = vpop.f32.mrb[12].mxu0  ;;  %v1515_v3 = vpop.f32.mrb[12].mxu1 }
 0x11d   :  { %v1040_v0 = vld [vmem:[#allocation4 + $0x48] sm:$0xf]  ;;  %1276 = vst [vmem:[%s1930_s2 + $0x20] sm:$0xf] %v1008_v62  ;;  %1277 = vst [vmem:[%s1930_s2 + $0x2c] sm:$0xf] %v1010_v63 }
 0x11e   :  { %1292 = vst [vmem:[%s1930_s2 + $0xe0] sm:$0xf] %v1040_v0  ;;  %v1042_v1 = vld [vmem:[#allocation4 + $0x4c] sm:$0xf]  ;;  %1419 = vst [vmem:[#allocation4 + $0x10] sm:$0xff] %v1351_v60   ;;  %v1468_v4 = vpop.f32.mrb[13].mxu0 }
 0x11f   :  { %1427 = vst [vmem:[#allocation4 + $0x50] sm:$0xff] %v1391_v61   ;;  %1293 = vst [vmem:[%s1930_s2 + $0xec] sm:$0xf] %v1042_v1  ;;  %v1516_v5 = vpop.f32.mrb[13].mxu1  ;;  %v1469_v6 = vadd.f32 %v1468_v4, %v1467_v2  ;;  %v1470_v8 = vpop.f32.mrb[14].mxu0 }
 0x120   :  { %v1517_v7 = vadd.f32 %v1516_v5, %v1515_v3  ;;  %v1518_v9 = vpop.f32.mrb[14].mxu1  ;;  %v1471_v10 = vpop.f32.mrb[15].mxu0 }
 0x121   :  { %v1519_v11 = vpop.f32.mrb[15].mxu1  ;;  %v1472_v12 = vadd.f32 %v1471_v10, %v1470_v8 }
 0x122   :  { %v1520_v13 = vadd.f32 %v1519_v11, %v1518_v9 }
 0x123   :  { %v1356_v14 = vpack.c.bf16 %v1472_v12, %v1469_v6 }
 0x124   :  { %v1396_v15 = vpack.c.bf16 %v1520_v13, %v1517_v7  ;;  %v1473_v20 = vpop.f32.mrb[16].mxu0  ;;  %v1521_v21 = vpop.f32.mrb[16].mxu1 }
 0x125   :  { %v1012_v16 = vld [vmem:[#allocation4 + $0x10] sm:$0xf]  ;;  %v1014_v17 = vld [vmem:[#allocation4 + $0x14] sm:$0xf]  ;;  %1420 = vst [vmem:[#allocation4 + $0x18] sm:$0xff] %v1356_v14   ;;  %v1474_v22 = vpop.f32.mrb[17].mxu0 }
 0x126   :  { %v1044_v18 = vld [vmem:[#allocation4 + $0x50] sm:$0xf]  ;;  %1278 = vst [vmem:[%s1930_s2 + $0x38] sm:$0xf] %v1012_v16  ;;  %1279 = vst [vmem:[%s1930_s2 + $0x44] sm:$0xf] %v1014_v17  ;;  %v1475_v24 = vadd.f32 %v1474_v22, %v1473_v20 }
 0x127   :  { %1294 = vst [vmem:[%s1930_s2 + $0xf8] sm:$0xf] %v1044_v18  ;;  %v1046_v19 = vld [vmem:[#allocation4 + $0x54] sm:$0xf]  ;;  %1428 = vst [vmem:[#allocation4 + $0x58] sm:$0xff] %v1396_v15   ;;  %v1522_v23 = vpop.f32.mrb[17].mxu1 }
 0x128   :  { %1295 = vst [vmem:[%s1930_s2 + $0x104] sm:$0xf] %v1046_v19  ;;  %v1523_v25 = vadd.f32 %v1522_v23, %v1521_v21  ;;  %v1476_v26 = vpop.f32.mrb[18].mxu0  ;;  %v1524_v27 = vpop.f32.mrb[18].mxu1 }
 0x129   :  { %v1477_v28 = vpop.f32.mrb[19].mxu0  ;;  %v1525_v29 = vpop.f32.mrb[19].mxu1 }
 0x12a   :  { %v1478_v30 = vadd.f32 %v1477_v28, %v1476_v26  ;;  %v1526_v31 = vadd.f32 %v1525_v29, %v1524_v27 }
 0x12c   :  { %v1361_v32 = vpack.c.bf16 %v1478_v30, %v1475_v24  ;;  %v1401_v33 = vpack.c.bf16 %v1526_v31, %v1523_v25  ;;  %v1016_v34 = vld [vmem:[#allocation4 + $0x18] sm:$0xf]  ;;  %v1018_v35 = vld [vmem:[#allocation4 + $0x1c] sm:$0xf]  ;;  %v1479_v38 = vpop.f32.mrb[20].mxu0  ;;  %v1527_v39 = vpop.f32.mrb[20].mxu1 }
 0x12d   :  { %1280 = vst [vmem:[%s1930_s2 + $0x50] sm:$0xf] %v1016_v34  ;;  %1281 = vst [vmem:[%s1930_s2 + $0x5c] sm:$0xf] %v1018_v35  ;;  %v1480_v40 = vpop.f32.mrb[21].mxu0  ;;  %v1528_v41 = vpop.f32.mrb[21].mxu1 }
 0x12e   :  { %v1048_v36 = vld [vmem:[#allocation4 + $0x58] sm:$0xf]  ;;  %v1050_v37 = vld [vmem:[#allocation4 + $0x5c] sm:$0xf]  ;;  %1421 = vst [vmem:[#allocation4 + $0x20] sm:$0xff] %v1361_v32   ;;  %1429 = vst [vmem:[#allocation4 + $0x60] sm:$0xff] %v1401_v33   ;;  %v1481_v42 = vadd.f32 %v1480_v40, %v1479_v38  ;;  %v1529_v43 = vadd.f32 %v1528_v41, %v1527_v39 }
 0x12f   :  { %1296 = vst [vmem:[%s1930_s2 + $0x110] sm:$0xf] %v1048_v36  ;;  %1297 = vst [vmem:[%s1930_s2 + $0x11c] sm:$0xf] %v1050_v37  ;;  %v1482_v44 = vpop.f32.mrb[22].mxu0  ;;  %v1530_v45 = vpop.f32.mrb[22].mxu1 }
 0x130   :  { %v1483_v46 = vpop.f32.mrb[23].mxu0  ;;  %v1531_v47 = vpop.f32.mrb[23].mxu1 }
 0x131   :  { %v1484_v48 = vadd.f32 %v1483_v46, %v1482_v44  ;;  %v1532_v49 = vadd.f32 %v1531_v47, %v1530_v45 }
 0x133   :  { %v1366_v50 = vpack.c.bf16 %v1484_v48, %v1481_v42  ;;  %v1406_v51 = vpack.c.bf16 %v1532_v49, %v1529_v43 }
 0x134   :  { %v1485_v56 = vpop.f32.mrb[24].mxu0  ;;  %v1533_v57 = vpop.f32.mrb[24].mxu1 }
 0x135   :  { %v1020_v52 = vld [vmem:[#allocation4 + $0x20] sm:$0xf]  ;;  %v1022_v53 = vld [vmem:[#allocation4 + $0x24] sm:$0xf]  ;;  %1422 = vst [vmem:[#allocation4 + $0x28] sm:$0xff] %v1366_v50   ;;  %1430 = vst [vmem:[#allocation4 + $0x68] sm:$0xff] %v1406_v51  }
 0x136   :  { %v1052_v54 = vld [vmem:[#allocation4 + $0x60] sm:$0xf]  ;;  %1282 = vst [vmem:[%s1930_s2 + $0x68] sm:$0xf] %v1020_v52  ;;  %1283 = vst [vmem:[%s1930_s2 + $0x74] sm:$0xf] %v1022_v53 }
 0x137   :  { %1298 = vst [vmem:[%s1930_s2 + $0x128] sm:$0xf] %v1052_v54  ;;  %v1054_v55 = vld [vmem:[#allocation4 + $0x64] sm:$0xf]  ;;  %v1486_v58 = vpop.f32.mrb[25].mxu0  ;;  %v1534_v59 = vpop.f32.mrb[25].mxu1 }
 0x138   :  { %1299 = vst [vmem:[%s1930_s2 + $0x134] sm:$0xf] %v1054_v55  ;;  %v1487_v60 = vadd.f32 %v1486_v58, %v1485_v56  ;;  %v1535_v61 = vadd.f32 %v1534_v59, %v1533_v57  ;;  %v1488_v62 = vpop.f32.mrb[26].mxu0  ;;  %v1536_v63 = vpop.f32.mrb[26].mxu1 }
 0x139   :  { %v1489_v0 = vpop.f32.mrb[27].mxu0  ;;  %v1537_v1 = vpop.f32.mrb[27].mxu1 }
 0x13a   :  { %v1490_v2 = vadd.f32 %v1489_v0, %v1488_v62  ;;  %v1538_v3 = vadd.f32 %v1537_v1, %v1536_v63 }
 0x13c   :  { %v1371_v4 = vpack.c.bf16 %v1490_v2, %v1487_v60  ;;  %v1411_v5 = vpack.c.bf16 %v1538_v3, %v1535_v61  ;;  %v1024_v6 = vld [vmem:[#allocation4 + $0x28] sm:$0xf]  ;;  %v1026_v7 = vld [vmem:[#allocation4 + $0x2c] sm:$0xf]  ;;  %v1491_v10 = vpop.f32.mrb[28].mxu0  ;;  %v1539_v11 = vpop.f32.mrb[28].mxu1 }
 0x13d   :  { %v1056_v8 = vld [vmem:[#allocation4 + $0x68] sm:$0xf]  ;;  %1284 = vst [vmem:[%s1930_s2 + $0x80] sm:$0xf] %v1024_v6  ;;  %1285 = vst [vmem:[%s1930_s2 + $0x8c] sm:$0xf] %v1026_v7 }
 0x13e   :  { %1300 = vst [vmem:[%s1930_s2 + $0x140] sm:$0xf] %v1056_v8  ;;  %v1058_v9 = vld [vmem:[#allocation4 + $0x6c] sm:$0xf]  ;;  %1423 = vst [vmem:[#allocation4 + $0x30] sm:$0xff] %v1371_v4   ;;  %v1492_v12 = vpop.f32.mrb[29].mxu0 }
 0x13f   :  { %1431 = vst [vmem:[#allocation4 + $0x70] sm:$0xff] %v1411_v5   ;;  %1301 = vst [vmem:[%s1930_s2 + $0x14c] sm:$0xf] %v1058_v9  ;;  %v1540_v13 = vpop.f32.mrb[29].mxu1  ;;  %v1493_v14 = vadd.f32 %v1492_v12, %v1491_v10  ;;  %v1494_v16 = vpop.f32.mrb[30].mxu0 }
 0x140   :  { %v1541_v15 = vadd.f32 %v1540_v13, %v1539_v11  ;;  %v1542_v17 = vpop.f32.mrb[30].mxu1  ;;  %v1495_v18 = vpop.f32.mrb[31].mxu0 }
 0x141   :  { %v1543_v19 = vpop.f32.mrb[31].mxu1  ;;  %v1496_v20 = vadd.f32 %v1495_v18, %v1494_v16 }
 0x142   :  { %v1544_v21 = vadd.f32 %v1543_v19, %v1542_v17 }
 0x143   :  { %v1376_v22 = vpack.c.bf16 %v1496_v20, %v1493_v14 }
 0x144   :  { %v1416_v23 = vpack.c.bf16 %v1544_v21, %v1541_v15 }
 0x145   :  { %v1028_v24 = vld [vmem:[#allocation4 + $0x30] sm:$0xf]  ;;  %v1030_v25 = vld [vmem:[#allocation4 + $0x34] sm:$0xf]  ;;  %1424 = vst [vmem:[#allocation4 + $0x38] sm:$0xff] %v1376_v22  }
 0x146   :  { %v1060_v26 = vld [vmem:[#allocation4 + $0x70] sm:$0xf]  ;;  %1286 = vst [vmem:[%s1930_s2 + $0x98] sm:$0xf] %v1028_v24  ;;  %1287 = vst [vmem:[%s1930_s2 + $0xa4] sm:$0xf] %v1030_v25 }
 0x147   :  { %1302 = vst [vmem:[%s1930_s2 + $0x158] sm:$0xf] %v1060_v26  ;;  %v1062_v27 = vld [vmem:[#allocation4 + $0x74] sm:$0xf]  ;;  %1432 = vst [vmem:[#allocation4 + $0x78] sm:$0xff] %v1416_v23  }
 0x148   :  { %1303 = vst [vmem:[%s1930_s2 + $0x164] sm:$0xf] %v1062_v27 }
 0x14c   :  { %v1032_v28 = vld [vmem:[#allocation4 + $0x38] sm:$0xf]  ;;  %v1034_v29 = vld [vmem:[#allocation4 + $0x3c] sm:$0xf] }
 0x14d   :  { %1288 = vst [vmem:[%s1930_s2 + $0xb0] sm:$0xf] %v1032_v28  ;;  %1289 = vst [vmem:[%s1930_s2 + $0xbc] sm:$0xf] %v1034_v29 }
 0x14e   :  { %v1064_v30 = vld [vmem:[#allocation4 + $0x78] sm:$0xf]  ;;  %v1066_v31 = vld [vmem:[#allocation4 + $0x7c] sm:$0xf] }
 0x14f   :  { %1304 = vst [vmem:[%s1930_s2 + $0x170] sm:$0xf] %v1064_v30  ;;  %1305 = vst [vmem:[%s1930_s2 + $0x17c] sm:$0xf] %v1066_v31 }

// kernel: tag_linear_forward.6
= control target key start
LH: loop header
LB: loop body
LE: loop exit
PB: predicated region body
PF: predicated region fallthrough
CT: control target
= control target key end

     0   :  { %s1895_s0 = inlined_call_operand.vmem [shape: bf16[256,256], index: 0, kind: input, shape index: {}]   ;;  %s1896_s1 = inlined_call_operand.vmem [shape: bf16[256,384], index: 1, kind: input, shape index: {}, may-alias: {1,2}]   ;;  %s1897_s2 = inlined_call_operand.vmem [shape: bf16[256,384], index: 2, kind: output, shape index: {}, may-alias: {1,2}]  }
   0x1   :  { %v58_v0 = vld [vmem:[%s1896_s1 + $0xc0] sm:$0xf]  ;;  %v60_v1 = vld [vmem:[%s1896_s1 + $0xcc] sm:$0xf]  ;;  %v62_v4 = vld [vmem:[%s1896_s1 + $0xd8] sm:$0xf] }
   0x2   :  { %v26_v2 = vld [vmem:[%s1896_s1] sm:$0xf]  ;;  %59 = vst [vmem:[#allocation3 + $0x40] sm:$0xf] %v58_v0  ;;  %61 = vst [vmem:[#allocation3 + $0x44] sm:$0xf] %v60_v1 }
   0x3   :  { %27 = vst [vmem:[#allocation3] sm:$0xf] %v26_v2  ;;  %v28_v3 = vld [vmem:[%s1896_s1 + $0xc] sm:$0xf]  ;;  %v64_v5 = vld [vmem:[%s1896_s1 + $0xe4] sm:$0xf] }
   0x4   :  { %29 = vst [vmem:[#allocation3 + $0x4] sm:$0xf] %v28_v3  ;;  %63 = vst [vmem:[#allocation3 + $0x48] sm:$0xf] %v62_v4  ;;  %v30_v6 = vld [vmem:[%s1896_s1 + $0x18] sm:$0xf] }
   0x5   :  { %65 = vst [vmem:[#allocation3 + $0x4c] sm:$0xf] %v64_v5  ;;  %v32_v7 = vld [vmem:[%s1896_s1 + $0x24] sm:$0xf]  ;;  %v66_v8 = vld [vmem:[%s1896_s1 + $0xf0] sm:$0xf] }
   0x6   :  { %31 = vst [vmem:[#allocation3 + $0x8] sm:$0xf] %v30_v6  ;;  %33 = vst [vmem:[#allocation3 + $0xc] sm:$0xf] %v32_v7  ;;  %v68_v9 = vld [vmem:[%s1896_s1 + $0xfc] sm:$0xf] }
   0x7   :  { %67 = vst [vmem:[#allocation3 + $0x50] sm:$0xf] %v66_v8  ;;  %v34_v10 = vld [vmem:[%s1896_s1 + $0x30] sm:$0xf]  ;;  %v36_v11 = vld [vmem:[%s1896_s1 + $0x3c] sm:$0xf] }
   0x8   :  { %69 = vst [vmem:[#allocation3 + $0x54] sm:$0xf] %v68_v9  ;;  %35 = vst [vmem:[#allocation3 + $0x10] sm:$0xf] %v34_v10  ;;  %v70_v12 = vld [vmem:[%s1896_s1 + $0x108] sm:$0xf] }
   0x9   :  { %37 = vst [vmem:[#allocation3 + $0x14] sm:$0xf] %v36_v11  ;;  %v72_v13 = vld [vmem:[%s1896_s1 + $0x114] sm:$0xf]  ;;  %v38_v14 = vld [vmem:[%s1896_s1 + $0x48] sm:$0xf] }
   0xa   :  { %71 = vst [vmem:[#allocation3 + $0x58] sm:$0xf] %v70_v12  ;;  %73 = vst [vmem:[#allocation3 + $0x5c] sm:$0xf] %v72_v13  ;;  %v40_v15 = vld [vmem:[%s1896_s1 + $0x54] sm:$0xf] }
   0xb   :  { %39 = vst [vmem:[#allocation3 + $0x18] sm:$0xf] %v38_v14  ;;  %v74_v16 = vld [vmem:[%s1896_s1 + $0x120] sm:$0xf]  ;;  %v76_v17 = vld [vmem:[%s1896_s1 + $0x12c] sm:$0xf] }
   0xc   :  { %41 = vst [vmem:[#allocation3 + $0x1c] sm:$0xf] %v40_v15  ;;  %75 = vst [vmem:[#allocation3 + $0x60] sm:$0xf] %v74_v16  ;;  %v42_v18 = vld [vmem:[%s1896_s1 + $0x60] sm:$0xf] }
   0xd   :  { %77 = vst [vmem:[#allocation3 + $0x64] sm:$0xf] %v76_v17  ;;  %v44_v19 = vld [vmem:[%s1896_s1 + $0x6c] sm:$0xf]  ;;  %v78_v20 = vld [vmem:[%s1896_s1 + $0x138] sm:$0xf] }
   0xe   :  { %43 = vst [vmem:[#allocation3 + $0x20] sm:$0xf] %v42_v18  ;;  %45 = vst [vmem:[#allocation3 + $0x24] sm:$0xf] %v44_v19  ;;  %v80_v21 = vld [vmem:[%s1896_s1 + $0x144] sm:$0xf] }
   0xf   :  { %79 = vst [vmem:[#allocation3 + $0x68] sm:$0xf] %v78_v20  ;;  %v46_v22 = vld [vmem:[%s1896_s1 + $0x78] sm:$0xf]  ;;  %v48_v23 = vld [vmem:[%s1896_s1 + $0x84] sm:$0xf] }
  0x10   :  { %v1528_v24 = vld [vmem:[#allocation3 + $0x40] sm:$0xff]   ;;  %81 = vst [vmem:[#allocation3 + $0x6c] sm:$0xf] %v80_v21  ;;  %47 = vst [vmem:[#allocation3 + $0x28] sm:$0xf] %v46_v22  ;;  %v1530_v26 = vld [vmem:[#allocation3 + $0x48] sm:$0xff]  }
  0x11   :  { %49 = vst [vmem:[#allocation3 + $0x2c] sm:$0xf] %v48_v23  ;;  %v1529_v25 = vld [vmem:[#allocation3] sm:$0xff]   ;;  %1400 = vmatprep.subr.bf16.mxu0 %v1528_v24  ;;  %1512 = vmatprep.subr.bf16.mxu1 %v1528_v24  ;;  %v1531_v27 = vld [vmem:[#allocation3 + $0x8] sm:$0xff]   ;;  %v1532_v28 = vld [vmem:[#allocation3 + $0x50] sm:$0xff]  }
  0x12   :  { %1401 = vmatpush3.bf16.msra.mxu0 %v1529_v25  ;;  %1520 = vmatpush3.bf16.msra.mxu1 %v1529_v25  ;;  %v1533_v29 = vld [vmem:[#allocation3 + $0x10] sm:$0xff]   ;;  %v1534_v30 = vld [vmem:[#allocation3 + $0x58] sm:$0xff]   ;;  %v86_v37 = vld [vmem:[%s1896_s1 + $0x168] sm:$0xf] }
  0x13   :  { %1402 = vmatprep.subr.bf16.mxu0 %v1530_v26  ;;  %1513 = vmatprep.subr.bf16.mxu1 %v1530_v26  ;;  %v1535_v31 = vld [vmem:[#allocation3 + $0x18] sm:$0xff]   ;;  %v82_v33 = vld [vmem:[%s1896_s1 + $0x150] sm:$0xf]  ;;  %v88_v38 = vld [vmem:[%s1896_s1 + $0x174] sm:$0xf] }
  0x14   :  { %v1536_v32 = vld [vmem:[#allocation3 + $0x60] sm:$0xff]   ;;  %v84_v34 = vld [vmem:[%s1896_s1 + $0x15c] sm:$0xf]  ;;  %v50_v35 = vld [vmem:[%s1896_s1 + $0x90] sm:$0xf] }
  0x15   :  { %83 = vst [vmem:[#allocation3 + $0x70] sm:$0xf] %v82_v33  ;;  %85 = vst [vmem:[#allocation3 + $0x74] sm:$0xf] %v84_v34  ;;  %v52_v36 = vld [vmem:[%s1896_s1 + $0x9c] sm:$0xf] }
  0x16   :  { %1403 = vmatpush3.bf16.msra.mxu0 %v1531_v27  ;;  %1521 = vmatpush3.bf16.msra.mxu1 %v1531_v27  ;;  %51 = vst [vmem:[#allocation3 + $0x30] sm:$0xf] %v50_v35  ;;  %53 = vst [vmem:[#allocation3 + $0x34] sm:$0xf] %v52_v36  ;;  %v54_v39 = vld [vmem:[%s1896_s1 + $0xa8] sm:$0xf] }
  0x17   :  { %1404 = vmatprep.subr.bf16.mxu0 %v1532_v28  ;;  %1514 = vmatprep.subr.bf16.mxu1 %v1532_v28  ;;  %87 = vst [vmem:[#allocation3 + $0x78] sm:$0xf] %v86_v37  ;;  %89 = vst [vmem:[#allocation3 + $0x7c] sm:$0xf] %v88_v38  ;;  %v56_v40 = vld [vmem:[%s1896_s1 + $0xb4] sm:$0xf] }
  0x18   :  { %v1537_v41 = vld [vmem:[#allocation3 + $0x20] sm:$0xff]   ;;  %55 = vst [vmem:[#allocation3 + $0x38] sm:$0xf] %v54_v39  ;;  %57 = vst [vmem:[#allocation3 + $0x3c] sm:$0xf] %v56_v40  ;;  %v1538_v43 = vld [vmem:[#allocation3 + $0x68] sm:$0xff]  }
  0x19   :  { %v1546_v42 = vld [vmem:[%s1895_s0 + $0x4] ss:$8 sps:$4 sm:$0xff]   ;;  %v1544_v50 = vld [vmem:[%s1895_s0] ss:$8 sps:$4 sm:$0xff]   ;;  %v1550_v52 = vld [vmem:[%s1895_s0 + $0x14] ss:$8 sps:$4 sm:$0xff]  }
  0x1a   :  { %1405 = vmatpush3.bf16.msra.mxu0 %v1533_v29  ;;  %1522 = vmatpush3.bf16.msra.mxu1 %v1533_v29  ;;  %v1549_v44 = vld [vmem:[%s1895_s0 + $0x84] ss:$8 sps:$4 sm:$0xff]   ;;  %v1547_v51 = vld [vmem:[%s1895_s0 + $0x80] ss:$8 sps:$4 sm:$0xff]   ;;  %v1552_v53 = vld [vmem:[%s1895_s0 + $0x94] ss:$8 sps:$4 sm:$0xff]  }
  0x1b   :  { %1406 = vmatprep.subr.bf16.mxu0 %v1534_v30  ;;  %1515 = vmatprep.subr.bf16.mxu1 %v1534_v30  ;;  %v1539_v45 = vld [vmem:[#allocation3 + $0x28] sm:$0xff]   ;;  %v1554_v54 = vld [vmem:[%s1895_s0 + $0x10] ss:$8 sps:$4 sm:$0xff]   ;;  %v1562_v60 = vld [vmem:[%s1895_s0 + $0x34] ss:$8 sps:$4 sm:$0xff]  }
  0x1c   :  { %597 = vmatprep.mubr.bf16.mxu0 %v1546_v42  ;;  %v1540_v46 = vld [vmem:[#allocation3 + $0x70] sm:$0xff]   ;;  %661 = vmatprep.mubr.bf16.mxu1 %v1549_v44  ;;  %v1556_v56 = vld [vmem:[%s1895_s0 + $0x24] ss:$8 sps:$4 sm:$0xff]   ;;  %v1560_v58 = vld [vmem:[%s1895_s0 + $0x20] ss:$8 sps:$4 sm:$0xff]  }
  0x1d   :  { %v1541_v47 = vld [vmem:[#allocation3 + $0x30] sm:$0xff]   ;;  %v1558_v57 = vld [vmem:[%s1895_s0 + $0xa4] ss:$8 sps:$4 sm:$0xff]   ;;  %v1561_v59 = vld [vmem:[%s1895_s0 + $0xa0] ss:$8 sps:$4 sm:$0xff]  }
  0x1e   :  { %1407 = vmatpush3.bf16.msra.mxu0 %v1535_v31  ;;  %1523 = vmatpush3.bf16.msra.mxu1 %v1535_v31  ;;  %v1542_v48 = vld [vmem:[#allocation3 + $0x78] sm:$0xff]   ;;  %v1568_v0 = vld [vmem:[%s1895_s0 + $0x44] ss:$8 sps:$4 sm:$0xff]   ;;  %v1572_v2 = vld [vmem:[%s1895_s0 + $0x40] ss:$8 sps:$4 sm:$0xff]  }
  0x1f   :  { %1408 = vmatprep.subr.bf16.mxu0 %v1536_v32  ;;  %1516 = vmatprep.subr.bf16.mxu1 %v1536_v32  ;;  %v1543_v49 = vld [vmem:[#allocation3 + $0x38] sm:$0xff]   ;;  %v1570_v1 = vld [vmem:[%s1895_s0 + $0xc4] ss:$8 sps:$4 sm:$0xff]   ;;  %v1573_v3 = vld [vmem:[%s1895_s0 + $0xc0] ss:$8 sps:$4 sm:$0xff]  }
  0x20   :  { %v1555_v55 = vld [vmem:[%s1895_s0 + $0x90] ss:$8 sps:$4 sm:$0xff]   ;;  %v1564_v61 = vld [vmem:[%s1895_s0 + $0xb4] ss:$8 sps:$4 sm:$0xff]   ;;  %v1580_v8 = vld [vmem:[%s1895_s0 + $0x64] ss:$8 sps:$4 sm:$0xff]  }
  0x21   :  { %v1566_v62 = vld [vmem:[%s1895_s0 + $0x30] ss:$8 sps:$4 sm:$0xff]   ;;  %v1574_v4 = vld [vmem:[%s1895_s0 + $0x54] ss:$8 sps:$4 sm:$0xff]   ;;  %v1582_v9 = vld [vmem:[%s1895_s0 + $0xe4] ss:$8 sps:$4 sm:$0xff]  }
  0x22   :  { %1409 = vmatpush3.bf16.msra.mxu0 %v1537_v41  ;;  %1524 = vmatpush3.bf16.msra.mxu1 %v1537_v41  ;;  %v1567_v63 = vld [vmem:[%s1895_s0 + $0xb0] ss:$8 sps:$4 sm:$0xff]   ;;  %v1576_v5 = vld [vmem:[%s1895_s0 + $0xd4] ss:$8 sps:$4 sm:$0xff]   ;;  %v1584_v10 = vld [vmem:[%s1895_s0 + $0x60] ss:$8 sps:$4 sm:$0xff]  }
  0x23   :  { %1410 = vmatprep.subr.bf16.mxu0 %v1538_v43  ;;  %1517 = vmatprep.subr.bf16.mxu1 %v1538_v43  ;;  %v1578_v6 = vld [vmem:[%s1895_s0 + $0x50] ss:$8 sps:$4 sm:$0xff]   ;;  %v1585_v11 = vld [vmem:[%s1895_s0 + $0xe0] ss:$8 sps:$4 sm:$0xff]   ;;  %v1586_v12 = vld [vmem:[%s1895_s0 + $0x74] ss:$8 sps:$4 sm:$0xff]  }
  0x24   :  { %v1579_v7 = vld [vmem:[%s1895_s0 + $0xd0] ss:$8 sps:$4 sm:$0xff]   ;;  %v1588_v13 = vld [vmem:[%s1895_s0 + $0xf4] ss:$8 sps:$4 sm:$0xff]  }
  0x25   :  { %v1590_v14 = vld [vmem:[%s1895_s0 + $0x70] ss:$8 sps:$4 sm:$0xff]  }
  0x26   :  { %1411 = vmatpush3.bf16.msra.mxu0 %v1539_v45  ;;  %1525 = vmatpush3.bf16.msra.mxu1 %v1539_v45  ;;  %v1591_v15 = vld [vmem:[%s1895_s0 + $0xf0] ss:$8 sps:$4 sm:$0xff]  }
  0x27   :  { %1412 = vmatprep.subr.bf16.mxu0 %v1540_v46  ;;  %1518 = vmatprep.subr.bf16.mxu1 %v1540_v46 }
  0x2a   :  { %1413 = vmatpush3.bf16.msra.mxu0 %v1541_v47  ;;  %1526 = vmatpush3.bf16.msra.mxu1 %v1541_v47 }
  0x2b   :  { %1414 = vmatprep.subr.bf16.mxu0 %v1542_v48  ;;  %1519 = vmatprep.subr.bf16.mxu1 %v1542_v48 }
  0x2e   :  { %1415 = vmatpush3.bf16.msra.mxu0 %v1543_v49  ;;  %1527 = vmatpush3.bf16.msra.mxu1 %v1543_v49 }
  0x31   :  { %598 = vmatmul.mubr.bf16.vlgmr.msra.gmra.mrb[0].mxu0 %v1544_v50  ;;  %662 = vmatmul.mubr.bf16.vlgmr.msra.gmra.mrb[0].mxu1 %v1547_v51 }
  0x32   :  { %605 = vmatprep.mubr.bf16.mxu0 %v1550_v52  ;;  %669 = vmatprep.mubr.bf16.mxu1 %v1552_v53 }
  0x39   :  { %606 = vmatmul.mubr.bf16.gmra.mrb[4].mxu0 %v1554_v54  ;;  %670 = vmatmul.mubr.bf16.gmra.mrb[4].mxu1 %v1555_v55 }
  0x3a   :  { %613 = vmatprep.mubr.bf16.mxu0 %v1556_v56  ;;  %677 = vmatprep.mubr.bf16.mxu1 %v1558_v57 }
  0x41   :  { %614 = vmatmul.mubr.bf16.gmra.mrb[8].mxu0 %v1560_v58  ;;  %678 = vmatmul.mubr.bf16.gmra.mrb[8].mxu1 %v1561_v59 }
  0x42   :  { %621 = vmatprep.mubr.bf16.mxu0 %v1562_v60  ;;  %685 = vmatprep.mubr.bf16.mxu1 %v1564_v61 }
  0x49   :  { %622 = vmatmul.mubr.bf16.gmra.mrb[12].mxu0 %v1566_v62  ;;  %686 = vmatmul.mubr.bf16.gmra.mrb[12].mxu1 %v1567_v63 }
  0x4a   :  { %629 = vmatprep.mubr.bf16.mxu0 %v1568_v0  ;;  %693 = vmatprep.mubr.bf16.mxu1 %v1570_v1 }
  0x51   :  { %630 = vmatmul.mubr.bf16.gmra.mrb[16].mxu0 %v1572_v2  ;;  %694 = vmatmul.mubr.bf16.gmra.mrb[16].mxu1 %v1573_v3 }
  0x52   :  { %637 = vmatprep.mubr.bf16.mxu0 %v1574_v4  ;;  %701 = vmatprep.mubr.bf16.mxu1 %v1576_v5 }
  0x59   :  { %638 = vmatmul.mubr.bf16.gmra.mrb[20].mxu0 %v1578_v6  ;;  %702 = vmatmul.mubr.bf16.gmra.mrb[20].mxu1 %v1579_v7 }
  0x5a   :  { %645 = vmatprep.mubr.bf16.mxu0 %v1580_v8  ;;  %709 = vmatprep.mubr.bf16.mxu1 %v1582_v9 }
  0x61   :  { %646 = vmatmul.mubr.bf16.gmra.mrb[24].mxu0 %v1584_v10  ;;  %710 = vmatmul.mubr.bf16.gmra.mrb[24].mxu1 %v1585_v11 }
  0x62   :  { %653 = vmatprep.mubr.bf16.mxu0 %v1586_v12  ;;  %717 = vmatprep.mubr.bf16.mxu1 %v1588_v13 }
  0x69   :  { %654 = vmatmul.mubr.bf16.gmra.mrb[28].mxu0 %v1590_v14  ;;  %718 = vmatmul.mubr.bf16.gmra.mrb[28].mxu1 %v1591_v15 }
 0x104   :  { %v1416_v16 = vpop.f32.mrb[0].mxu0  ;;  %v1464_v17 = vpop.f32.mrb[0].mxu1 }
 0x105   :  { %v1417_v18 = vpop.f32.mrb[1].mxu0  ;;  %v1465_v19 = vpop.f32.mrb[1].mxu1 }
 0x106   :  { %v1418_v20 = vadd.f32 %v1417_v18, %v1416_v16  ;;  %v1466_v21 = vadd.f32 %v1465_v19, %v1464_v17  ;;  %v1419_v22 = vpop.f32.mrb[2].mxu0  ;;  %v1467_v23 = vpop.f32.mrb[2].mxu1 }
 0x107   :  { %v1420_v24 = vpop.f32.mrb[3].mxu0  ;;  %v1468_v25 = vpop.f32.mrb[3].mxu1 }
 0x108   :  { %v1421_v26 = vadd.f32 %v1420_v24, %v1419_v22  ;;  %v1469_v27 = vadd.f32 %v1468_v25, %v1467_v23 }
 0x10a   :  { %v1308_v28 = vpack.c.bf16 %v1421_v26, %v1418_v20  ;;  %v1348_v29 = vpack.c.bf16 %v1469_v27, %v1466_v21 }
 0x10c   :  { %1309 = vst [vmem:[#allocation4] sm:$0xff] %v1308_v28   ;;  %1392 = vst [vmem:[#allocation4 + $0x40] sm:$0xff] %v1348_v29   ;;  %v1422_v30 = vpop.f32.mrb[4].mxu0  ;;  %v1470_v31 = vpop.f32.mrb[4].mxu1 }
 0x10d   :  { %v1423_v32 = vpop.f32.mrb[5].mxu0  ;;  %v1471_v33 = vpop.f32.mrb[5].mxu1 }
 0x10e   :  { %v1424_v34 = vadd.f32 %v1423_v32, %v1422_v30  ;;  %v1472_v35 = vadd.f32 %v1471_v33, %v1470_v31  ;;  %v1425_v36 = vpop.f32.mrb[6].mxu0  ;;  %v1473_v37 = vpop.f32.mrb[6].mxu1 }
 0x10f   :  { %v1426_v38 = vpop.f32.mrb[7].mxu0  ;;  %v1474_v39 = vpop.f32.mrb[7].mxu1 }
 0x110   :  { %v1427_v40 = vadd.f32 %v1426_v38, %v1425_v36  ;;  %v1475_v41 = vadd.f32 %v1474_v39, %v1473_v37 }
 0x112   :  { %v1313_v42 = vpack.c.bf16 %v1427_v40, %v1424_v34  ;;  %v1353_v43 = vpack.c.bf16 %v1475_v41, %v1472_v35 }
 0x113   :  { %v1003_v44 = vld [vmem:[#allocation4] sm:$0xf]  ;;  %v1005_v45 = vld [vmem:[#allocation4 + $0x4] sm:$0xf] }
 0x114   :  { %v1035_v46 = vld [vmem:[#allocation4 + $0x40] sm:$0xf]  ;;  %1241 = vst [vmem:[%s1897_s2 + $0x4] sm:$0xf] %v1003_v44  ;;  %1242 = vst [vmem:[%s1897_s2 + $0x10] sm:$0xf] %v1005_v45 }
 0x115   :  { %1257 = vst [vmem:[%s1897_s2 + $0xc4] sm:$0xf] %v1035_v46  ;;  %v1037_v47 = vld [vmem:[#allocation4 + $0x44] sm:$0xf]  ;;  %1385 = vst [vmem:[#allocation4 + $0x8] sm:$0xff] %v1313_v42   ;;  %v1428_v48 = vpop.f32.mrb[8].mxu0 }
 0x116   :  { %1393 = vst [vmem:[#allocation4 + $0x48] sm:$0xff] %v1353_v43   ;;  %v1476_v49 = vpop.f32.mrb[8].mxu1  ;;  %1258 = vst [vmem:[%s1897_s2 + $0xd0] sm:$0xf] %v1037_v47  ;;  %v1429_v50 = vpop.f32.mrb[9].mxu0 }
 0x117   :  { %v1477_v51 = vpop.f32.mrb[9].mxu1  ;;  %v1430_v52 = vadd.f32 %v1429_v50, %v1428_v48  ;;  %v1431_v54 = vpop.f32.mrb[10].mxu0 }
 0x118   :  { %v1478_v53 = vadd.f32 %v1477_v51, %v1476_v49  ;;  %v1479_v55 = vpop.f32.mrb[10].mxu1  ;;  %v1432_v56 = vpop.f32.mrb[11].mxu0 }
 0x119   :  { %v1480_v57 = vpop.f32.mrb[11].mxu1  ;;  %v1433_v58 = vadd.f32 %v1432_v56, %v1431_v54 }
 0x11a   :  { %v1481_v59 = vadd.f32 %v1480_v57, %v1479_v55 }
 0x11b   :  { %v1318_v60 = vpack.c.bf16 %v1433_v58, %v1430_v52 }
 0x11c   :  { %v1358_v61 = vpack.c.bf16 %v1481_v59, %v1478_v53  ;;  %v1007_v62 = vld [vmem:[#allocation4 + $0x8] sm:$0xf]  ;;  %v1009_v63 = vld [vmem:[#allocation4 + $0xc] sm:$0xf]  ;;  %v1434_v2 = vpop.f32.mrb[12].mxu0  ;;  %v1482_v3 = vpop.f32.mrb[12].mxu1 }
 0x11d   :  { %v1039_v0 = vld [vmem:[#allocation4 + $0x48] sm:$0xf]  ;;  %1243 = vst [vmem:[%s1897_s2 + $0x1c] sm:$0xf] %v1007_v62  ;;  %1244 = vst [vmem:[%s1897_s2 + $0x28] sm:$0xf] %v1009_v63 }
 0x11e   :  { %1259 = vst [vmem:[%s1897_s2 + $0xdc] sm:$0xf] %v1039_v0  ;;  %v1041_v1 = vld [vmem:[#allocation4 + $0x4c] sm:$0xf]  ;;  %1386 = vst [vmem:[#allocation4 + $0x10] sm:$0xff] %v1318_v60   ;;  %v1435_v4 = vpop.f32.mrb[13].mxu0 }
 0x11f   :  { %1394 = vst [vmem:[#allocation4 + $0x50] sm:$0xff] %v1358_v61   ;;  %1260 = vst [vmem:[%s1897_s2 + $0xe8] sm:$0xf] %v1041_v1  ;;  %v1483_v5 = vpop.f32.mrb[13].mxu1  ;;  %v1436_v6 = vadd.f32 %v1435_v4, %v1434_v2  ;;  %v1437_v8 = vpop.f32.mrb[14].mxu0 }
 0x120   :  { %v1484_v7 = vadd.f32 %v1483_v5, %v1482_v3  ;;  %v1485_v9 = vpop.f32.mrb[14].mxu1  ;;  %v1438_v10 = vpop.f32.mrb[15].mxu0 }
 0x121   :  { %v1486_v11 = vpop.f32.mrb[15].mxu1  ;;  %v1439_v12 = vadd.f32 %v1438_v10, %v1437_v8 }
 0x122   :  { %v1487_v13 = vadd.f32 %v1486_v11, %v1485_v9 }
 0x123   :  { %v1323_v14 = vpack.c.bf16 %v1439_v12, %v1436_v6 }
 0x124   :  { %v1363_v15 = vpack.c.bf16 %v1487_v13, %v1484_v7  ;;  %v1440_v20 = vpop.f32.mrb[16].mxu0  ;;  %v1488_v21 = vpop.f32.mrb[16].mxu1 }
 0x125   :  { %v1011_v16 = vld [vmem:[#allocation4 + $0x10] sm:$0xf]  ;;  %v1013_v17 = vld [vmem:[#allocation4 + $0x14] sm:$0xf]  ;;  %1387 = vst [vmem:[#allocation4 + $0x18] sm:$0xff] %v1323_v14   ;;  %v1441_v22 = vpop.f32.mrb[17].mxu0 }
 0x126   :  { %v1043_v18 = vld [vmem:[#allocation4 + $0x50] sm:$0xf]  ;;  %1245 = vst [vmem:[%s1897_s2 + $0x34] sm:$0xf] %v1011_v16  ;;  %1246 = vst [vmem:[%s1897_s2 + $0x40] sm:$0xf] %v1013_v17  ;;  %v1442_v24 = vadd.f32 %v1441_v22, %v1440_v20 }
 0x127   :  { %1261 = vst [vmem:[%s1897_s2 + $0xf4] sm:$0xf] %v1043_v18  ;;  %v1045_v19 = vld [vmem:[#allocation4 + $0x54] sm:$0xf]  ;;  %1395 = vst [vmem:[#allocation4 + $0x58] sm:$0xff] %v1363_v15   ;;  %v1489_v23 = vpop.f32.mrb[17].mxu1 }
 0x128   :  { %1262 = vst [vmem:[%s1897_s2 + $0x100] sm:$0xf] %v1045_v19  ;;  %v1490_v25 = vadd.f32 %v1489_v23, %v1488_v21  ;;  %v1443_v26 = vpop.f32.mrb[18].mxu0  ;;  %v1491_v27 = vpop.f32.mrb[18].mxu1 }
 0x129   :  { %v1444_v28 = vpop.f32.mrb[19].mxu0  ;;  %v1492_v29 = vpop.f32.mrb[19].mxu1 }
 0x12a   :  { %v1445_v30 = vadd.f32 %v1444_v28, %v1443_v26  ;;  %v1493_v31 = vadd.f32 %v1492_v29, %v1491_v27 }
 0x12c   :  { %v1328_v32 = vpack.c.bf16 %v1445_v30, %v1442_v24  ;;  %v1368_v33 = vpack.c.bf16 %v1493_v31, %v1490_v25  ;;  %v1015_v34 = vld [vmem:[#allocation4 + $0x18] sm:$0xf]  ;;  %v1017_v35 = vld [vmem:[#allocation4 + $0x1c] sm:$0xf]  ;;  %v1446_v38 = vpop.f32.mrb[20].mxu0  ;;  %v1494_v39 = vpop.f32.mrb[20].mxu1 }
 0x12d   :  { %1247 = vst [vmem:[%s1897_s2 + $0x4c] sm:$0xf] %v1015_v34  ;;  %1248 = vst [vmem:[%s1897_s2 + $0x58] sm:$0xf] %v1017_v35  ;;  %v1447_v40 = vpop.f32.mrb[21].mxu0  ;;  %v1495_v41 = vpop.f32.mrb[21].mxu1 }
 0x12e   :  { %v1047_v36 = vld [vmem:[#allocation4 + $0x58] sm:$0xf]  ;;  %v1049_v37 = vld [vmem:[#allocation4 + $0x5c] sm:$0xf]  ;;  %1388 = vst [vmem:[#allocation4 + $0x20] sm:$0xff] %v1328_v32   ;;  %1396 = vst [vmem:[#allocation4 + $0x60] sm:$0xff] %v1368_v33   ;;  %v1448_v42 = vadd.f32 %v1447_v40, %v1446_v38  ;;  %v1496_v43 = vadd.f32 %v1495_v41, %v1494_v39 }
 0x12f   :  { %1263 = vst [vmem:[%s1897_s2 + $0x10c] sm:$0xf] %v1047_v36  ;;  %1264 = vst [vmem:[%s1897_s2 + $0x118] sm:$0xf] %v1049_v37  ;;  %v1449_v44 = vpop.f32.mrb[22].mxu0  ;;  %v1497_v45 = vpop.f32.mrb[22].mxu1 }
 0x130   :  { %v1450_v46 = vpop.f32.mrb[23].mxu0  ;;  %v1498_v47 = vpop.f32.mrb[23].mxu1 }
 0x131   :  { %v1451_v48 = vadd.f32 %v1450_v46, %v1449_v44  ;;  %v1499_v49 = vadd.f32 %v1498_v47, %v1497_v45 }
 0x133   :  { %v1333_v50 = vpack.c.bf16 %v1451_v48, %v1448_v42  ;;  %v1373_v51 = vpack.c.bf16 %v1499_v49, %v1496_v43 }
 0x134   :  { %v1452_v56 = vpop.f32.mrb[24].mxu0  ;;  %v1500_v57 = vpop.f32.mrb[24].mxu1 }
 0x135   :  { %v1019_v52 = vld [vmem:[#allocation4 + $0x20] sm:$0xf]  ;;  %v1021_v53 = vld [vmem:[#allocation4 + $0x24] sm:$0xf]  ;;  %1389 = vst [vmem:[#allocation4 + $0x28] sm:$0xff] %v1333_v50   ;;  %1397 = vst [vmem:[#allocation4 + $0x68] sm:$0xff] %v1373_v51  }
 0x136   :  { %v1051_v54 = vld [vmem:[#allocation4 + $0x60] sm:$0xf]  ;;  %1249 = vst [vmem:[%s1897_s2 + $0x64] sm:$0xf] %v1019_v52  ;;  %1250 = vst [vmem:[%s1897_s2 + $0x70] sm:$0xf] %v1021_v53 }
 0x137   :  { %1265 = vst [vmem:[%s1897_s2 + $0x124] sm:$0xf] %v1051_v54  ;;  %v1053_v55 = vld [vmem:[#allocation4 + $0x64] sm:$0xf]  ;;  %v1453_v58 = vpop.f32.mrb[25].mxu0  ;;  %v1501_v59 = vpop.f32.mrb[25].mxu1 }
 0x138   :  { %1266 = vst [vmem:[%s1897_s2 + $0x130] sm:$0xf] %v1053_v55  ;;  %v1454_v60 = vadd.f32 %v1453_v58, %v1452_v56  ;;  %v1502_v61 = vadd.f32 %v1501_v59, %v1500_v57  ;;  %v1455_v62 = vpop.f32.mrb[26].mxu0  ;;  %v1503_v63 = vpop.f32.mrb[26].mxu1 }
 0x139   :  { %v1456_v0 = vpop.f32.mrb[27].mxu0  ;;  %v1504_v1 = vpop.f32.mrb[27].mxu1 }
 0x13a   :  { %v1457_v2 = vadd.f32 %v1456_v0, %v1455_v62  ;;  %v1505_v3 = vadd.f32 %v1504_v1, %v1503_v63 }
 0x13c   :  { %v1338_v4 = vpack.c.bf16 %v1457_v2, %v1454_v60  ;;  %v1378_v5 = vpack.c.bf16 %v1505_v3, %v1502_v61  ;;  %v1023_v6 = vld [vmem:[#allocation4 + $0x28] sm:$0xf]  ;;  %v1025_v7 = vld [vmem:[#allocation4 + $0x2c] sm:$0xf]  ;;  %v1458_v10 = vpop.f32.mrb[28].mxu0  ;;  %v1506_v11 = vpop.f32.mrb[28].mxu1 }
 0x13d   :  { %v1055_v8 = vld [vmem:[#allocation4 + $0x68] sm:$0xf]  ;;  %1251 = vst [vmem:[%s1897_s2 + $0x7c] sm:$0xf] %v1023_v6  ;;  %1252 = vst [vmem:[%s1897_s2 + $0x88] sm:$0xf] %v1025_v7 }
 0x13e   :  { %1267 = vst [vmem:[%s1897_s2 + $0x13c] sm:$0xf] %v1055_v8  ;;  %v1057_v9 = vld [vmem:[#allocation4 + $0x6c] sm:$0xf]  ;;  %1390 = vst [vmem:[#allocation4 + $0x30] sm:$0xff] %v1338_v4   ;;  %v1459_v12 = vpop.f32.mrb[29].mxu0 }
 0x13f   :  { %1398 = vst [vmem:[#allocation4 + $0x70] sm:$0xff] %v1378_v5   ;;  %1268 = vst [vmem:[%s1897_s2 + $0x148] sm:$0xf] %v1057_v9  ;;  %v1507_v13 = vpop.f32.mrb[29].mxu1  ;;  %v1460_v14 = vadd.f32 %v1459_v12, %v1458_v10  ;;  %v1461_v16 = vpop.f32.mrb[30].mxu0 }
 0x140   :  { %v1508_v15 = vadd.f32 %v1507_v13, %v1506_v11  ;;  %v1509_v17 = vpop.f32.mrb[30].mxu1  ;;  %v1462_v18 = vpop.f32.mrb[31].mxu0 }
 0x141   :  { %v1510_v19 = vpop.f32.mrb[31].mxu1  ;;  %v1463_v20 = vadd.f32 %v1462_v18, %v1461_v16 }
 0x142   :  { %v1511_v21 = vadd.f32 %v1510_v19, %v1509_v17 }
 0x143   :  { %v1343_v22 = vpack.c.bf16 %v1463_v20, %v1460_v14 }
 0x144   :  { %v1383_v23 = vpack.c.bf16 %v1511_v21, %v1508_v15 }
 0x145   :  { %v1027_v24 = vld [vmem:[#allocation4 + $0x30] sm:$0xf]  ;;  %v1029_v25 = vld [vmem:[#allocation4 + $0x34] sm:$0xf]  ;;  %1391 = vst [vmem:[#allocation4 + $0x38] sm:$0xff] %v1343_v22  }
 0x146   :  { %v1059_v26 = vld [vmem:[#allocation4 + $0x70] sm:$0xf]  ;;  %1253 = vst [vmem:[%s1897_s2 + $0x94] sm:$0xf] %v1027_v24  ;;  %1254 = vst [vmem:[%s1897_s2 + $0xa0] sm:$0xf] %v1029_v25 }
 0x147   :  { %1269 = vst [vmem:[%s1897_s2 + $0x154] sm:$0xf] %v1059_v26  ;;  %v1061_v27 = vld [vmem:[#allocation4 + $0x74] sm:$0xf]  ;;  %1399 = vst [vmem:[#allocation4 + $0x78] sm:$0xff] %v1383_v23  }
 0x148   :  { %1270 = vst [vmem:[%s1897_s2 + $0x160] sm:$0xf] %v1061_v27 }
 0x14c   :  { %v1031_v28 = vld [vmem:[#allocation4 + $0x38] sm:$0xf]  ;;  %v1033_v29 = vld [vmem:[#allocation4 + $0x3c] sm:$0xf] }
 0x14d   :  { %1255 = vst [vmem:[%s1897_s2 + $0xac] sm:$0xf] %v1031_v28  ;;  %1256 = vst [vmem:[%s1897_s2 + $0xb8] sm:$0xf] %v1033_v29 }
 0x14e   :  { %v1063_v30 = vld [vmem:[#allocation4 + $0x78] sm:$0xf]  ;;  %v1065_v31 = vld [vmem:[#allocation4 + $0x7c] sm:$0xf] }
 0x14f   :  { %1271 = vst [vmem:[%s1897_s2 + $0x16c] sm:$0xf] %v1063_v30  ;;  %1272 = vst [vmem:[%s1897_s2 + $0x178] sm:$0xf] %v1065_v31 }

// kernel: tag_linear_forward.8
= control target key start
LH: loop header
LB: loop body
LE: loop exit
PB: predicated region body
PF: predicated region fallthrough
CT: control target
= control target key end

     0   :  { %s4162_s0 = inlined_call_operand.vmem [shape: bf16[256,256], index: 0, kind: input, shape index: {}]   ;;  %s4163_s1 = inlined_call_operand.vmem [shape: bf16[256,384], index: 1, kind: input, shape index: {}, may-alias: {1,2}]   ;;  %s4164_s2 = inlined_call_operand.vmem [shape: bf16[256,384], index: 2, kind: input, shape index: {}, may-alias: {1,2}]   ;;  %s4165_s3 = inlined_call_operand.vmem [shape: bf16[384,128], index: 3, kind: input, shape index: {}]   ;;  %s4166_s4 = inlined_call_operand.vmem [shape: bf16[128,128], index: 4, kind: input, shape index: {}]   ;;  %s4167_s5 = inlined_call_operand.vmem [shape: f32[1,128], index: 5, kind: input, shape index: {}]   ;;  %s4168_s6 = inlined_call_operand.vmem [shape: bf16[256,128], index: 6, kind: output, shape index: {}]  }
   0x1   :  { %v2328_v0 = vld [vmem:[%s4164_s2 + $0xc8] sm:$0xf]  ;;  %v2329_v1 = vld [vmem:[%s4164_s2 + $0xd4] sm:$0xf]  ;;  %v2330_v4 = vld [vmem:[%s4164_s2 + $0xe0] sm:$0xf] }
   0x2   :  { %v2312_v2 = vld [vmem:[%s4164_s2 + $0x8] sm:$0xf]  ;;  %66 = vst [vmem:[#allocation3 + $0x40] sm:$0xf] %v2328_v0  ;;  %68 = vst [vmem:[#allocation3 + $0x44] sm:$0xf] %v2329_v1 }
   0x3   :  { %34 = vst [vmem:[#allocation3] sm:$0xf] %v2312_v2  ;;  %v2313_v3 = vld [vmem:[%s4164_s2 + $0x14] sm:$0xf]  ;;  %v2331_v5 = vld [vmem:[%s4164_s2 + $0xec] sm:$0xf] }
   0x4   :  { %36 = vst [vmem:[#allocation3 + $0x4] sm:$0xf] %v2313_v3  ;;  %70 = vst [vmem:[#allocation3 + $0x48] sm:$0xf] %v2330_v4  ;;  %v2314_v6 = vld [vmem:[%s4164_s2 + $0x20] sm:$0xf] }
   0x5   :  { %72 = vst [vmem:[#allocation3 + $0x4c] sm:$0xf] %v2331_v5  ;;  %v2315_v7 = vld [vmem:[%s4164_s2 + $0x2c] sm:$0xf]  ;;  %v2332_v8 = vld [vmem:[%s4164_s2 + $0xf8] sm:$0xf] }
   0x6   :  { %38 = vst [vmem:[#allocation3 + $0x8] sm:$0xf] %v2314_v6  ;;  %40 = vst [vmem:[#allocation3 + $0xc] sm:$0xf] %v2315_v7  ;;  %v2333_v9 = vld [vmem:[%s4164_s2 + $0x104] sm:$0xf] }
   0x7   :  { %74 = vst [vmem:[#allocation3 + $0x50] sm:$0xf] %v2332_v8  ;;  %v2316_v10 = vld [vmem:[%s4164_s2 + $0x38] sm:$0xf]  ;;  %v2317_v11 = vld [vmem:[%s4164_s2 + $0x44] sm:$0xf] }
   0x8   :  { %76 = vst [vmem:[#allocation3 + $0x54] sm:$0xf] %v2333_v9  ;;  %42 = vst [vmem:[#allocation3 + $0x10] sm:$0xf] %v2316_v10  ;;  %v2334_v12 = vld [vmem:[%s4164_s2 + $0x110] sm:$0xf] }
   0x9   :  { %44 = vst [vmem:[#allocation3 + $0x14] sm:$0xf] %v2317_v11  ;;  %v2335_v13 = vld [vmem:[%s4164_s2 + $0x11c] sm:$0xf]  ;;  %v2318_v14 = vld [vmem:[%s4164_s2 + $0x50] sm:$0xf] }
   0xa   :  { %78 = vst [vmem:[#allocation3 + $0x58] sm:$0xf] %v2334_v12  ;;  %80 = vst [vmem:[#allocation3 + $0x5c] sm:$0xf] %v2335_v13  ;;  %v2319_v15 = vld [vmem:[%s4164_s2 + $0x5c] sm:$0xf] }
   0xb   :  { %46 = vst [vmem:[#allocation3 + $0x18] sm:$0xf] %v2318_v14  ;;  %v2336_v16 = vld [vmem:[%s4164_s2 + $0x128] sm:$0xf]  ;;  %v2337_v17 = vld [vmem:[%s4164_s2 + $0x134] sm:$0xf] }
   0xc   :  { %48 = vst [vmem:[#allocation3 + $0x1c] sm:$0xf] %v2319_v15  ;;  %82 = vst [vmem:[#allocation3 + $0x60] sm:$0xf] %v2336_v16  ;;  %v2320_v18 = vld [vmem:[%s4164_s2 + $0x68] sm:$0xf] }
   0xd   :  { %84 = vst [vmem:[#allocation3 + $0x64] sm:$0xf] %v2337_v17  ;;  %v2321_v19 = vld [vmem:[%s4164_s2 + $0x74] sm:$0xf]  ;;  %v2338_v20 = vld [vmem:[%s4164_s2 + $0x140] sm:$0xf] }
   0xe   :  { %50 = vst [vmem:[#allocation3 + $0x20] sm:$0xf] %v2320_v18  ;;  %52 = vst [vmem:[#allocation3 + $0x24] sm:$0xf] %v2321_v19  ;;  %v2339_v21 = vld [vmem:[%s4164_s2 + $0x14c] sm:$0xf] }
   0xf   :  { %86 = vst [vmem:[#allocation3 + $0x68] sm:$0xf] %v2338_v20  ;;  %v2322_v22 = vld [vmem:[%s4164_s2 + $0x80] sm:$0xf]  ;;  %v2323_v23 = vld [vmem:[%s4164_s2 + $0x8c] sm:$0xf] }
  0x10   :  { %v3096_v24 = vld [vmem:[#allocation3 + $0x40] sm:$0xff]   ;;  %88 = vst [vmem:[#allocation3 + $0x6c] sm:$0xf] %v2339_v21  ;;  %54 = vst [vmem:[#allocation3 + $0x28] sm:$0xf] %v2322_v22  ;;  %v3098_v26 = vld [vmem:[#allocation3 + $0x48] sm:$0xff]  }
  0x11   :  { %56 = vst [vmem:[#allocation3 + $0x2c] sm:$0xf] %v2323_v23  ;;  %v3097_v25 = vld [vmem:[#allocation3] sm:$0xff]   ;;  %2664 = vmatprep.subr.bf16.mxu0 %v3096_v24  ;;  %v3099_v27 = vld [vmem:[#allocation3 + $0x8] sm:$0xff]   ;;  %v3100_v28 = vld [vmem:[#allocation3 + $0x50] sm:$0xff]  }
  0x12   :  { %2665 = vmatpush3.bf16.msra.mxu0 %v3097_v25  ;;  %v3101_v29 = vld [vmem:[#allocation3 + $0x10] sm:$0xff]   ;;  %v3102_v30 = vld [vmem:[#allocation3 + $0x58] sm:$0xff]   ;;  %v2341_v34 = vld [vmem:[%s4164_s2 + $0x164] sm:$0xf] }
  0x13   :  { %2666 = vmatprep.subr.bf16.mxu0 %v3098_v26  ;;  %v3103_v31 = vld [vmem:[#allocation3 + $0x18] sm:$0xff]   ;;  %92 = vst [vmem:[#allocation3 + $0x74] sm:$0xf] %v2341_v34  ;;  %v2325_v36 = vld [vmem:[%s4164_s2 + $0xa4] sm:$0xf]  ;;  %v3144_v53 = vld [vmem:[%s4165_s3 + $0x48] sm:$0xff]  }
  0x14   :  { %v3104_v32 = vld [vmem:[#allocation3 + $0x60] sm:$0xff]   ;;  %v2340_v33 = vld [vmem:[%s4164_s2 + $0x158] sm:$0xf]  ;;  %v2342_v37 = vld [vmem:[%s4164_s2 + $0x170] sm:$0xf] }
  0x15   :  { %v2324_v35 = vld [vmem:[%s4164_s2 + $0x98] sm:$0xf]  ;;  %90 = vst [vmem:[#allocation3 + $0x70] sm:$0xf] %v2340_v33  ;;  %v2343_v38 = vld [vmem:[%s4164_s2 + $0x17c] sm:$0xf] }
  0x16   :  { %2667 = vmatpush3.bf16.msra.mxu0 %v3099_v27  ;;  %58 = vst [vmem:[#allocation3 + $0x30] sm:$0xf] %v2324_v35  ;;  %60 = vst [vmem:[#allocation3 + $0x34] sm:$0xf] %v2325_v36  ;;  %v2326_v39 = vld [vmem:[%s4164_s2 + $0xb0] sm:$0xf] }
  0x17   :  { %2668 = vmatprep.subr.bf16.mxu0 %v3100_v28  ;;  %94 = vst [vmem:[#allocation3 + $0x78] sm:$0xf] %v2342_v37  ;;  %96 = vst [vmem:[#allocation3 + $0x7c] sm:$0xf] %v2343_v38  ;;  %v2327_v40 = vld [vmem:[%s4164_s2 + $0xbc] sm:$0xf] }
  0x18   :  { %v3105_v41 = vld [vmem:[#allocation3 + $0x20] sm:$0xff]   ;;  %62 = vst [vmem:[#allocation3 + $0x38] sm:$0xf] %v2326_v39  ;;  %64 = vst [vmem:[#allocation3 + $0x3c] sm:$0xf] %v2327_v40  ;;  %v3106_v43 = vld [vmem:[#allocation3 + $0x68] sm:$0xff]  }
  0x19   :  { %v3114_v42 = vld [vmem:[%s4162_s0 + $0x4] ss:$8 sps:$4 sm:$0xff]   ;;  %v3112_v49 = vld [vmem:[%s4162_s0] ss:$8 sps:$4 sm:$0xff]   ;;  %v3115_v50 = vld [vmem:[%s4162_s0 + $0x14] ss:$8 sps:$4 sm:$0xff]  }
  0x1a   :  { %2669 = vmatpush3.bf16.msra.mxu0 %v3101_v29  ;;  %610 = vmatprep.mubr.bf16.mxu0 %v3114_v42  ;;  %v3107_v44 = vld [vmem:[#allocation3 + $0x28] sm:$0xff]   ;;  %v3139_v51 = vld [vmem:[%s4165_s3 + $0x40] sm:$0xff]   ;;  %v3146_v55 = vld [vmem:[%s4165_s3 + $0x50] sm:$0xff]  }
  0x1b   :  { %2670 = vmatprep.subr.bf16.mxu0 %v3102_v30  ;;  %v3140_v52 = vld [vmem:[%s4165_s3] sm:$0xff]   ;;  %2800 = vmatprep.subr.bf16.mxu1 %v3139_v51  ;;  %v3145_v54 = vld [vmem:[%s4165_s3 + $0x8] sm:$0xff]   ;;  %v3117_v56 = vld [vmem:[%s4162_s0 + $0x10] ss:$8 sps:$4 sm:$0xff]  }
  0x1c   :  { %v3108_v45 = vld [vmem:[#allocation3 + $0x70] sm:$0xff]   ;;  %2801 = vmatpush3.bf16.msra.mxu1 %v3140_v52  ;;  %v3118_v58 = vld [vmem:[%s4162_s0 + $0x24] ss:$8 sps:$4 sm:$0xff]   ;;  %v3151_v59 = vld [vmem:[%s4165_s3 + $0x58] sm:$0xff]  }
  0x1d   :  { %v3109_v46 = vld [vmem:[#allocation3 + $0x30] sm:$0xff]   ;;  %2802 = vmatprep.subr.bf16.mxu1 %v3144_v53  ;;  %v3152_v60 = vld [vmem:[%s4165_s3 + $0x18] sm:$0xff]   ;;  %v3153_v61 = vld [vmem:[%s4165_s3 + $0x60] sm:$0xff]  }
  0x1e   :  { %2671 = vmatpush3.bf16.msra.mxu0 %v3103_v31  ;;  %v3110_v47 = vld [vmem:[#allocation3 + $0x78] sm:$0xff]   ;;  %v3147_v57 = vld [vmem:[%s4165_s3 + $0x10] sm:$0xff]   ;;  %v3120_v62 = vld [vmem:[%s4162_s0 + $0x20] ss:$8 sps:$4 sm:$0xff]  }
  0x1f   :  { %2672 = vmatprep.subr.bf16.mxu0 %v3104_v32  ;;  %v3111_v48 = vld [vmem:[#allocation3 + $0x38] sm:$0xff]   ;;  %v3154_v0 = vld [vmem:[%s4165_s3 + $0x20] sm:$0xff]   ;;  %v3158_v1 = vld [vmem:[%s4165_s3 + $0x68] sm:$0xff]  }
  0x20   :  { %2803 = vmatpush3.bf16.msra.mxu1 %v3145_v54  ;;  %v3121_v63 = vld [vmem:[%s4162_s0 + $0x34] ss:$8 sps:$4 sm:$0xff]   ;;  %v3159_v2 = vld [vmem:[%s4165_s3 + $0x28] sm:$0xff]   ;;  %v3169_v4 = vld [vmem:[%s4163_s1 + $0x4] ss:$12 sps:$4 sm:$0xff]  }
  0x21   :  { %2804 = vmatprep.subr.bf16.mxu1 %v3146_v55  ;;  %v3160_v3 = vld [vmem:[%s4165_s3 + $0x70] sm:$0xff]   ;;  %v3124_v7 = vld [vmem:[%s4162_s0 + $0x44] ss:$8 sps:$4 sm:$0xff]   ;;  %v3165_v8 = vld [vmem:[%s4165_s3 + $0x78] sm:$0xff]   ;;  %1623 = vmatprep.mubr.bf16.mxu1 %v3169_v4 }
  0x22   :  { %2673 = vmatpush3.bf16.msra.mxu0 %v3105_v41  ;;  %v3123_v5 = vld [vmem:[%s4162_s0 + $0x30] ss:$8 sps:$4 sm:$0xff]   ;;  %v3167_v10 = vld [vmem:[%s4163_s1] ss:$12 sps:$4 sm:$0xff]   ;;  %v3173_v12 = vld [vmem:[%s4163_s1 + $0x1c] ss:$12 sps:$4 sm:$0xff]  }
  0x23   :  { %2674 = vmatprep.subr.bf16.mxu0 %v3106_v43  ;;  %v3161_v6 = vld [vmem:[%s4165_s3 + $0x30] sm:$0xff]   ;;  %v3166_v9 = vld [vmem:[%s4165_s3 + $0x38] sm:$0xff]   ;;  %v3126_v11 = vld [vmem:[%s4162_s0 + $0x40] ss:$8 sps:$4 sm:$0xff]  }
  0x24   :  { %2805 = vmatpush3.bf16.msra.mxu1 %v3147_v57  ;;  %v3127_v13 = vld [vmem:[%s4162_s0 + $0x54] ss:$8 sps:$4 sm:$0xff]   ;;  %v3197_v14 = vld [vmem:[%s4166_s4] sm:$0xff]   ;;  %v3129_v15 = vld [vmem:[%s4162_s0 + $0x50] ss:$8 sps:$4 sm:$0xff]  }
  0x25   :  { %2806 = vmatprep.subr.bf16.mxu1 %v3151_v59  ;;  %v3200_v16 = vld [vmem:[%s4165_s3 + $0x80] sm:$0xff]   ;;  %v3205_v19 = vld [vmem:[%s4166_s4 + $0x8] sm:$0xff]   ;;  %v3213_v22 = vld [vmem:[%s4166_s4 + $0x10] sm:$0xff]  }
  0x26   :  { %2675 = vmatpush3.bf16.msra.mxu0 %v3107_v44  ;;  %v3175_v17 = vld [vmem:[%s4163_s1 + $0x18] ss:$12 sps:$4 sm:$0xff]   ;;  %v3179_v18 = vld [vmem:[%s4163_s1 + $0x34] ss:$12 sps:$4 sm:$0xff]   ;;  %v3208_v21 = vld [vmem:[%s4165_s3 + $0x88] sm:$0xff]  }
  0x27   :  { %2676 = vmatprep.subr.bf16.mxu0 %v3108_v45  ;;  %v3130_v20 = vld [vmem:[%s4162_s0 + $0x64] ss:$8 sps:$4 sm:$0xff]   ;;  %v3132_v23 = vld [vmem:[%s4162_s0 + $0x60] ss:$8 sps:$4 sm:$0xff]   ;;  %v3181_v24 = vld [vmem:[%s4163_s1 + $0x30] ss:$12 sps:$4 sm:$0xff]  }
  0x28   :  { %2807 = vmatpush3.bf16.msra.mxu1 %v3152_v60  ;;  %v3216_v25 = vld [vmem:[%s4165_s3 + $0x90] sm:$0xff]   ;;  %v3185_v26 = vld [vmem:[%s4163_s1 + $0x4c] ss:$12 sps:$4 sm:$0xff]   ;;  %v3138_v35 = vld [vmem:[%s4162_s0 + $0x80] ss:$8 sps:$4 sm:$0xff]  }
  0x29   :  { %2808 = vmatprep.subr.bf16.mxu1 %v3153_v61  ;;  %v3133_v27 = vld [vmem:[%s4162_s0 + $0x74] ss:$8 sps:$4 sm:$0xff]   ;;  %v3135_v31 = vld [vmem:[%s4162_s0 + $0x70] ss:$8 sps:$4 sm:$0xff]   ;;  %v3136_v33 = vld [vmem:[%s4162_s0 + $0x84] ss:$8 sps:$4 sm:$0xff]  }
  0x2a   :  { %2677 = vmatpush3.bf16.msra.mxu0 %v3109_v46  ;;  %v3221_v28 = vld [vmem:[%s4166_s4 + $0x18] sm:$0xff]   ;;  %v3187_v30 = vld [vmem:[%s4163_s1 + $0x48] ss:$12 sps:$4 sm:$0xff]   ;;  %v3188_v32 = vld [vmem:[%s4163_s1 + $0x64] ss:$12 sps:$4 sm:$0xff]  }
  0x2b   :  { %2678 = vmatprep.subr.bf16.mxu0 %v3110_v47  ;;  %v3224_v29 = vld [vmem:[%s4165_s3 + $0x98] sm:$0xff]   ;;  %v3190_v34 = vld [vmem:[%s4163_s1 + $0x60] ss:$12 sps:$4 sm:$0xff]   ;;  %v3201_v47 = vld [vmem:[%s4163_s1 + $0xa8] ss:$12 sps:$4 sm:$0xff]  }
  0x2c   :  { %2809 = vmatpush3.bf16.msra.mxu1 %v3154_v0  ;;  %v3191_v36 = vld [vmem:[%s4163_s1 + $0x7c] ss:$12 sps:$4 sm:$0xff]   ;;  %v3193_v38 = vld [vmem:[%s4163_s1 + $0x78] ss:$12 sps:$4 sm:$0xff]   ;;  %v3194_v40 = vld [vmem:[%s4163_s1 + $0x94] ss:$12 sps:$4 sm:$0xff]  }
  0x2d   :  { %2810 = vmatprep.subr.bf16.mxu1 %v3158_v1  ;;  %v3141_v37 = vld [vmem:[%s4162_s0 + $0x94] ss:$8 sps:$4 sm:$0xff]   ;;  %v3143_v39 = vld [vmem:[%s4162_s0 + $0x90] ss:$8 sps:$4 sm:$0xff]   ;;  %v3148_v41 = vld [vmem:[%s4162_s0 + $0xa4] ss:$8 sps:$4 sm:$0xff]  }
  0x2e   :  { %2679 = vmatpush3.bf16.msra.mxu0 %v3111_v48  ;;  %v3196_v42 = vld [vmem:[%s4163_s1 + $0x90] ss:$12 sps:$4 sm:$0xff]   ;;  %v3150_v43 = vld [vmem:[%s4162_s0 + $0xa0] ss:$8 sps:$4 sm:$0xff]   ;;  %v3198_v44 = vld [vmem:[%s4163_s1 + $0xac] ss:$12 sps:$4 sm:$0xff]  }
  0x2f   :  { %2936 = vmatprep.subr.bf16.mxu0 %v3197_v14  ;;  %v3155_v45 = vld [vmem:[%s4162_s0 + $0xb4] ss:$8 sps:$4 sm:$0xff]   ;;  %v3226_v46 = vld [vmem:[%s4166_s4 + $0x20] sm:$0xff]   ;;  %v3231_v52 = vld [vmem:[%s4166_s4 + $0x28] sm:$0xff]  }
  0x30   :  { %2811 = vmatpush3.bf16.msra.mxu1 %v3159_v2  ;;  %v3230_v48 = vld [vmem:[%s4165_s3 + $0xa0] sm:$0xff]   ;;  %v3232_v53 = vld [vmem:[%s4165_s3 + $0xa8] sm:$0xff]   ;;  %v3233_v54 = vld [vmem:[%s4166_s4 + $0x30] sm:$0xff]  }
  0x31   :  { %611 = vmatmul.mubr.bf16.vlgmr.msra.gmra.mrb[0].mxu0 %v3112_v49  ;;  %2812 = vmatprep.subr.bf16.mxu1 %v3160_v3  ;;  %v3157_v49 = vld [vmem:[%s4162_s0 + $0xb0] ss:$8 sps:$4 sm:$0xff]   ;;  %v3162_v51 = vld [vmem:[%s4162_s0 + $0xc4] ss:$8 sps:$4 sm:$0xff]   ;;  %v3164_v57 = vld [vmem:[%s4162_s0 + $0xc0] ss:$8 sps:$4 sm:$0xff]  }
  0x32   :  { %618 = vmatprep.mubr.bf16.mxu0 %v3115_v50  ;;  %2937 = vmatpush3.bf16.msra.mxu0 %v3197_v14  ;;  %v3202_v50 = vld [vmem:[%s4163_s1 + $0xc4] ss:$12 sps:$4 sm:$0xff]   ;;  %v3204_v55 = vld [vmem:[%s4163_s1 + $0xc0] ss:$12 sps:$4 sm:$0xff]   ;;  %v3170_v59 = vld [vmem:[%s4162_s0 + $0xd4] ss:$8 sps:$4 sm:$0xff]  }
  0x33   :  { %2938 = vmatprep.subr.bf16.mxu0 %v3205_v19  ;;  %v3238_v60 = vld [vmem:[%s4166_s4 + $0x38] sm:$0xff]   ;;  %v3210_v0 = vld [vmem:[%s4163_s1 + $0xf4] ss:$12 sps:$4 sm:$0xff]   ;;  %v3176_v1 = vld [vmem:[%s4162_s0 + $0xe4] ss:$8 sps:$4 sm:$0xff]  }
  0x34   :  { %2813 = vmatpush3.bf16.msra.mxu1 %v3161_v6  ;;  %v3239_v61 = vld [vmem:[%s4165_s3 + $0xb8] sm:$0xff]   ;;  %v3178_v3 = vld [vmem:[%s4162_s0 + $0xe0] ss:$8 sps:$4 sm:$0xff]  }
  0x35   :  { %2814 = vmatprep.subr.bf16.mxu1 %v3165_v8  ;;  %v3212_v2 = vld [vmem:[%s4163_s1 + $0xf0] ss:$12 sps:$4 sm:$0xff]   ;;  %v3214_v4 = vld [vmem:[%s4163_s1 + $0x10c] ss:$12 sps:$4 sm:$0xff]   ;;  %v3217_v6 = vld [vmem:[%s4163_s1 + $0x108] ss:$12 sps:$4 sm:$0xff]  }
  0x36   :  { %2939 = vmatpush3.bf16.msra.mxu0 %v3205_v19  ;;  %v3218_v8 = vld [vmem:[%s4163_s1 + $0x124] ss:$12 sps:$4 sm:$0xff]   ;;  %v3234_v14 = vld [vmem:[%s4163_s1 + $0x16c] ss:$12 sps:$4 sm:$0xff]  }
  0x37   :  { %2940 = vmatprep.subr.bf16.mxu0 %v3213_v22  ;;  %v3243_v19 = vld [vmem:[%s4163_s1 + $0x50] ss:$12 sps:$4 sm:$0xff]  }
  0x38   :  { %2815 = vmatpush3.bf16.msra.mxu1 %v3166_v9  ;;  %v3220_v9 = vld [vmem:[%s4163_s1 + $0x120] ss:$12 sps:$4 sm:$0xff]  }
  0x39   :  { %619 = vmatmul.mubr.bf16.gmra.mrb[4].mxu0 %v3117_v56  ;;  %2984 = vmatprep.subr.bf16.mxu1 %v3200_v16  ;;  %v3237_v56 = vld [vmem:[%s4165_s3 + $0xb0] sm:$0xff]  }
  0x3a   :  { %626 = vmatprep.mubr.bf16.mxu0 %v3118_v58  ;;  %2941 = vmatpush3.bf16.msra.mxu0 %v3213_v22  ;;  %v3206_v58 = vld [vmem:[%s4163_s1 + $0xdc] ss:$12 sps:$4 sm:$0xff]   ;;  %v3246_v22 = vld [vmem:[%s4163_s1 + $0x98] ss:$12 sps:$4 sm:$0xff]  }
  0x3b   :  { %1624 = vmatmul.mubr.bf16.vlgmr.msra.gmra.mrb[0].mxu1 %v3167_v10  ;;  %2942 = vmatprep.subr.bf16.mxu0 %v3221_v28  ;;  %v3222_v10 = vld [vmem:[%s4163_s1 + $0x13c] ss:$12 sps:$4 sm:$0xff]  }
  0x3c   :  { %1631 = vmatprep.mubr.bf16.mxu1 %v3173_v12  ;;  %2985 = vmatpush3.bf16.msra.mxu1 %v3200_v16  ;;  %v3227_v12 = vld [vmem:[%s4163_s1 + $0x154] ss:$12 sps:$4 sm:$0xff]  }
  0x3d   :  { %2986 = vmatprep.subr.bf16.mxu1 %v3208_v21  ;;  %v3240_v16 = vld [vmem:[%s4163_s1 + $0x8] ss:$12 sps:$4 sm:$0xff]  }
  0x3e   :  { %2943 = vmatpush3.bf16.msra.mxu0 %v3221_v28  ;;  %v3252_v28 = vld [vmem:[%s4163_s1 + $0x128] ss:$12 sps:$4 sm:$0xff]  }
  0x3f   :  { %2944 = vmatprep.subr.bf16.mxu0 %v3226_v46 }
  0x40   :  { %2987 = vmatpush3.bf16.msra.mxu1 %v3208_v21  ;;  %v3245_v21 = vld [vmem:[%s4163_s1 + $0x80] ss:$12 sps:$4 sm:$0xff]  }
  0x41   :  { %627 = vmatmul.mubr.bf16.gmra.mrb[8].mxu0 %v3120_v62  ;;  %2988 = vmatprep.subr.bf16.mxu1 %v3216_v25  ;;  %v3209_v62 = vld [vmem:[%s4163_s1 + $0xd8] ss:$12 sps:$4 sm:$0xff]  }
  0x42   :  { %634 = vmatprep.mubr.bf16.mxu0 %v3121_v63  ;;  %2945 = vmatpush3.bf16.msra.mxu0 %v3226_v46  ;;  %v3172_v63 = vld [vmem:[%s4162_s0 + $0xd0] ss:$8 sps:$4 sm:$0xff]  }
  0x43   :  { %1632 = vmatmul.mubr.bf16.gmra.mrb[4].mxu1 %v3175_v17  ;;  %2946 = vmatprep.subr.bf16.mxu0 %v3231_v52  ;;  %v3241_v17 = vld [vmem:[%s4163_s1 + $0x20] ss:$12 sps:$4 sm:$0xff]  }
  0x44   :  { %1639 = vmatprep.mubr.bf16.mxu1 %v3179_v18  ;;  %2989 = vmatpush3.bf16.msra.mxu1 %v3216_v25  ;;  %v3242_v18 = vld [vmem:[%s4163_s1 + $0x38] ss:$12 sps:$4 sm:$0xff]   ;;  %v3249_v25 = vld [vmem:[%s4163_s1 + $0xe0] ss:$12 sps:$4 sm:$0xff]  }
  0x45   :  { %2990 = vmatprep.subr.bf16.mxu1 %v3224_v29 }
  0x46   :  { %2947 = vmatpush3.bf16.msra.mxu0 %v3231_v52 }
  0x47   :  { %2948 = vmatprep.subr.bf16.mxu0 %v3233_v54 }
  0x48   :  { %2991 = vmatpush3.bf16.msra.mxu1 %v3224_v29  ;;  %v3253_v29 = vld [vmem:[%s4163_s1 + $0x140] ss:$12 sps:$4 sm:$0xff]  }
  0x49   :  { %635 = vmatmul.mubr.bf16.gmra.mrb[12].mxu0 %v3123_v5  ;;  %2992 = vmatprep.subr.bf16.mxu1 %v3230_v48  ;;  %v3182_v5 = vld [vmem:[%s4162_s0 + $0xf4] ss:$8 sps:$4 sm:$0xff]  }
  0x4a   :  { %642 = vmatprep.mubr.bf16.mxu0 %v3124_v7  ;;  %2949 = vmatpush3.bf16.msra.mxu0 %v3233_v54  ;;  %v3184_v7 = vld [vmem:[%s4162_s0 + $0xf0] ss:$8 sps:$4 sm:$0xff]  }
  0x4b   :  { %1640 = vmatmul.mubr.bf16.gmra.mrb[8].mxu1 %v3181_v24  ;;  %2950 = vmatprep.subr.bf16.mxu0 %v3238_v60  ;;  %v3248_v24 = vld [vmem:[%s4163_s1 + $0xc8] ss:$12 sps:$4 sm:$0xff]  }
  0x4c   :  { %1647 = vmatprep.mubr.bf16.mxu1 %v3185_v26  ;;  %2993 = vmatpush3.bf16.msra.mxu1 %v3230_v48  ;;  %v3250_v26 = vld [vmem:[%s4163_s1 + $0xf8] ss:$12 sps:$4 sm:$0xff]  }
  0x4d   :  { %2994 = vmatprep.subr.bf16.mxu1 %v3232_v53 }
  0x4e   :  { %2951 = vmatpush3.bf16.msra.mxu0 %v3238_v60 }
  0x50   :  { %2995 = vmatpush3.bf16.msra.mxu1 %v3232_v53 }
  0x51   :  { %643 = vmatmul.mubr.bf16.gmra.mrb[16].mxu0 %v3126_v11  ;;  %2996 = vmatprep.subr.bf16.mxu1 %v3237_v56  ;;  %v3225_v11 = vld [vmem:[%s4163_s1 + $0x138] ss:$12 sps:$4 sm:$0xff]  }
  0x52   :  { %650 = vmatprep.mubr.bf16.mxu0 %v3127_v13  ;;  %v3229_v13 = vld [vmem:[%s4163_s1 + $0x150] ss:$12 sps:$4 sm:$0xff]  }
  0x53   :  { %1648 = vmatmul.mubr.bf16.gmra.mrb[12].mxu1 %v3187_v30  ;;  %v3254_v30 = vld [vmem:[%s4163_s1 + $0x158] ss:$12 sps:$4 sm:$0xff]  }
  0x54   :  { %1655 = vmatprep.mubr.bf16.mxu1 %v3188_v32  ;;  %2997 = vmatpush3.bf16.msra.mxu1 %v3237_v56  ;;  %v3255_v32 = vld [vmem:[%s4163_s1 + $0x170] ss:$12 sps:$4 sm:$0xff]  }
  0x55   :  { %2998 = vmatprep.subr.bf16.mxu1 %v3239_v61 }
  0x58   :  { %2999 = vmatpush3.bf16.msra.mxu1 %v3239_v61 }
  0x59   :  { %651 = vmatmul.mubr.bf16.gmra.mrb[20].mxu0 %v3129_v15  ;;  %v3236_v15 = vld [vmem:[%s4163_s1 + $0x168] ss:$12 sps:$4 sm:$0xff]  }
  0x5a   :  { %658 = vmatprep.mubr.bf16.mxu0 %v3130_v20  ;;  %v3244_v20 = vld [vmem:[%s4163_s1 + $0x68] ss:$12 sps:$4 sm:$0xff]  }
  0x5b   :  { %1656 = vmatmul.mubr.bf16.gmra.mrb[16].mxu1 %v3190_v34 }
  0x5c   :  { %1663 = vmatprep.mubr.bf16.mxu1 %v3191_v36 }
  0x61   :  { %659 = vmatmul.mubr.bf16.gmra.mrb[24].mxu0 %v3132_v23  ;;  %v3247_v23 = vld [vmem:[%s4163_s1 + $0xb0] ss:$12 sps:$4 sm:$0xff]  }
  0x62   :  { %666 = vmatprep.mubr.bf16.mxu0 %v3133_v27  ;;  %v3251_v27 = vld [vmem:[%s4163_s1 + $0x110] ss:$12 sps:$4 sm:$0xff]  }
  0x63   :  { %1664 = vmatmul.mubr.bf16.gmra.mrb[20].mxu1 %v3193_v38 }
  0x64   :  { %1671 = vmatprep.mubr.bf16.mxu1 %v3194_v40 }
  0x69   :  { %667 = vmatmul.mubr.bf16.gmra.mrb[28].mxu0 %v3135_v31 }
  0x6a   :  { %674 = vmatprep.mubr.bf16.mxu0 %v3136_v33 }
  0x6b   :  { %1672 = vmatmul.mubr.bf16.gmra.mrb[24].mxu1 %v3196_v42 }
  0x6c   :  { %1679 = vmatprep.mubr.bf16.mxu1 %v3198_v44 }
  0x71   :  { %675 = vmatmul.mubr.bf16.gmra.mrb[32].mxu0 %v3138_v35 }
  0x72   :  { %682 = vmatprep.mubr.bf16.mxu0 %v3141_v37 }
  0x73   :  { %1680 = vmatmul.mubr.bf16.gmra.mrb[28].mxu1 %v3201_v47 }
  0x74   :  { %1687 = vmatprep.mubr.bf16.mxu1 %v3202_v50 }
  0x79   :  { %683 = vmatmul.mubr.bf16.gmra.mrb[36].mxu0 %v3143_v39 }
  0x7a   :  { %690 = vmatprep.mubr.bf16.mxu0 %v3148_v41 }
  0x7b   :  { %1688 = vmatmul.mubr.bf16.gmra.mrb[32].mxu1 %v3204_v55 }
  0x7c   :  { %1695 = vmatprep.mubr.bf16.mxu1 %v3206_v58 }
  0x81   :  { %691 = vmatmul.mubr.bf16.gmra.mrb[40].mxu0 %v3150_v43 }
  0x82   :  { %698 = vmatprep.mubr.bf16.mxu0 %v3155_v45 }
  0x83   :  { %1696 = vmatmul.mubr.bf16.gmra.mrb[36].mxu1 %v3209_v62 }
  0x84   :  { %1703 = vmatprep.mubr.bf16.mxu1 %v3210_v0 }
  0x89   :  { %699 = vmatmul.mubr.bf16.gmra.mrb[44].mxu0 %v3157_v49 }
  0x8a   :  { %706 = vmatprep.mubr.bf16.mxu0 %v3162_v51 }
  0x8b   :  { %1704 = vmatmul.mubr.bf16.gmra.mrb[40].mxu1 %v3212_v2 }
  0x8c   :  { %1711 = vmatprep.mubr.bf16.mxu1 %v3214_v4 }
  0x91   :  { %707 = vmatmul.mubr.bf16.gmra.mrb[48].mxu0 %v3164_v57 }
  0x92   :  { %714 = vmatprep.mubr.bf16.mxu0 %v3170_v59 }
  0x93   :  { %1712 = vmatmul.mubr.bf16.gmra.mrb[44].mxu1 %v3217_v6 }
  0x94   :  { %1719 = vmatprep.mubr.bf16.mxu1 %v3218_v8 }
  0x99   :  { %715 = vmatmul.mubr.bf16.gmra.mrb[52].mxu0 %v3172_v63 }
  0x9a   :  { %722 = vmatprep.mubr.bf16.mxu0 %v3176_v1 }
  0x9b   :  { %1720 = vmatmul.mubr.bf16.gmra.mrb[48].mxu1 %v3220_v9 }
  0x9c   :  { %1727 = vmatprep.mubr.bf16.mxu1 %v3222_v10 }
  0xa1   :  { %723 = vmatmul.mubr.bf16.gmra.mrb[56].mxu0 %v3178_v3 }
  0xa2   :  { %730 = vmatprep.mubr.bf16.mxu0 %v3182_v5 }
  0xa3   :  { %1728 = vmatmul.mubr.bf16.gmra.mrb[52].mxu1 %v3225_v11 }
  0xa4   :  { %1735 = vmatprep.mubr.bf16.mxu1 %v3227_v12 }
  0xa9   :  { %731 = vmatmul.mubr.bf16.gmra.mrb[60].mxu0 %v3184_v7 }
  0xab   :  { %1736 = vmatmul.mubr.bf16.gmra.mrb[56].mxu1 %v3229_v13 }
  0xac   :  { %1743 = vmatprep.mubr.bf16.mxu1 %v3234_v14 }
  0xb3   :  { %1744 = vmatmul.mubr.bf16.gmra.mrb[60].mxu1 %v3236_v15 }
  0xb4   :  { %3000 = vmatprep.mubr.bf16.mxu1 %v3240_v16 }
  0xbb   :  { %3001 = vmatmul.mubr.bf16.vlgmr.msra.gmra.mrb[64].mxu1 %v3241_v17 }
  0xbc   :  { %3004 = vmatprep.mubr.bf16.mxu1 %v3242_v18 }
  0xc3   :  { %3005 = vmatmul.mubr.bf16.gmra.mrb[68].mxu1 %v3243_v19 }
  0xc4   :  { %3008 = vmatprep.mubr.bf16.mxu1 %v3244_v20 }
  0xcb   :  { %3009 = vmatmul.mubr.bf16.gmra.mrb[72].mxu1 %v3245_v21 }
  0xcc   :  { %3012 = vmatprep.mubr.bf16.mxu1 %v3246_v22 }
  0xd3   :  { %3013 = vmatmul.mubr.bf16.gmra.mrb[76].mxu1 %v3247_v23 }
  0xd4   :  { %3016 = vmatprep.mubr.bf16.mxu1 %v3248_v24 }
  0xdb   :  { %3017 = vmatmul.mubr.bf16.gmra.mrb[80].mxu1 %v3249_v25 }
  0xdc   :  { %3020 = vmatprep.mubr.bf16.mxu1 %v3250_v26 }
  0xe3   :  { %3021 = vmatmul.mubr.bf16.gmra.mrb[84].mxu1 %v3251_v27 }
  0xe4   :  { %3024 = vmatprep.mubr.bf16.mxu1 %v3252_v28 }
  0xeb   :  { %3025 = vmatmul.mubr.bf16.gmra.mrb[88].mxu1 %v3253_v29 }
  0xec   :  { %3028 = vmatprep.mubr.bf16.mxu1 %v3254_v30 }
  0xf3   :  { %3029 = vmatmul.mubr.bf16.gmra.mrb[92].mxu1 %v3255_v32 }
 0x104   :  { %v2680_v31 = vpop.f32.mrb[0].mxu0 }
 0x105   :  { %v2681_v33 = vpop.f32.mrb[1].mxu0 }
 0x106   :  { %v2682_v34 = vadd.f32 %v2681_v33, %v2680_v31  ;;  %v2683_v35 = vpop.f32.mrb[2].mxu0 }
 0x107   :  { %v2684_v36 = vpop.f32.mrb[3].mxu0 }
 0x108   :  { %v2685_v37 = vadd.f32 %v2684_v36, %v2683_v35 }
 0x10a   :  { %v950_v38 = vpack.c.bf16 %v2685_v37, %v2682_v34 }
 0x10c   :  { %v2686_v39 = vpop.f32.mrb[4].mxu0  ;;  %2952 = vmatprep.mubr.bf16.mxu0 %v950_v38 }
 0x10d   :  { %v2687_v40 = vpop.f32.mrb[5].mxu0 }
 0x10e   :  { %v2688_v41 = vadd.f32 %v2687_v40, %v2686_v39  ;;  %v2689_v42 = vpop.f32.mrb[6].mxu0  ;;  %v2816_v60 = vpop.f32.mrb[0].mxu1 }
 0x10f   :  { %v2690_v43 = vpop.f32.mrb[7].mxu0  ;;  %v2817_v62 = vpop.f32.mrb[1].mxu1 }
 0x110   :  { %v2691_v44 = vadd.f32 %v2690_v43, %v2689_v42  ;;  %v3787_v0 = vadd.f32 %v2817_v62, %v2816_v60  ;;  %v2819_v1 = vpop.f32.mrb[2].mxu1 }
 0x111   :  { %v2820_v4 = vpop.f32.mrb[3].mxu1 }
 0x112   :  { %v951_v45 = vpack.c.bf16 %v2691_v44, %v2688_v41  ;;  %v3789_v6 = vadd.f32 %v2820_v4, %v2819_v1 }
 0x114   :  { %v2692_v46 = vpop.f32.mrb[8].mxu0  ;;  %2953 = vmatmul.mubr.bf16.vlgmr.msra.gmra.mrb[64].mxu0 %v951_v45 }
 0x115   :  { %v2693_v47 = vpop.f32.mrb[9].mxu0 }
 0x116   :  { %v2694_v48 = vadd.f32 %v2693_v47, %v2692_v46  ;;  %v2695_v49 = vpop.f32.mrb[10].mxu0  ;;  %v2822_v9 = vpop.f32.mrb[4].mxu1 }
 0x117   :  { %v2696_v50 = vpop.f32.mrb[11].mxu0  ;;  %v2823_v11 = vpop.f32.mrb[5].mxu1 }
 0x118   :  { %v2697_v51 = vadd.f32 %v2696_v50, %v2695_v49  ;;  %v3791_v13 = vadd.f32 %v2823_v11, %v2822_v9  ;;  %v2825_v14 = vpop.f32.mrb[6].mxu1 }
 0x119   :  { %v2826_v17 = vpop.f32.mrb[7].mxu1 }
 0x11a   :  { %v952_v52 = vpack.c.bf16 %v2697_v51, %v2694_v48  ;;  %v3793_v19 = vadd.f32 %v2826_v17, %v2825_v14 }
 0x11c   :  { %v2698_v53 = vpop.f32.mrb[12].mxu0  ;;  %2956 = vmatprep.mubr.bf16.mxu0 %v952_v52 }
 0x11d   :  { %v2699_v54 = vpop.f32.mrb[13].mxu0 }
 0x11e   :  { %v2700_v55 = vadd.f32 %v2699_v54, %v2698_v53  ;;  %v2701_v56 = vpop.f32.mrb[14].mxu0  ;;  %v2828_v22 = vpop.f32.mrb[8].mxu1 }
 0x11f   :  { %v2702_v57 = vpop.f32.mrb[15].mxu0  ;;  %v2829_v24 = vpop.f32.mrb[9].mxu1 }
 0x120   :  { %v2703_v58 = vadd.f32 %v2702_v57, %v2701_v56  ;;  %v3795_v26 = vadd.f32 %v2829_v24, %v2828_v22  ;;  %v2831_v27 = vpop.f32.mrb[10].mxu1 }
 0x121   :  { %v2832_v30 = vpop.f32.mrb[11].mxu1 }
 0x122   :  { %v953_v59 = vpack.c.bf16 %v2703_v58, %v2700_v55  ;;  %v3797_v32 = vadd.f32 %v2832_v30, %v2831_v27 }
 0x124   :  { %v2704_v61 = vpop.f32.mrb[16].mxu0  ;;  %2957 = vmatmul.mubr.bf16.gmra.mrb[68].mxu0 %v953_v59 }
 0x125   :  { %v2705_v63 = vpop.f32.mrb[17].mxu0 }
 0x126   :  { %v2706_v2 = vadd.f32 %v2705_v63, %v2704_v61  ;;  %v2707_v3 = vpop.f32.mrb[18].mxu0  ;;  %v2834_v35 = vpop.f32.mrb[12].mxu1 }
 0x127   :  { %v2708_v5 = vpop.f32.mrb[19].mxu0  ;;  %v2835_v37 = vpop.f32.mrb[13].mxu1 }
 0x128   :  { %v2709_v7 = vadd.f32 %v2708_v5, %v2707_v3  ;;  %v3799_v39 = vadd.f32 %v2835_v37, %v2834_v35  ;;  %v2837_v40 = vpop.f32.mrb[14].mxu1 }
 0x129   :  { %v2838_v43 = vpop.f32.mrb[15].mxu1 }
 0x12a   :  { %v954_v8 = vpack.c.bf16 %v2709_v7, %v2706_v2  ;;  %v3801_v45 = vadd.f32 %v2838_v43, %v2837_v40 }
 0x12c   :  { %v2710_v10 = vpop.f32.mrb[20].mxu0  ;;  %2960 = vmatprep.mubr.bf16.mxu0 %v954_v8 }
 0x12d   :  { %v2711_v12 = vpop.f32.mrb[21].mxu0 }
 0x12e   :  { %v2712_v15 = vadd.f32 %v2711_v12, %v2710_v10  ;;  %v2713_v16 = vpop.f32.mrb[22].mxu0  ;;  %v2840_v48 = vpop.f32.mrb[16].mxu1 }
 0x12f   :  { %v2714_v18 = vpop.f32.mrb[23].mxu0  ;;  %v2841_v50 = vpop.f32.mrb[17].mxu1 }
 0x130   :  { %v2715_v20 = vadd.f32 %v2714_v18, %v2713_v16  ;;  %v3803_v52 = vadd.f32 %v2841_v50, %v2840_v48  ;;  %v2843_v53 = vpop.f32.mrb[18].mxu1 }
 0x131   :  { %v2844_v56 = vpop.f32.mrb[19].mxu1 }
 0x132   :  { %v955_v21 = vpack.c.bf16 %v2715_v20, %v2712_v15  ;;  %v3805_v58 = vadd.f32 %v2844_v56, %v2843_v53 }
 0x134   :  { %v2716_v23 = vpop.f32.mrb[24].mxu0  ;;  %2961 = vmatmul.mubr.bf16.gmra.mrb[72].mxu0 %v955_v21 }
 0x135   :  { %v2717_v25 = vpop.f32.mrb[25].mxu0 }
 0x136   :  { %v2718_v28 = vadd.f32 %v2717_v25, %v2716_v23  ;;  %v2719_v29 = vpop.f32.mrb[26].mxu0  ;;  %v2846_v61 = vpop.f32.mrb[20].mxu1 }
 0x137   :  { %v2720_v31 = vpop.f32.mrb[27].mxu0  ;;  %v2847_v63 = vpop.f32.mrb[21].mxu1 }
 0x138   :  { %v2721_v33 = vadd.f32 %v2720_v31, %v2719_v29  ;;  %v3807_v2 = vadd.f32 %v2847_v63, %v2846_v61  ;;  %v2849_v3 = vpop.f32.mrb[22].mxu1 }
 0x139   :  { %v2850_v7 = vpop.f32.mrb[23].mxu1 }
 0x13a   :  { %v956_v34 = vpack.c.bf16 %v2721_v33, %v2718_v28  ;;  %v3809_v9 = vadd.f32 %v2850_v7, %v2849_v3 }
 0x13c   :  { %v2722_v36 = vpop.f32.mrb[28].mxu0  ;;  %2964 = vmatprep.mubr.bf16.mxu0 %v956_v34 }
 0x13d   :  { %v2723_v38 = vpop.f32.mrb[29].mxu0 }
 0x13e   :  { %v2724_v41 = vadd.f32 %v2723_v38, %v2722_v36  ;;  %v2725_v42 = vpop.f32.mrb[30].mxu0  ;;  %v2852_v12 = vpop.f32.mrb[24].mxu1 }
 0x13f   :  { %v2726_v44 = vpop.f32.mrb[31].mxu0  ;;  %v2853_v15 = vpop.f32.mrb[25].mxu1 }
 0x140   :  { %v2727_v46 = vadd.f32 %v2726_v44, %v2725_v42  ;;  %v3811_v17 = vadd.f32 %v2853_v15, %v2852_v12  ;;  %v2855_v18 = vpop.f32.mrb[26].mxu1 }
 0x141   :  { %v2856_v22 = vpop.f32.mrb[27].mxu1 }
 0x142   :  { %v957_v47 = vpack.c.bf16 %v2727_v46, %v2724_v41  ;;  %v3813_v24 = vadd.f32 %v2856_v22, %v2855_v18 }
 0x144   :  { %v2728_v49 = vpop.f32.mrb[32].mxu0  ;;  %2965 = vmatmul.mubr.bf16.gmra.mrb[76].mxu0 %v957_v47 }
 0x145   :  { %v2729_v51 = vpop.f32.mrb[33].mxu0 }
 0x146   :  { %v2730_v54 = vadd.f32 %v2729_v51, %v2728_v49  ;;  %v2731_v55 = vpop.f32.mrb[34].mxu0  ;;  %v2858_v28 = vpop.f32.mrb[28].mxu1 }
 0x147   :  { %v2732_v57 = vpop.f32.mrb[35].mxu0  ;;  %v2859_v30 = vpop.f32.mrb[29].mxu1 }
 0x148   :  { %v2733_v59 = vadd.f32 %v2732_v57, %v2731_v55  ;;  %v3815_v33 = vadd.f32 %v2859_v30, %v2858_v28  ;;  %v2861_v34 = vpop.f32.mrb[30].mxu1 }
 0x149   :  { %v2862_v37 = vpop.f32.mrb[31].mxu1 }
 0x14a   :  { %v958_v60 = vpack.c.bf16 %v2733_v59, %v2730_v54  ;;  %v3817_v40 = vadd.f32 %v2862_v37, %v2861_v34 }
 0x14c   :  { %v2734_v62 = vpop.f32.mrb[36].mxu0  ;;  %2968 = vmatprep.mubr.bf16.mxu0 %v958_v60 }
 0x14d   :  { %v2735_v1 = vpop.f32.mrb[37].mxu0 }
 0x14e   :  { %v2736_v4 = vadd.f32 %v2735_v1, %v2734_v62  ;;  %v2737_v5 = vpop.f32.mrb[38].mxu0  ;;  %v2864_v43 = vpop.f32.mrb[32].mxu1 }
 0x14f   :  { %v2738_v8 = vpop.f32.mrb[39].mxu0  ;;  %v2865_v46 = vpop.f32.mrb[33].mxu1 }
 0x150   :  { %v2739_v10 = vadd.f32 %v2738_v8, %v2737_v5  ;;  %v3819_v48 = vadd.f32 %v2865_v46, %v2864_v43  ;;  %v2867_v49 = vpop.f32.mrb[34].mxu1 }
 0x151   :  { %v2868_v53 = vpop.f32.mrb[35].mxu1 }
 0x152   :  { %v959_v11 = vpack.c.bf16 %v2739_v10, %v2736_v4  ;;  %v3821_v55 = vadd.f32 %v2868_v53, %v2867_v49 }
 0x154   :  { %v2740_v14 = vpop.f32.mrb[40].mxu0  ;;  %2969 = vmatmul.mubr.bf16.gmra.mrb[80].mxu0 %v959_v11 }
 0x155   :  { %v2741_v16 = vpop.f32.mrb[41].mxu0 }
 0x156   :  { %v2742_v20 = vadd.f32 %v2741_v16, %v2740_v14  ;;  %v2743_v21 = vpop.f32.mrb[42].mxu0  ;;  %v2870_v59 = vpop.f32.mrb[36].mxu1 }
 0x157   :  { %v2744_v23 = vpop.f32.mrb[43].mxu0  ;;  %v2871_v61 = vpop.f32.mrb[37].mxu1 }
 0x158   :  { %v2745_v25 = vadd.f32 %v2744_v23, %v2743_v21  ;;  %v3823_v63 = vadd.f32 %v2871_v61, %v2870_v59  ;;  %v2873_v1 = vpop.f32.mrb[38].mxu1 }
 0x159   :  { %v2874_v5 = vpop.f32.mrb[39].mxu1 }
 0x15a   :  { %v960_v27 = vpack.c.bf16 %v2745_v25, %v2742_v20  ;;  %v3825_v8 = vadd.f32 %v2874_v5, %v2873_v1 }
 0x15c   :  { %v2746_v29 = vpop.f32.mrb[44].mxu0  ;;  %2972 = vmatprep.mubr.bf16.mxu0 %v960_v27 }
 0x15d   :  { %v2747_v31 = vpop.f32.mrb[45].mxu0 }
 0x15e   :  { %v2748_v35 = vadd.f32 %v2747_v31, %v2746_v29  ;;  %v2749_v36 = vpop.f32.mrb[46].mxu0  ;;  %v2876_v12 = vpop.f32.mrb[40].mxu1 }
 0x15f   :  { %v2750_v38 = vpop.f32.mrb[47].mxu0  ;;  %v2877_v15 = vpop.f32.mrb[41].mxu1 }
 0x160   :  { %v2751_v41 = vadd.f32 %v2750_v38, %v2749_v36  ;;  %v3827_v18 = vadd.f32 %v2877_v15, %v2876_v12  ;;  %v2879_v20 = vpop.f32.mrb[42].mxu1 }
 0x161   :  { %v2880_v23 = vpop.f32.mrb[43].mxu1 }
 0x162   :  { %v961_v42 = vpack.c.bf16 %v2751_v41, %v2748_v35  ;;  %v3829_v27 = vadd.f32 %v2880_v23, %v2879_v20 }
 0x164   :  { %v2752_v44 = vpop.f32.mrb[48].mxu0  ;;  %2973 = vmatmul.mubr.bf16.gmra.mrb[84].mxu0 %v961_v42 }
 0x165   :  { %v2753_v47 = vpop.f32.mrb[49].mxu0 }
 0x166   :  { %v2754_v50 = vadd.f32 %v2753_v47, %v2752_v44  ;;  %v2755_v51 = vpop.f32.mrb[50].mxu0  ;;  %v2882_v30 = vpop.f32.mrb[44].mxu1 }
 0x167   :  { %v2756_v54 = vpop.f32.mrb[51].mxu0  ;;  %v2883_v34 = vpop.f32.mrb[45].mxu1 }
 0x168   :  { %v2757_v56 = vadd.f32 %v2756_v54, %v2755_v51  ;;  %v3831_v36 = vadd.f32 %v2883_v34, %v2882_v30  ;;  %v2885_v37 = vpop.f32.mrb[46].mxu1 }
 0x169   :  { %v2886_v42 = vpop.f32.mrb[47].mxu1 }
 0x16a   :  { %v962_v57 = vpack.c.bf16 %v2757_v56, %v2754_v50  ;;  %v3833_v44 = vadd.f32 %v2886_v42, %v2885_v37 }
 0x16c   :  { %v2758_v60 = vpop.f32.mrb[52].mxu0  ;;  %2976 = vmatprep.mubr.bf16.mxu0 %v962_v57 }
 0x16d   :  { %v2759_v62 = vpop.f32.mrb[53].mxu0 }
 0x16e   :  { %v2760_v3 = vadd.f32 %v2759_v62, %v2758_v60  ;;  %v2761_v4 = vpop.f32.mrb[54].mxu0  ;;  %v2888_v49 = vpop.f32.mrb[48].mxu1 }
 0x16f   :  { %v2762_v7 = vpop.f32.mrb[55].mxu0  ;;  %v2889_v50 = vpop.f32.mrb[49].mxu1 }
 0x170   :  { %v2763_v10 = vadd.f32 %v2762_v7, %v2761_v4  ;;  %v3835_v51 = vadd.f32 %v2889_v50, %v2888_v49  ;;  %v2891_v53 = vpop.f32.mrb[50].mxu1 }
 0x171   :  { %v2892_v54 = vpop.f32.mrb[51].mxu1 }
 0x172   :  { %v963_v11 = vpack.c.bf16 %v2763_v10, %v2760_v3  ;;  %4169 = vst [vmem:[#allocation4_spill] sm:$0xff] %v3835_v51  ;;  %v3837_v56 = vadd.f32 %v2892_v54, %v2891_v53 }
 0x174   :  { %v2764_v14 = vpop.f32.mrb[56].mxu0  ;;  %2977 = vmatmul.mubr.bf16.gmra.mrb[88].mxu0 %v963_v11  ;;  %4170 = vst [vmem:[#allocation5_spill] sm:$0xff] %v3837_v56 }
 0x175   :  { %v2765_v16 = vpop.f32.mrb[57].mxu0 }
 0x176   :  { %v2766_v21 = vadd.f32 %v2765_v16, %v2764_v14  ;;  %v2767_v22 = vpop.f32.mrb[58].mxu0  ;;  %v2894_v57 = vpop.f32.mrb[52].mxu1 }
 0x177   :  { %v2768_v25 = vpop.f32.mrb[59].mxu0  ;;  %v2895_v59 = vpop.f32.mrb[53].mxu1 }
 0x178   :  { %v2769_v28 = vadd.f32 %v2768_v25, %v2767_v22  ;;  %v3839_v60 = vadd.f32 %v2895_v59, %v2894_v57  ;;  %v2897_v61 = vpop.f32.mrb[54].mxu1 }
 0x179   :  { %v2898_v62 = vpop.f32.mrb[55].mxu1 }
 0x17a   :  { %v964_v29 = vpack.c.bf16 %v2769_v28, %v2766_v21  ;;  %4171 = vst [vmem:[#allocation6_spill] sm:$0xff] %v3839_v60  ;;  %v3841_v1 = vadd.f32 %v2898_v62, %v2897_v61 }
 0x17c   :  { %v2770_v31 = vpop.f32.mrb[60].mxu0  ;;  %2980 = vmatprep.mubr.bf16.mxu0 %v964_v29  ;;  %4172 = vst [vmem:[#allocation7_spill] sm:$0xff] %v3841_v1 }
 0x17d   :  { %v2771_v35 = vpop.f32.mrb[61].mxu0 }
 0x17e   :  { %v2772_v38 = vadd.f32 %v2771_v35, %v2770_v31  ;;  %v2773_v41 = vpop.f32.mrb[62].mxu0  ;;  %v2900_v3 = vpop.f32.mrb[56].mxu1 }
 0x17f   :  { %v2774_v43 = vpop.f32.mrb[63].mxu0  ;;  %v2901_v4 = vpop.f32.mrb[57].mxu1 }
 0x180   :  { %v2775_v46 = vadd.f32 %v2774_v43, %v2773_v41  ;;  %v3843_v5 = vadd.f32 %v2901_v4, %v2900_v3  ;;  %v2903_v7 = vpop.f32.mrb[58].mxu1 }
 0x181   :  { %v2904_v10 = vpop.f32.mrb[59].mxu1 }
 0x182   :  { %v965_v47 = vpack.c.bf16 %v2775_v46, %v2772_v38  ;;  %4173 = vst [vmem:[#allocation8_spill] sm:$0xff] %v3843_v5  ;;  %v3845_v11 = vadd.f32 %v2904_v10, %v2903_v7 }
 0x184   :  { %2981 = vmatmul.mubr.bf16.gmra.mrb[92].mxu0 %v965_v47  ;;  %4174 = vst [vmem:[#allocation9_spill] sm:$0xff] %v3845_v11 }
 0x186   :  { %v2906_v12 = vpop.f32.mrb[60].mxu1 }
 0x187   :  { %v2907_v14 = vpop.f32.mrb[61].mxu1 }
 0x188   :  { %v3847_v15 = vadd.f32 %v2907_v14, %v2906_v12  ;;  %v2909_v16 = vpop.f32.mrb[62].mxu1 }
 0x189   :  { %v2910_v20 = vpop.f32.mrb[63].mxu1 }
 0x18a   :  { %4175 = vst [vmem:[#allocation10_spill] sm:$0xff] %v3847_v15  ;;  %v3849_v21 = vadd.f32 %v2910_v20, %v2909_v16 }
 0x18c   :  { %4176 = vst [vmem:[#allocation11_spill] sm:$0xff] %v3849_v21 }
 0x18e   :  { %v3002_v22 = vpop.f32.mrb[64].mxu1 }
 0x18f   :  { %v1786_v23 = vpop.f32.mrb[65].mxu1 }
 0x190   :  { %v3003_v25 = vpop.f32.mrb[66].mxu1 }
 0x191   :  { %v1789_v28 = vpop.f32.mrb[67].mxu1 }
 0x196   :  { %v3851_v29 = vpop.f32.mrb[68].mxu1 }
 0x197   :  { %v3853_v30 = vpop.f32.mrb[69].mxu1 }
 0x198   :  { %v3855_v31 = vpop.f32.mrb[70].mxu1 }
 0x199   :  { %v3857_v34 = vpop.f32.mrb[71].mxu1 }
 0x19e   :  { %v3859_v35 = vpop.f32.mrb[72].mxu1 }
 0x19f   :  { %v3861_v37 = vpop.f32.mrb[73].mxu1 }
 0x1a0   :  { %v3863_v38 = vpop.f32.mrb[74].mxu1 }
 0x1a1   :  { %v3865_v41 = vpop.f32.mrb[75].mxu1 }
 0x1a6   :  { %v3867_v42 = vpop.f32.mrb[76].mxu1 }
 0x1a7   :  { %v3869_v43 = vpop.f32.mrb[77].mxu1 }
 0x1a8   :  { %v3871_v46 = vpop.f32.mrb[78].mxu1 }
 0x1a9   :  { %v3873_v47 = vpop.f32.mrb[79].mxu1 }
 0x1ae   :  { %v3875_v49 = vpop.f32.mrb[80].mxu1 }
 0x1af   :  { %v3877_v50 = vpop.f32.mrb[81].mxu1 }
 0x1b0   :  { %v3879_v53 = vpop.f32.mrb[82].mxu1 }
 0x1b1   :  { %v3881_v54 = vpop.f32.mrb[83].mxu1 }
 0x1b6   :  { %v3883_v57 = vpop.f32.mrb[84].mxu1 }
 0x1b7   :  { %v3885_v59 = vpop.f32.mrb[85].mxu1 }
 0x1b8   :  { %v3887_v61 = vpop.f32.mrb[86].mxu1 }
 0x1b9   :  { %v3889_v62 = vpop.f32.mrb[87].mxu1 }
 0x1ba   :  { %4177 = vst [vmem:[#allocation12_spill] sm:$0xff] %v3889_v62 }
 0x1be   :  { %v3891_v3 = vpop.f32.mrb[88].mxu1 }
 0x1bf   :  { %4178 = vst [vmem:[#allocation13_spill] sm:$0xff] %v3891_v3  ;;  %v3893_v4 = vpop.f32.mrb[89].mxu1 }
 0x1c0   :  { %4179 = vst [vmem:[#allocation14_spill] sm:$0xff] %v3893_v4  ;;  %v3895_v7 = vpop.f32.mrb[90].mxu1 }
 0x1c1   :  { %4180 = vst [vmem:[#allocation15_spill] sm:$0xff] %v3895_v7  ;;  %v3897_v10 = vpop.f32.mrb[91].mxu1  ;;  %v3912_v7 = vld [vmem:[%s4167_s5] ss:$0 sm:$0xff] }
 0x1c2   :  { %4181 = vst [vmem:[#allocation16_spill] sm:$0xff] %v3897_v10 }
 0x1c6   :  { %v3899_v12 = vpop.f32.mrb[92].mxu1 }
 0x1c7   :  { %4182 = vst [vmem:[#allocation17_spill] sm:$0xff] %v3899_v12  ;;  %v3901_v14 = vpop.f32.mrb[93].mxu1 }
 0x1c8   :  { %4183 = vst [vmem:[#allocation18_spill] sm:$0xff] %v3901_v14  ;;  %v3903_v16 = vpop.f32.mrb[94].mxu1 }
 0x1c9   :  { %4184 = vst [vmem:[#allocation19_spill] sm:$0xff] %v3903_v16  ;;  %v3905_v20 = vpop.f32.mrb[95].mxu1 }
 0x1ca   :  { %4185 = vst [vmem:[#allocation20_spill] sm:$0xff] %v3905_v20 }
 0x1e7   :  { %v2954_v11 = vpop.f32.mrb[64].mxu0 }
 0x1e8   :  { %v1634_v21 = vadd.f32 %v2954_v11, %v3791_v13  ;;  %v1064_v5 = vpop.f32.mrb[65].mxu0 }
 0x1e9   :  { %v1626_v15 = vadd.f32 %v3787_v0, %v1064_v5  ;;  %v2955_v56 = vpop.f32.mrb[66].mxu0 }
 0x1ea   :  { %v1637_v12 = vadd.f32 %v2955_v56, %v3793_v19  ;;  %v1795_v10 = vadd.f32 %v3002_v22, %v1634_v21  ;;  %v1067_v14 = vpop.f32.mrb[67].mxu0 }
 0x1eb   :  { %v1629_v16 = vadd.f32 %v3789_v6, %v1067_v14  ;;  %v1787_v4 = vadd.f32 %v1786_v23, %v1626_v15 }
 0x1ec   :  { %v1922_v20 = vadd.f32 %v3912_v7, %v1795_v10  ;;  %v1798_v3 = vadd.f32 %v3003_v25, %v1637_v12 }
 0x1ed   :  { %v1920_v13 = vadd.f32 %v3912_v7, %v1787_v4  ;;  %v1790_v11 = vadd.f32 %v1789_v28, %v1629_v16 }
 0x1ee   :  { %v1986_v0 = vmin.f32 %v1922_v20, 0.0  ;;  %v1923_v5 = vadd.f32 %v3912_v7, %v1798_v3  ;;  %vm1954_vm0 = vcmp.gt.f32.partialorder %v1922_v20, 0.0 }
 0x1ef   :  { %v1984_v1 = vmin.f32 %v1920_v13, 0.0  ;;  %v1921_v51 = vadd.f32 %v3912_v7, %v1790_v11  ;;  %vm1952_vm1 = vcmp.gt.f32.partialorder %v1920_v13, 0.0 }
 0x1f0   :  { %v2020_v60 = vmul.f32 1.442695, %v1986_v0  ;;  %v1987_v62 = vmin.f32 %v1923_v5, 0.0  ;;  %vm1955_vm2 = vcmp.gt.f32.partialorder %v1923_v5, 0.0 }
 0x1f1   :  { %v2016_v19 = vmul.f32 1.442695, %v1984_v1  ;;  %v1985_v56 = vmin.f32 %v1921_v51, 0.0  ;;  %vm1953_vm3 = vcmp.gt.f32.partialorder %v1921_v51, 0.0 }
 0x1f2   :  { %3256 = vpow2.f32 %v2020_v60  ;;  %v2022_v21 = vmul.f32 1.442695, %v1987_v62 }
 0x1f3   :  { %3258 = vpow2.f32 %v2016_v19  ;;  %v2018_v6 = vmul.f32 1.442695, %v1985_v56 }
 0x1f4   :  { %3260 = vpow2.f32 %v2022_v21 }
 0x1f5   :  { %3262 = vpow2.f32 %v2018_v6 }
 0x1f7   :  { %v2958_v15 = vpop.f32.mrb[68].mxu0 }
 0x1f8   :  { %v1650_v22 = vadd.f32 %v2958_v15, %v3799_v39  ;;  %v1080_v23 = vpop.f32.mrb[69].mxu0 }
 0x1f9   :  { %v1642_v25 = vadd.f32 %v3795_v26, %v1080_v23  ;;  %v2959_v28 = vpop.f32.mrb[70].mxu0 }
 0x1fa   :  { %v1653_v3 = vadd.f32 %v2959_v28, %v3801_v45  ;;  %v1811_v4 = vadd.f32 %v3851_v29, %v1650_v22  ;;  %v1083_v10 = vpop.f32.mrb[71].mxu0 }
 0x1fb   :  { %v1645_v1 = vadd.f32 %v3797_v32, %v1083_v10  ;;  %v1803_v60 = vadd.f32 %v3853_v30, %v1642_v25 }
 0x1fc   :  { %v3257_v62 = vpop.eup %3256  ;;  %v3927_v12 = vadd.f32 %v3912_v7, %v1811_v4  ;;  %v1814_v14 = vadd.f32 %v3855_v31, %v1653_v3 }
 0x1fd   :  { %v3259_v39 = vpop.eup %3258  ;;  %v2475_v16 = vadd.f32 -1.0, %v3257_v62  ;;  %v3931_v26 = vadd.f32 %v3912_v7, %v1803_v60  ;;  %v1806_v45 = vadd.f32 %v3857_v34, %v1645_v1 }
 0x1fe   :  { %v3261_v11 = vpop.eup %3260  ;;  %v2473_v29 = vadd.f32 -1.0, %v3259_v39  ;;  %v1990_v32 = vmin.f32 %v3927_v12, 0.0  ;;  %v1927_v30 = vadd.f32 %v3912_v7, %v1814_v14  ;;  %vm1958_vm4 = vcmp.gt.f32.partialorder %v3927_v12, 0.0 }
 0x1ff   :  { %v3263_v0 = vpop.eup %3262  ;;  %v2476_v19 = vadd.f32 -1.0, %v3261_v11  ;;  %v1988_v31 = vmin.f32 %v3931_v26, 0.0  ;;  %v2114_v56 = vsel %vm1954_vm0, %v1922_v20, %v2475_v16  ;;  %v1925_v23 = vadd.f32 %v3912_v7, %v1806_v45 }
 0x200   :  { %v2474_v21 = vadd.f32 -1.0, %v3263_v0  ;;  %v2028_v6 = vmul.f32 1.442695, %v1990_v32  ;;  %v1991_v34 = vmin.f32 %v1927_v30, 0.0  ;;  %v2112_v25 = vsel %vm1952_vm1, %v1920_v13, %v2473_v29 }
 0x201   :  { %v2115_v15 = vsel %vm1955_vm2, %v1923_v5, %v2476_v19  ;;  %v2024_v22 = vmul.f32 1.442695, %v1988_v31  ;;  %v1989_v20 = vmin.f32 %v1925_v23, 0.0  ;;  %vm1959_vm5 = vcmp.gt.f32.partialorder %v1927_v30, 0.0 }
 0x202   :  { %v2577_v28 = vpack.c.bf16 %v2115_v15, %v2114_v56  ;;  %v2113_v3 = vsel %vm1953_vm3, %v1921_v51, %v2474_v21  ;;  %3264 = vpow2.f32 %v2028_v6  ;;  %v2030_v10 = vmul.f32 1.442695, %v1991_v34 }
 0x203   :  { %v2572_v4 = vpack.c.bf16 %v2113_v3, %v2112_v25  ;;  %3266 = vpow2.f32 %v2024_v22  ;;  %v2026_v5 = vmul.f32 1.442695, %v1989_v20  ;;  %vm1956_vm6 = vcmp.gt.f32.partialorder %v3931_v26, 0.0 }
 0x204   :  { %2649 = vst [vmem:[%s4168_s6 + $0x8] sm:$0xff] %v2577_v28   ;;  %3268 = vpow2.f32 %v2030_v10  ;;  %vm1957_vm7 = vcmp.gt.f32.partialorder %v1925_v23, 0.0 }
 0x205   :  { %2573 = vst [vmem:[%s4168_s6] sm:$0xff] %v2572_v4   ;;  %3270 = vpow2.f32 %v2026_v5 }
 0x207   :  { %v2962_v1 = vpop.f32.mrb[72].mxu0 }
 0x208   :  { %v1666_v13 = vadd.f32 %v2962_v1, %v3807_v2  ;;  %v1096_v51 = vpop.f32.mrb[73].mxu0 }
 0x209   :  { %v1658_v60 = vadd.f32 %v3803_v52, %v1096_v51  ;;  %v2963_v62 = vpop.f32.mrb[74].mxu0 }
 0x20a   :  { %v1669_v14 = vadd.f32 %v2963_v62, %v3809_v9  ;;  %v1827_v39 = vadd.f32 %v3859_v35, %v1666_v13  ;;  %v1099_v16 = vpop.f32.mrb[75].mxu0 }
 0x20b   :  { %v1661_v45 = vadd.f32 %v3805_v58, %v1099_v16  ;;  %v1819_v11 = vadd.f32 %v3861_v37, %v1658_v60 }
 0x20c   :  { %v3265_v29 = vpop.eup %3264  ;;  %v3951_v32 = vadd.f32 %v3912_v7, %v1827_v39  ;;  %v1830_v0 = vadd.f32 %v3863_v38, %v1669_v14 }
 0x20d   :  { %v3955_v2 = vadd.f32 %v3912_v7, %v1819_v11  ;;  %v1822_v52 = vadd.f32 %v3865_v41, %v1661_v45  ;;  %v3267_v19 = vpop.eup %3266  ;;  %v2479_v9 = vadd.f32 -1.0, %v3265_v29 }
 0x20e   :  { %v1994_v35 = vmin.f32 %v3951_v32, 0.0  ;;  %v3960_v31 = vadd.f32 %v3912_v7, %v1830_v0  ;;  %v3269_v58 = vpop.eup %3268  ;;  %v2477_v6 = vadd.f32 -1.0, %v3267_v19  ;;  %vm1962_vm8 = vcmp.gt.f32.partialorder %v3951_v32, 0.0 }
 0x20f   :  { %v1992_v37 = vmin.f32 %v3955_v2, 0.0  ;;  %v3964_v56 = vadd.f32 %v3912_v7, %v1822_v52  ;;  %v2480_v38 = vadd.f32 -1.0, %v3269_v58  ;;  %v3271_v34 = vpop.eup %3270  ;;  %v2118_v25 = vsel %vm1958_vm4, %v3927_v12, %v2479_v9 }
 0x210   :  { %v2036_v21 = vmul.f32 1.442695, %v1994_v35  ;;  %v1995_v15 = vmin.f32 %v3960_v31, 0.0  ;;  %v2478_v4 = vadd.f32 -1.0, %v3271_v34  ;;  %v2116_v5 = vsel %vm1956_vm6, %v3931_v26, %v2477_v6 }
 0x211   :  { %v2032_v41 = vmul.f32 1.442695, %v1992_v37  ;;  %v1993_v22 = vmin.f32 %v3964_v56, 0.0  ;;  %v2119_v28 = vsel %vm1959_vm5, %v1927_v30, %v2480_v38  ;;  %vm1960_vm9 = vcmp.gt.f32.partialorder %v3955_v2, 0.0 }
 0x212   :  { %3272 = vpow2.f32 %v2036_v21  ;;  %v2587_v3 = vpack.c.bf16 %v2119_v28, %v2118_v25  ;;  %v2038_v10 = vmul.f32 1.442695, %v1995_v15  ;;  %v2117_v1 = vsel %vm1957_vm7, %v1925_v23, %v2478_v4 }
 0x213   :  { %3274 = vpow2.f32 %v2032_v41  ;;  %v2034_v20 = vmul.f32 1.442695, %v1993_v22  ;;  %v2582_v13 = vpack.c.bf16 %v2117_v1, %v2116_v5  ;;  %vm1963_vm10 = vcmp.gt.f32.partialorder %v3960_v31, 0.0 }
 0x214   :  { %2651 = vst [vmem:[%s4168_s6 + $0x18] sm:$0xff] %v2587_v3   ;;  %3276 = vpow2.f32 %v2038_v10  ;;  %vm1961_vm11 = vcmp.gt.f32.partialorder %v3964_v56, 0.0 }
 0x215   :  { %3278 = vpow2.f32 %v2034_v20  ;;  %2650 = vst [vmem:[%s4168_s6 + $0x10] sm:$0xff] %v2582_v13  }
 0x217   :  { %v2966_v12 = vpop.f32.mrb[76].mxu0 }
 0x218   :  { %v1682_v30 = vadd.f32 %v2966_v12, %v3815_v33  ;;  %v1112_v51 = vpop.f32.mrb[77].mxu0 }
 0x219   :  { %v1674_v60 = vadd.f32 %v3811_v17, %v1112_v51  ;;  %v2967_v62 = vpop.f32.mrb[78].mxu0 }
 0x21a   :  { %v1685_v26 = vadd.f32 %v2967_v62, %v3817_v40  ;;  %v1843_v14 = vadd.f32 %v3867_v42, %v1682_v30  ;;  %v1115_v39 = vpop.f32.mrb[79].mxu0 }
 0x21b   :  { %v1677_v23 = vadd.f32 %v3813_v24, %v1115_v39  ;;  %v1835_v16 = vadd.f32 %v3869_v43, %v1674_v60 }
 0x21c   :  { %v3273_v45 = vpop.eup %3272  ;;  %v3985_v11 = vadd.f32 %v3912_v7, %v1843_v14  ;;  %v1846_v29 = vadd.f32 %v3871_v46, %v1685_v26 }
 0x21d   :  { %v3275_v33 = vpop.eup %3274  ;;  %v2483_v0 = vadd.f32 -1.0, %v3273_v45  ;;  %v3989_v17 = vadd.f32 %v3912_v7, %v1835_v16  ;;  %v1838_v40 = vadd.f32 %v3873_v47, %v1677_v23 }
 0x21e   :  { %v2481_v52 = vadd.f32 -1.0, %v3275_v33  ;;  %v1998_v42 = vmin.f32 %v3985_v11, 0.0  ;;  %v3994_v24 = vadd.f32 %v3912_v7, %v1846_v29  ;;  %v3277_v43 = vpop.eup %3276  ;;  %vm1966_vm12 = vcmp.gt.f32.partialorder %v3985_v11, 0.0 }
 0x21f   :  { %v1996_v46 = vmin.f32 %v3989_v17, 0.0  ;;  %v4000_v19 = vadd.f32 %v3912_v7, %v1838_v40  ;;  %v3279_v9 = vpop.eup %3278  ;;  %v2484_v47 = vadd.f32 -1.0, %v3277_v43  ;;  %v2122_v58 = vsel %vm1962_vm8, %v3951_v32, %v2483_v0 }
 0x220   :  { %v2044_v35 = vmul.f32 1.442695, %v1998_v42  ;;  %v2482_v37 = vadd.f32 -1.0, %v3279_v9  ;;  %v1999_v21 = vmin.f32 %v3994_v24, 0.0  ;;  %v2120_v6 = vsel %vm1960_vm9, %v3955_v2, %v2481_v52 }
 0x221   :  { %v2040_v38 = vmul.f32 1.442695, %v1996_v46  ;;  %v2123_v41 = vsel %vm1963_vm10, %v3960_v31, %v2484_v47  ;;  %v1997_v15 = vmin.f32 %v4000_v19, 0.0  ;;  %vm1964_vm13 = vcmp.gt.f32.partialorder %v3989_v17, 0.0 }
 0x222   :  { %3280 = vpow2.f32 %v2044_v35  ;;  %v2597_v22 = vpack.c.bf16 %v2123_v41, %v2122_v58  ;;  %v2121_v34 = vsel %vm1961_vm11, %v3964_v56, %v2482_v37  ;;  %v2046_v25 = vmul.f32 1.442695, %v1999_v21 }
 0x223   :  { %3282 = vpow2.f32 %v2040_v38  ;;  %v2592_v28 = vpack.c.bf16 %v2121_v34, %v2120_v6  ;;  %v2042_v3 = vmul.f32 1.442695, %v1997_v15  ;;  %vm1967_vm14 = vcmp.gt.f32.partialorder %v3994_v24, 0.0  ;;  %v4186_v34 = vld [vmem:[#allocation12_spill] sm:$0xff] }
 0x224   :  { %2653 = vst [vmem:[%s4168_s6 + $0x28] sm:$0xff] %v2597_v22   ;;  %3284 = vpow2.f32 %v2046_v25  ;;  %vm1965_vm15 = vcmp.gt.f32.partialorder %v4000_v19, 0.0 }
 0x225   :  { %2652 = vst [vmem:[%s4168_s6 + $0x20] sm:$0xff] %v2592_v28   ;;  %3286 = vpow2.f32 %v2042_v3 }
 0x227   :  { %v2970_v32 = vpop.f32.mrb[80].mxu0 }
 0x228   :  { %v1698_v2 = vadd.f32 %v2970_v32, %v3823_v63  ;;  %v1128_v31 = vpop.f32.mrb[81].mxu0 }
 0x229   :  { %v1690_v56 = vadd.f32 %v3819_v48, %v1128_v31  ;;  %v2971_v4 = vpop.f32.mrb[82].mxu0 }
 0x22a   :  { %v1701_v10 = vadd.f32 %v2971_v4, %v3825_v8  ;;  %v1859_v20 = vadd.f32 %v3875_v49, %v1698_v2  ;;  %v1131_v5 = vpop.f32.mrb[83].mxu0 }
 0x22b   :  { %v1693_v1 = vadd.f32 %v3821_v55, %v1131_v5  ;;  %v1851_v13 = vadd.f32 %v3877_v50, %v1690_v56 }
 0x22c   :  { %v3281_v12 = vpop.eup %3280  ;;  %v4023_v30 = vadd.f32 %v3912_v7, %v1859_v20  ;;  %v1862_v51 = vadd.f32 %v3879_v53, %v1701_v10 }
 0x22d   :  { %v3283_v63 = vpop.eup %3282  ;;  %v2487_v60 = vadd.f32 -1.0, %v3281_v12  ;;  %v4027_v48 = vadd.f32 %v3912_v7, %v1851_v13  ;;  %v1854_v8 = vadd.f32 %v3881_v54, %v1693_v1 }
 0x22e   :  { %v2485_v62 = vadd.f32 -1.0, %v3283_v63  ;;  %v2002_v49 = vmin.f32 %v4023_v30, 0.0  ;;  %v4032_v55 = vadd.f32 %v3912_v7, %v1862_v51  ;;  %v3285_v50 = vpop.eup %3284  ;;  %vm1970_vm0 = vcmp.gt.f32.partialorder %v4023_v30, 0.0 }
 0x22f   :  { %v2000_v53 = vmin.f32 %v4027_v48, 0.0  ;;  %v4038_v26 = vadd.f32 %v3912_v7, %v1854_v8  ;;  %v3287_v14 = vpop.eup %3286  ;;  %v2488_v54 = vadd.f32 -1.0, %v3285_v50  ;;  %v2126_v23 = vsel %vm1966_vm12, %v3985_v11, %v2487_v60 }
 0x230   :  { %v2052_v39 = vmul.f32 1.442695, %v2002_v49  ;;  %v2486_v16 = vadd.f32 -1.0, %v3287_v14  ;;  %v2003_v29 = vmin.f32 %v4032_v55, 0.0  ;;  %v2124_v33 = vsel %vm1964_vm13, %v3989_v17, %v2485_v62  ;;  %v4188_v49 = vld [vmem:[#allocation4_spill] sm:$0xff]  ;;  %v4190_v14 = vld [vmem:[#allocation13_spill] sm:$0xff] }
 0x231   :  { %v2048_v45 = vmul.f32 1.442695, %v2000_v53  ;;  %v2127_v0 = vsel %vm1967_vm14, %v3994_v24, %v2488_v54  ;;  %v2001_v40 = vmin.f32 %v4038_v26, 0.0  ;;  %vm1968_vm1 = vcmp.gt.f32.partialorder %v4027_v48, 0.0  ;;  %v4189_v53 = vld [vmem:[#allocation7_spill] sm:$0xff] }
 0x232   :  { %3288 = vpow2.f32 %v2052_v39  ;;  %v2607_v52 = vpack.c.bf16 %v2127_v0, %v2126_v23  ;;  %v2125_v42 = vsel %vm1965_vm15, %v4000_v19, %v2486_v16  ;;  %v2054_v43 = vmul.f32 1.442695, %v2003_v29  ;;  %v4191_v23 = vld [vmem:[#allocation5_spill] sm:$0xff] }
 0x233   :  { %3290 = vpow2.f32 %v2048_v45  ;;  %v2602_v46 = vpack.c.bf16 %v2125_v42, %v2124_v33  ;;  %v2050_v9 = vmul.f32 1.442695, %v2001_v40  ;;  %vm1971_vm2 = vcmp.gt.f32.partialorder %v4032_v55, 0.0  ;;  %v4192_v45 = vld [vmem:[#allocation14_spill] sm:$0xff]  ;;  %v4193_v40 = vld [vmem:[#allocation15_spill] sm:$0xff] }
 0x234   :  { %2655 = vst [vmem:[%s4168_s6 + $0x38] sm:$0xff] %v2607_v52   ;;  %3292 = vpow2.f32 %v2054_v43  ;;  %vm1969_vm3 = vcmp.gt.f32.partialorder %v4038_v26, 0.0 }
 0x235   :  { %2654 = vst [vmem:[%s4168_s6 + $0x30] sm:$0xff] %v2602_v46   ;;  %3294 = vpow2.f32 %v2050_v9  ;;  %v4194_v9 = vld [vmem:[#allocation16_spill] sm:$0xff] }
 0x237   :  { %v2974_v11 = vpop.f32.mrb[84].mxu0 }
 0x238   :  { %v1714_v17 = vadd.f32 %v2974_v11, %v3831_v36  ;;  %v1144_v24 = vpop.f32.mrb[85].mxu0 }
 0x239   :  { %v1706_v19 = vadd.f32 %v3827_v18, %v1144_v24  ;;  %v2975_v47 = vpop.f32.mrb[86].mxu0 }
 0x23a   :  { %v1717_v35 = vadd.f32 %v2975_v47, %v3833_v44  ;;  %v1875_v58 = vadd.f32 %v3883_v57, %v1714_v17  ;;  %v1147_v37 = vpop.f32.mrb[87].mxu0 }
 0x23b   :  { %v1709_v38 = vadd.f32 %v3829_v27, %v1147_v37  ;;  %v1867_v21 = vadd.f32 %v3885_v59, %v1706_v19 }
 0x23c   :  { %v3289_v6 = vpop.eup %3288  ;;  %v4061_v41 = vadd.f32 %v3912_v7, %v1875_v58  ;;  %v1878_v15 = vadd.f32 %v3887_v61, %v1717_v35 }
 0x23d   :  { %v3291_v36 = vpop.eup %3290  ;;  %v2491_v22 = vadd.f32 -1.0, %v3289_v6  ;;  %v4065_v18 = vadd.f32 %v3912_v7, %v1867_v21  ;;  %v1870_v44 = vadd.f32 %v4186_v34, %v1709_v38 }
 0x23e   :  { %v2489_v25 = vadd.f32 -1.0, %v3291_v36  ;;  %v2006_v57 = vmin.f32 %v4061_v41, 0.0  ;;  %v4070_v27 = vadd.f32 %v3912_v7, %v1878_v15  ;;  %v3293_v59 = vpop.eup %3292  ;;  %vm1974_vm4 = vcmp.gt.f32.partialorder %v4061_v41, 0.0 }
 0x23f   :  { %v2004_v61 = vmin.f32 %v4065_v18, 0.0  ;;  %v4076_v28 = vadd.f32 %v3912_v7, %v1870_v44  ;;  %v3295_v3 = vpop.eup %3294  ;;  %v2492_v32 = vadd.f32 -1.0, %v3293_v59  ;;  %v2130_v31 = vsel %vm1970_vm0, %v4023_v30, %v2491_v22 }
 0x240   :  { %v2060_v2 = vmul.f32 1.442695, %v2006_v57  ;;  %v2490_v56 = vadd.f32 -1.0, %v3295_v3  ;;  %v2007_v10 = vmin.f32 %v4070_v27, 0.0  ;;  %v2128_v20 = vsel %vm1968_vm1, %v4027_v48, %v2489_v25  ;;  %v4187_v48 = vld [vmem:[#allocation6_spill] sm:$0xff] }
 0x241   :  { %v2056_v4 = vmul.f32 1.442695, %v2004_v61  ;;  %v2131_v5 = vsel %vm1971_vm2, %v4032_v55, %v2492_v32  ;;  %v2005_v1 = vmin.f32 %v4076_v28, 0.0  ;;  %vm1972_vm5 = vcmp.gt.f32.partialorder %v4065_v18, 0.0 }
 0x242   :  { %3296 = vpow2.f32 %v2060_v2  ;;  %v2617_v13 = vpack.c.bf16 %v2131_v5, %v2130_v31  ;;  %v2129_v12 = vsel %vm1969_vm3, %v4038_v26, %v2490_v56  ;;  %v2062_v51 = vmul.f32 1.442695, %v2007_v10  ;;  %v4196_v31 = vld [vmem:[#allocation8_spill] sm:$0xff] }
 0x243   :  { %3298 = vpow2.f32 %v2056_v4  ;;  %v2612_v63 = vpack.c.bf16 %v2129_v12, %v2128_v20  ;;  %v2058_v60 = vmul.f32 1.442695, %v2005_v1  ;;  %vm1975_vm6 = vcmp.gt.f32.partialorder %v4070_v27, 0.0  ;;  %v4197_v4 = vld [vmem:[#allocation17_spill] sm:$0xff]  ;;  %v4198_v20 = vld [vmem:[#allocation11_spill] sm:$0xff] }
 0x244   :  { %2657 = vst [vmem:[%s4168_s6 + $0x48] sm:$0xff] %v2617_v13   ;;  %3300 = vpow2.f32 %v2062_v51  ;;  %vm1973_vm7 = vcmp.gt.f32.partialorder %v4076_v28, 0.0  ;;  %v4199_v13 = vld [vmem:[#allocation18_spill] sm:$0xff]  ;;  %v4200_v51 = vld [vmem:[#allocation9_spill] sm:$0xff] }
 0x245   :  { %2656 = vst [vmem:[%s4168_s6 + $0x40] sm:$0xff] %v2612_v63   ;;  %3302 = vpow2.f32 %v2058_v60 }
 0x247   :  { %v2978_v30 = vpop.f32.mrb[88].mxu0 }
 0x248   :  { %v1730_v8 = vadd.f32 %v2978_v30, %v4187_v48  ;;  %v1160_v62 = vpop.f32.mrb[89].mxu0  ;;  %v4201_v48 = vld [vmem:[#allocation19_spill] sm:$0xff] }
 0x249   :  { %v1722_v55 = vadd.f32 %v4188_v49, %v1160_v62  ;;  %v2979_v50 = vpop.f32.mrb[90].mxu0 }
 0x24a   :  { %v1733_v26 = vadd.f32 %v2979_v50, %v4189_v53  ;;  %v1891_v54 = vadd.f32 %v4190_v14, %v1730_v8  ;;  %v1163_v39 = vpop.f32.mrb[91].mxu0  ;;  %v4202_v50 = vld [vmem:[#allocation20_spill] sm:$0xff] }
 0x24b   :  { %v1725_v16 = vadd.f32 %v4191_v23, %v1163_v39  ;;  %v1883_v29 = vadd.f32 %v4192_v45, %v1722_v55 }
 0x24c   :  { %v3297_v33 = vpop.eup %3296  ;;  %v4099_v0 = vadd.f32 %v3912_v7, %v1891_v54  ;;  %v1894_v52 = vadd.f32 %v4193_v40, %v1733_v26 }
 0x24d   :  { %v3299_v42 = vpop.eup %3298  ;;  %v2495_v43 = vadd.f32 -1.0, %v3297_v33  ;;  %v4103_v46 = vadd.f32 %v3912_v7, %v1883_v29  ;;  %v1886_v11 = vadd.f32 %v4194_v9, %v1725_v16 }
 0x24e   :  { %v2493_v17 = vadd.f32 -1.0, %v3299_v42  ;;  %v2010_v24 = vmin.f32 %v4099_v0, 0.0  ;;  %v4108_v19 = vadd.f32 %v3912_v7, %v1894_v52  ;;  %v3301_v47 = vpop.eup %3300  ;;  %vm1978_vm8 = vcmp.gt.f32.partialorder %v4099_v0, 0.0 }
 0x24f   :  { %v2008_v35 = vmin.f32 %v4103_v46, 0.0  ;;  %v4114_v58 = vadd.f32 %v3912_v7, %v1886_v11  ;;  %v3303_v37 = vpop.eup %3302  ;;  %v2496_v38 = vadd.f32 -1.0, %v3301_v47  ;;  %v2134_v6 = vsel %vm1974_vm4, %v4061_v41, %v2495_v43 }
 0x250   :  { %v2068_v21 = vmul.f32 1.442695, %v2010_v24  ;;  %v2494_v15 = vadd.f32 -1.0, %v3303_v37  ;;  %v2011_v22 = vmin.f32 %v4108_v19, 0.0  ;;  %v2132_v34 = vsel %vm1972_vm5, %v4065_v18, %v2493_v17  ;;  %v4195_v18 = vld [vmem:[#allocation10_spill] sm:$0xff] }
 0x251   :  { %v2064_v36 = vmul.f32 1.442695, %v2008_v35  ;;  %v2135_v44 = vsel %vm1975_vm6, %v4070_v27, %v2496_v38  ;;  %v2009_v25 = vmin.f32 %v4114_v58, 0.0  ;;  %vm1976_vm9 = vcmp.gt.f32.partialorder %v4103_v46, 0.0 }
 0x252   :  { %3304 = vpow2.f32 %v2068_v21  ;;  %v2627_v57 = vpack.c.bf16 %v2135_v44, %v2134_v6  ;;  %v2133_v59 = vsel %vm1973_vm7, %v4076_v28, %v2494_v15  ;;  %v2070_v61 = vmul.f32 1.442695, %v2011_v22 }
 0x253   :  { %3306 = vpow2.f32 %v2064_v36  ;;  %v2622_v3 = vpack.c.bf16 %v2133_v59, %v2132_v34  ;;  %v2066_v32 = vmul.f32 1.442695, %v2009_v25  ;;  %vm1979_vm10 = vcmp.gt.f32.partialorder %v4108_v19, 0.0 }
 0x254   :  { %2659 = vst [vmem:[%s4168_s6 + $0x58] sm:$0xff] %v2627_v57   ;;  %3308 = vpow2.f32 %v2070_v61  ;;  %vm1977_vm11 = vcmp.gt.f32.partialorder %v4114_v58, 0.0 }
 0x255   :  { %2658 = vst [vmem:[%s4168_s6 + $0x50] sm:$0xff] %v2622_v3   ;;  %3310 = vpow2.f32 %v2066_v32 }
 0x257   :  { %v2982_v41 = vpop.f32.mrb[92].mxu0 }
 0x258   :  { %v1746_v27 = vadd.f32 %v2982_v41, %v4195_v18  ;;  %v1176_v2 = vpop.f32.mrb[93].mxu0 }
 0x259   :  { %v1738_v28 = vadd.f32 %v4196_v31, %v1176_v2  ;;  %v2983_v56 = vpop.f32.mrb[94].mxu0 }
 0x25a   :  { %v1907_v10 = vadd.f32 %v4197_v4, %v1746_v27  ;;  %v1749_v5 = vadd.f32 %v2983_v56, %v4198_v20  ;;  %v1179_v1 = vpop.f32.mrb[95].mxu0 }
 0x25b   :  { %v1899_v12 = vadd.f32 %v4199_v13, %v1738_v28  ;;  %v1741_v63 = vadd.f32 %v4200_v51, %v1179_v1 }
 0x25c   :  { %v3305_v60 = vpop.eup %3304  ;;  %v1950_v30 = vadd.f32 %v3912_v7, %v1907_v10  ;;  %v1910_v8 = vadd.f32 %v4201_v48, %v1749_v5 }
 0x25d   :  { %v3307_v62 = vpop.eup %3306  ;;  %v2499_v49 = vadd.f32 -1.0, %v3305_v60  ;;  %v1948_v55 = vadd.f32 %v3912_v7, %v1899_v12  ;;  %v1902_v53 = vadd.f32 %v4202_v50, %v1741_v63 }
 0x25e   :  { %v2497_v26 = vadd.f32 -1.0, %v3307_v62  ;;  %v2014_v14 = vmin.f32 %v1950_v30, 0.0  ;;  %v1951_v54 = vadd.f32 %v3912_v7, %v1910_v8  ;;  %v3309_v39 = vpop.eup %3308  ;;  %vm1982_vm12 = vcmp.gt.f32.partialorder %v1950_v30, 0.0 }
 0x25f   :  { %v2012_v23 = vmin.f32 %v1948_v55, 0.0  ;;  %v1949_v16 = vadd.f32 %v3912_v7, %v1902_v53  ;;  %v3311_v45 = vpop.eup %3310  ;;  %v2500_v29 = vadd.f32 -1.0, %v3309_v39  ;;  %v2138_v40 = vsel %vm1978_vm8, %v4099_v0, %v2499_v49 }
 0x260   :  { %v2076_v33 = vmul.f32 1.442695, %v2014_v14  ;;  %v2498_v52 = vadd.f32 -1.0, %v3311_v45  ;;  %v2015_v43 = vmin.f32 %v1951_v54, 0.0  ;;  %v2136_v9 = vsel %vm1976_vm9, %v4103_v46, %v2497_v26 }
 0x261   :  { %v2072_v42 = vmul.f32 1.442695, %v2012_v23  ;;  %v2139_v11 = vsel %vm1979_vm10, %v4108_v19, %v2500_v29  ;;  %v2013_v17 = vmin.f32 %v1949_v16, 0.0  ;;  %vm1983_vm13 = vcmp.gt.f32.partialorder %v1951_v54, 0.0 }
 0x262   :  { %3312 = vpow2.f32 %v2076_v33  ;;  %v2637_v24 = vpack.c.bf16 %v2139_v11, %v2138_v40  ;;  %v2137_v7 = vsel %vm1977_vm11, %v4114_v58, %v2498_v52  ;;  %v2078_v47 = vmul.f32 1.442695, %v2015_v43 }
 0x263   :  { %3314 = vpow2.f32 %v2072_v42  ;;  %v2632_v35 = vpack.c.bf16 %v2137_v7, %v2136_v9  ;;  %v2074_v37 = vmul.f32 1.442695, %v2013_v17  ;;  %vm1980_vm14 = vcmp.gt.f32.partialorder %v1948_v55, 0.0 }
 0x264   :  { %2661 = vst [vmem:[%s4168_s6 + $0x68] sm:$0xff] %v2637_v24   ;;  %3316 = vpow2.f32 %v2078_v47  ;;  %vm1981_vm15 = vcmp.gt.f32.partialorder %v1949_v16, 0.0 }
 0x265   :  { %2660 = vst [vmem:[%s4168_s6 + $0x60] sm:$0xff] %v2632_v35   ;;  %3318 = vpow2.f32 %v2074_v37 }
 0x26c   :  { %v3313_v0 = vpop.eup %3312 }
 0x26d   :  { %v3315_v46 = vpop.eup %3314  ;;  %v2503_v19 = vadd.f32 -1.0, %v3313_v0 }
 0x26e   :  { %v3317_v38 = vpop.eup %3316  ;;  %v2501_v21 = vadd.f32 -1.0, %v3315_v46 }
 0x26f   :  { %v3319_v58 = vpop.eup %3318  ;;  %v2504_v6 = vadd.f32 -1.0, %v3317_v38  ;;  %v2142_v36 = vsel %vm1982_vm12, %v1950_v30, %v2503_v19 }
 0x270   :  { %v2502_v15 = vadd.f32 -1.0, %v3319_v58  ;;  %v2140_v34 = vsel %vm1980_vm14, %v1948_v55, %v2501_v21 }
 0x271   :  { %v2143_v22 = vsel %vm1983_vm13, %v1951_v54, %v2504_v6 }
 0x272   :  { %v2647_v44 = vpack.c.bf16 %v2143_v22, %v2142_v36  ;;  %v2141_v25 = vsel %vm1981_vm15, %v1949_v16, %v2502_v15 }
 0x273   :  { %v2642_v57 = vpack.c.bf16 %v2141_v25, %v2140_v34 }
 0x274   :  { %2663 = vst [vmem:[%s4168_s6 + $0x78] sm:$0xff] %v2647_v44  }
 0x275   :  { %2662 = vst [vmem:[%s4168_s6 + $0x70] sm:$0xff] %v2642_v57  }

// kernel: tag_linear_forward.11
= control target key start
LH: loop header
LB: loop body
LE: loop exit
PB: predicated region body
PF: predicated region fallthrough
CT: control target
= control target key end

     0   :  { %s5207_s0 = inlined_call_operand.vmem [shape: bf16[256,256], index: 0, kind: input, shape index: {}]   ;;  %s5208_s1 = inlined_call_operand.vmem [shape: bf16[256,384], index: 1, kind: input, shape index: {}, may-alias: {1,2}]   ;;  %s5209_s2 = inlined_call_operand.vmem [shape: bf16[256,384], index: 2, kind: input, shape index: {}, may-alias: {1,2}]   ;;  %s5210_s3 = inlined_call_operand.vmem [shape: bf16[384,128], index: 3, kind: input, shape index: {}]   ;;  %s5211_s4 = inlined_call_operand.vmem [shape: bf16[128,128], index: 4, kind: input, shape index: {}]   ;;  %s5212_s5 = inlined_call_operand.vmem [shape: f32[1,128], index: 5, kind: input, shape index: {}]   ;;  %s5213_s6 = inlined_call_operand.vmem [shape: bf16[128,128], index: 6, kind: input, shape index: {}]   ;;  %s5214_s7 = inlined_call_operand.vmem [shape: f32[1,128], index: 7, kind: input, shape index: {}]   ;;  %s5215_s8 = inlined_call_operand.vmem [shape: f32[256,128], index: 8, kind: output, shape index: {}]  }
   0x1   :  { %v2809_v0 = vld [vmem:[%s5209_s2 + $0xc8] sm:$0xf]  ;;  %v2810_v1 = vld [vmem:[%s5209_s2 + $0xd4] sm:$0xf]  ;;  %v2811_v4 = vld [vmem:[%s5209_s2 + $0xe0] sm:$0xf] }
   0x2   :  { %v2793_v2 = vld [vmem:[%s5209_s2 + $0x8] sm:$0xf]  ;;  %68 = vst [vmem:[#allocation3 + $0x40] sm:$0xf] %v2809_v0  ;;  %70 = vst [vmem:[#allocation3 + $0x44] sm:$0xf] %v2810_v1 }
   0x3   :  { %36 = vst [vmem:[#allocation3] sm:$0xf] %v2793_v2  ;;  %v2794_v3 = vld [vmem:[%s5209_s2 + $0x14] sm:$0xf]  ;;  %v2812_v5 = vld [vmem:[%s5209_s2 + $0xec] sm:$0xf] }
   0x4   :  { %38 = vst [vmem:[#allocation3 + $0x4] sm:$0xf] %v2794_v3  ;;  %72 = vst [vmem:[#allocation3 + $0x48] sm:$0xf] %v2811_v4  ;;  %v2795_v6 = vld [vmem:[%s5209_s2 + $0x20] sm:$0xf] }
   0x5   :  { %74 = vst [vmem:[#allocation3 + $0x4c] sm:$0xf] %v2812_v5  ;;  %v2796_v7 = vld [vmem:[%s5209_s2 + $0x2c] sm:$0xf]  ;;  %v2813_v8 = vld [vmem:[%s5209_s2 + $0xf8] sm:$0xf] }
   0x6   :  { %40 = vst [vmem:[#allocation3 + $0x8] sm:$0xf] %v2795_v6  ;;  %42 = vst [vmem:[#allocation3 + $0xc] sm:$0xf] %v2796_v7  ;;  %v2814_v9 = vld [vmem:[%s5209_s2 + $0x104] sm:$0xf] }
   0x7   :  { %76 = vst [vmem:[#allocation3 + $0x50] sm:$0xf] %v2813_v8  ;;  %v2797_v10 = vld [vmem:[%s5209_s2 + $0x38] sm:$0xf]  ;;  %v2798_v11 = vld [vmem:[%s5209_s2 + $0x44] sm:$0xf] }
   0x8   :  { %78 = vst [vmem:[#allocation3 + $0x54] sm:$0xf] %v2814_v9  ;;  %44 = vst [vmem:[#allocation3 + $0x10] sm:$0xf] %v2797_v10  ;;  %v2815_v12 = vld [vmem:[%s5209_s2 + $0x110] sm:$0xf] }
   0x9   :  { %46 = vst [vmem:[#allocation3 + $0x14] sm:$0xf] %v2798_v11  ;;  %v2816_v13 = vld [vmem:[%s5209_s2 + $0x11c] sm:$0xf]  ;;  %v2799_v14 = vld [vmem:[%s5209_s2 + $0x50] sm:$0xf] }
   0xa   :  { %80 = vst [vmem:[#allocation3 + $0x58] sm:$0xf] %v2815_v12  ;;  %82 = vst [vmem:[#allocation3 + $0x5c] sm:$0xf] %v2816_v13  ;;  %v2800_v15 = vld [vmem:[%s5209_s2 + $0x5c] sm:$0xf] }
   0xb   :  { %48 = vst [vmem:[#allocation3 + $0x18] sm:$0xf] %v2799_v14  ;;  %v2817_v16 = vld [vmem:[%s5209_s2 + $0x128] sm:$0xf]  ;;  %v2818_v17 = vld [vmem:[%s5209_s2 + $0x134] sm:$0xf] }
   0xc   :  { %50 = vst [vmem:[#allocation3 + $0x1c] sm:$0xf] %v2800_v15  ;;  %84 = vst [vmem:[#allocation3 + $0x60] sm:$0xf] %v2817_v16  ;;  %v2801_v18 = vld [vmem:[%s5209_s2 + $0x68] sm:$0xf] }
   0xd   :  { %86 = vst [vmem:[#allocation3 + $0x64] sm:$0xf] %v2818_v17  ;;  %v2802_v19 = vld [vmem:[%s5209_s2 + $0x74] sm:$0xf]  ;;  %v2819_v20 = vld [vmem:[%s5209_s2 + $0x140] sm:$0xf] }
   0xe   :  { %52 = vst [vmem:[#allocation3 + $0x20] sm:$0xf] %v2801_v18  ;;  %54 = vst [vmem:[#allocation3 + $0x24] sm:$0xf] %v2802_v19  ;;  %v2820_v21 = vld [vmem:[%s5209_s2 + $0x14c] sm:$0xf] }
   0xf   :  { %88 = vst [vmem:[#allocation3 + $0x68] sm:$0xf] %v2819_v20  ;;  %v2803_v22 = vld [vmem:[%s5209_s2 + $0x80] sm:$0xf]  ;;  %v2804_v23 = vld [vmem:[%s5209_s2 + $0x8c] sm:$0xf] }
  0x10   :  { %v3515_v24 = vld [vmem:[#allocation3 + $0x40] sm:$0xff]   ;;  %90 = vst [vmem:[#allocation3 + $0x6c] sm:$0xf] %v2820_v21  ;;  %56 = vst [vmem:[#allocation3 + $0x28] sm:$0xf] %v2803_v22  ;;  %v3517_v26 = vld [vmem:[#allocation3 + $0x48] sm:$0xff]  }
  0x11   :  { %58 = vst [vmem:[#allocation3 + $0x2c] sm:$0xf] %v2804_v23  ;;  %v3516_v25 = vld [vmem:[#allocation3] sm:$0xff]   ;;  %2995 = vmatprep.subr.bf16.mxu0 %v3515_v24  ;;  %v3518_v27 = vld [vmem:[#allocation3 + $0x8] sm:$0xff]   ;;  %v3519_v28 = vld [vmem:[#allocation3 + $0x50] sm:$0xff]  }
  0x12   :  { %2996 = vmatpush3.bf16.msra.mxu0 %v3516_v25  ;;  %v3520_v29 = vld [vmem:[#allocation3 + $0x10] sm:$0xff]   ;;  %v3521_v30 = vld [vmem:[#allocation3 + $0x58] sm:$0xff]   ;;  %v2822_v34 = vld [vmem:[%s5209_s2 + $0x164] sm:$0xf] }
  0x13   :  { %2997 = vmatprep.subr.bf16.mxu0 %v3517_v26  ;;  %v3522_v31 = vld [vmem:[#allocation3 + $0x18] sm:$0xff]   ;;  %94 = vst [vmem:[#allocation3 + $0x74] sm:$0xf] %v2822_v34  ;;  %v2806_v36 = vld [vmem:[%s5209_s2 + $0xa4] sm:$0xf]  ;;  %v3580_v54 = vld [vmem:[%s5211_s4 + $0x8] sm:$0xff]  }
  0x14   :  { %v3523_v32 = vld [vmem:[#allocation3 + $0x60] sm:$0xff]   ;;  %v2821_v33 = vld [vmem:[%s5209_s2 + $0x158] sm:$0xf]  ;;  %v2823_v37 = vld [vmem:[%s5209_s2 + $0x170] sm:$0xf] }
  0x15   :  { %v2805_v35 = vld [vmem:[%s5209_s2 + $0x98] sm:$0xf]  ;;  %92 = vst [vmem:[#allocation3 + $0x70] sm:$0xf] %v2821_v33  ;;  %v2824_v38 = vld [vmem:[%s5209_s2 + $0x17c] sm:$0xf] }
  0x16   :  { %2998 = vmatpush3.bf16.msra.mxu0 %v3518_v27  ;;  %60 = vst [vmem:[#allocation3 + $0x30] sm:$0xf] %v2805_v35  ;;  %62 = vst [vmem:[#allocation3 + $0x34] sm:$0xf] %v2806_v36  ;;  %v2807_v39 = vld [vmem:[%s5209_s2 + $0xb0] sm:$0xf] }
  0x17   :  { %2999 = vmatprep.subr.bf16.mxu0 %v3519_v28  ;;  %96 = vst [vmem:[#allocation3 + $0x78] sm:$0xf] %v2823_v37  ;;  %98 = vst [vmem:[#allocation3 + $0x7c] sm:$0xf] %v2824_v38  ;;  %v2808_v40 = vld [vmem:[%s5209_s2 + $0xbc] sm:$0xf] }
  0x18   :  { %v3524_v41 = vld [vmem:[#allocation3 + $0x20] sm:$0xff]   ;;  %64 = vst [vmem:[#allocation3 + $0x38] sm:$0xf] %v2807_v39  ;;  %66 = vst [vmem:[#allocation3 + $0x3c] sm:$0xf] %v2808_v40  ;;  %v3525_v43 = vld [vmem:[#allocation3 + $0x68] sm:$0xff]  }
  0x19   :  { %v3533_v42 = vld [vmem:[%s5207_s0 + $0x4] ss:$8 sps:$4 sm:$0xff]   ;;  %v3531_v49 = vld [vmem:[%s5207_s0] ss:$8 sps:$4 sm:$0xff]   ;;  %v3534_v50 = vld [vmem:[%s5207_s0 + $0x14] ss:$8 sps:$4 sm:$0xff]  }
  0x1a   :  { %3000 = vmatpush3.bf16.msra.mxu0 %v3520_v29  ;;  %616 = vmatprep.mubr.bf16.mxu0 %v3533_v42  ;;  %v3526_v44 = vld [vmem:[#allocation3 + $0x28] sm:$0xff]   ;;  %v3536_v51 = vld [vmem:[%s5207_s0 + $0x10] ss:$8 sps:$4 sm:$0xff]   ;;  %v3579_v53 = vld [vmem:[%s5211_s4] sm:$0xff]  }
  0x1b   :  { %3001 = vmatprep.subr.bf16.mxu0 %v3521_v30  ;;  %v3537_v52 = vld [vmem:[%s5207_s0 + $0x24] ss:$8 sps:$4 sm:$0xff]   ;;  %v3581_v55 = vld [vmem:[%s5211_s4 + $0x10] sm:$0xff]   ;;  %v3539_v56 = vld [vmem:[%s5207_s0 + $0x20] ss:$8 sps:$4 sm:$0xff]   ;;  %3435 = vmatprep.subr.bf16.mxu1 %v3579_v53 }
  0x1c   :  { %v3527_v45 = vld [vmem:[#allocation3 + $0x70] sm:$0xff]   ;;  %3443 = vmatpush3.bf16.msra.mxu1 %v3579_v53  ;;  %v3582_v58 = vld [vmem:[%s5211_s4 + $0x18] sm:$0xff]   ;;  %v3543_v60 = vld [vmem:[%s5207_s0 + $0x44] ss:$8 sps:$4 sm:$0xff]  }
  0x1d   :  { %v3528_v46 = vld [vmem:[#allocation3 + $0x30] sm:$0xff]   ;;  %3436 = vmatprep.subr.bf16.mxu1 %v3580_v54  ;;  %v3545_v61 = vld [vmem:[%s5207_s0 + $0x40] ss:$8 sps:$4 sm:$0xff]   ;;  %v3549_v0 = vld [vmem:[%s5207_s0 + $0x64] ss:$8 sps:$4 sm:$0xff]  }
  0x1e   :  { %3002 = vmatpush3.bf16.msra.mxu0 %v3522_v31  ;;  %v3529_v47 = vld [vmem:[#allocation3 + $0x78] sm:$0xff]   ;;  %v3551_v1 = vld [vmem:[%s5207_s0 + $0x60] ss:$8 sps:$4 sm:$0xff]   ;;  %v3555_v4 = vld [vmem:[%s5207_s0 + $0x84] ss:$8 sps:$4 sm:$0xff]  }
  0x1f   :  { %3003 = vmatprep.subr.bf16.mxu0 %v3523_v32  ;;  %v3530_v48 = vld [vmem:[#allocation3 + $0x38] sm:$0xff]   ;;  %v3557_v5 = vld [vmem:[%s5207_s0 + $0x80] ss:$8 sps:$4 sm:$0xff]   ;;  %v3561_v8 = vld [vmem:[%s5207_s0 + $0xa4] ss:$8 sps:$4 sm:$0xff]  }
  0x20   :  { %v3540_v57 = vld [vmem:[%s5207_s0 + $0x34] ss:$8 sps:$4 sm:$0xff]   ;;  %3444 = vmatpush3.bf16.msra.mxu1 %v3580_v54  ;;  %v3542_v59 = vld [vmem:[%s5207_s0 + $0x30] ss:$8 sps:$4 sm:$0xff]   ;;  %v3563_v9 = vld [vmem:[%s5207_s0 + $0xa0] ss:$8 sps:$4 sm:$0xff]  }
  0x21   :  { %3437 = vmatprep.subr.bf16.mxu1 %v3581_v55  ;;  %v3546_v62 = vld [vmem:[%s5207_s0 + $0x54] ss:$8 sps:$4 sm:$0xff]   ;;  %v3548_v63 = vld [vmem:[%s5207_s0 + $0x50] ss:$8 sps:$4 sm:$0xff]   ;;  %v3583_v11 = vld [vmem:[%s5211_s4 + $0x20] sm:$0xff]  }
  0x22   :  { %3004 = vmatpush3.bf16.msra.mxu0 %v3524_v41  ;;  %v3552_v2 = vld [vmem:[%s5207_s0 + $0x74] ss:$8 sps:$4 sm:$0xff]   ;;  %v3554_v3 = vld [vmem:[%s5207_s0 + $0x70] ss:$8 sps:$4 sm:$0xff]   ;;  %v3567_v13 = vld [vmem:[%s5207_s0 + $0xc4] ss:$8 sps:$4 sm:$0xff]  }
  0x23   :  { %3005 = vmatprep.subr.bf16.mxu0 %v3525_v43  ;;  %v3558_v6 = vld [vmem:[%s5207_s0 + $0x94] ss:$8 sps:$4 sm:$0xff]   ;;  %v3560_v7 = vld [vmem:[%s5207_s0 + $0x90] ss:$8 sps:$4 sm:$0xff]   ;;  %v3584_v14 = vld [vmem:[%s5211_s4 + $0x28] sm:$0xff]  }
  0x24   :  { %3445 = vmatpush3.bf16.msra.mxu1 %v3581_v55  ;;  %v3564_v10 = vld [vmem:[%s5207_s0 + $0xb4] ss:$8 sps:$4 sm:$0xff]   ;;  %v3566_v12 = vld [vmem:[%s5207_s0 + $0xb0] ss:$8 sps:$4 sm:$0xff]   ;;  %v3569_v16 = vld [vmem:[%s5207_s0 + $0xc0] ss:$8 sps:$4 sm:$0xff]  }
  0x25   :  { %3438 = vmatprep.subr.bf16.mxu1 %v3582_v58  ;;  %v3585_v15 = vld [vmem:[%s5211_s4 + $0x30] sm:$0xff]   ;;  %v3586_v18 = vld [vmem:[%s5211_s4 + $0x38] sm:$0xff]   ;;  %v3573_v20 = vld [vmem:[%s5207_s0 + $0xe4] ss:$8 sps:$4 sm:$0xff]  }
  0x26   :  { %3006 = vmatpush3.bf16.msra.mxu0 %v3526_v44  ;;  %v3570_v17 = vld [vmem:[%s5207_s0 + $0xd4] ss:$8 sps:$4 sm:$0xff]   ;;  %v3572_v19 = vld [vmem:[%s5207_s0 + $0xd0] ss:$8 sps:$4 sm:$0xff]   ;;  %v3575_v21 = vld [vmem:[%s5207_s0 + $0xe0] ss:$8 sps:$4 sm:$0xff]  }
  0x27   :  { %3007 = vmatprep.subr.bf16.mxu0 %v3527_v45  ;;  %v3576_v22 = vld [vmem:[%s5207_s0 + $0xf4] ss:$8 sps:$4 sm:$0xff]   ;;  %v3578_v23 = vld [vmem:[%s5207_s0 + $0xf0] ss:$8 sps:$4 sm:$0xff]   ;;  %v3587_v24 = vld [vmem:[%s5210_s3 + $0x40] sm:$0xff]  }
  0x28   :  { %3446 = vmatpush3.bf16.msra.mxu1 %v3582_v58 }
  0x29   :  { %3439 = vmatprep.subr.bf16.mxu1 %v3583_v11 }
  0x2a   :  { %3008 = vmatpush3.bf16.msra.mxu0 %v3528_v46 }
  0x2b   :  { %3009 = vmatprep.subr.bf16.mxu0 %v3529_v47 }
  0x2c   :  { %3447 = vmatpush3.bf16.msra.mxu1 %v3583_v11 }
  0x2d   :  { %3440 = vmatprep.subr.bf16.mxu1 %v3584_v14 }
  0x2e   :  { %3010 = vmatpush3.bf16.msra.mxu0 %v3530_v48 }
  0x2f   :  { %3291 = vmatprep.subr.bf16.mxu0 %v3579_v53 }
  0x30   :  { %3448 = vmatpush3.bf16.msra.mxu1 %v3584_v14 }
  0x31   :  { %617 = vmatmul.mubr.bf16.vlgmr.msra.gmra.mrb[0].mxu0 %v3531_v49  ;;  %3441 = vmatprep.subr.bf16.mxu1 %v3585_v15 }
  0x32   :  { %624 = vmatprep.mubr.bf16.mxu0 %v3534_v50  ;;  %3292 = vmatpush3.bf16.msra.mxu0 %v3579_v53 }
  0x33   :  { %3293 = vmatprep.subr.bf16.mxu0 %v3580_v54 }
  0x34   :  { %3449 = vmatpush3.bf16.msra.mxu1 %v3585_v15 }
  0x35   :  { %3442 = vmatprep.subr.bf16.mxu1 %v3586_v18 }
  0x36   :  { %3294 = vmatpush3.bf16.msra.mxu0 %v3580_v54 }
  0x37   :  { %3295 = vmatprep.subr.bf16.mxu0 %v3581_v55 }
  0x38   :  { %3450 = vmatpush3.bf16.msra.mxu1 %v3586_v18 }
  0x39   :  { %625 = vmatmul.mubr.bf16.gmra.mrb[4].mxu0 %v3536_v51  ;;  %3131 = vmatprep.subr.bf16.mxu1 %v3587_v24 }
  0x3a   :  { %632 = vmatprep.mubr.bf16.mxu0 %v3537_v52  ;;  %3296 = vmatpush3.bf16.msra.mxu0 %v3581_v55 }
  0x3b   :  { %3297 = vmatprep.subr.bf16.mxu0 %v3582_v58 }
  0x3e   :  { %3298 = vmatpush3.bf16.msra.mxu0 %v3582_v58 }
  0x3f   :  { %3299 = vmatprep.subr.bf16.mxu0 %v3583_v11 }
  0x41   :  { %633 = vmatmul.mubr.bf16.gmra.mrb[8].mxu0 %v3539_v56 }
  0x42   :  { %640 = vmatprep.mubr.bf16.mxu0 %v3540_v57  ;;  %3300 = vmatpush3.bf16.msra.mxu0 %v3583_v11 }
  0x43   :  { %3301 = vmatprep.subr.bf16.mxu0 %v3584_v14 }
  0x46   :  { %3302 = vmatpush3.bf16.msra.mxu0 %v3584_v14 }
  0x47   :  { %3303 = vmatprep.subr.bf16.mxu0 %v3585_v15 }
  0x49   :  { %641 = vmatmul.mubr.bf16.gmra.mrb[12].mxu0 %v3542_v59 }
  0x4a   :  { %648 = vmatprep.mubr.bf16.mxu0 %v3543_v60  ;;  %3304 = vmatpush3.bf16.msra.mxu0 %v3585_v15 }
  0x4b   :  { %3305 = vmatprep.subr.bf16.mxu0 %v3586_v18 }
  0x4e   :  { %3306 = vmatpush3.bf16.msra.mxu0 %v3586_v18 }
  0x51   :  { %649 = vmatmul.mubr.bf16.gmra.mrb[16].mxu0 %v3545_v61 }
  0x52   :  { %656 = vmatprep.mubr.bf16.mxu0 %v3546_v62 }
  0x59   :  { %657 = vmatmul.mubr.bf16.gmra.mrb[20].mxu0 %v3548_v63 }
  0x5a   :  { %664 = vmatprep.mubr.bf16.mxu0 %v3549_v0 }
  0x61   :  { %665 = vmatmul.mubr.bf16.gmra.mrb[24].mxu0 %v3551_v1 }
  0x62   :  { %672 = vmatprep.mubr.bf16.mxu0 %v3552_v2 }
  0x69   :  { %673 = vmatmul.mubr.bf16.gmra.mrb[28].mxu0 %v3554_v3 }
  0x6a   :  { %680 = vmatprep.mubr.bf16.mxu0 %v3555_v4 }
  0x71   :  { %681 = vmatmul.mubr.bf16.gmra.mrb[32].mxu0 %v3557_v5 }
  0x72   :  { %688 = vmatprep.mubr.bf16.mxu0 %v3558_v6 }
  0x79   :  { %689 = vmatmul.mubr.bf16.gmra.mrb[36].mxu0 %v3560_v7 }
  0x7a   :  { %696 = vmatprep.mubr.bf16.mxu0 %v3561_v8 }
  0x81   :  { %697 = vmatmul.mubr.bf16.gmra.mrb[40].mxu0 %v3563_v9 }
  0x82   :  { %704 = vmatprep.mubr.bf16.mxu0 %v3564_v10 }
  0x89   :  { %705 = vmatmul.mubr.bf16.gmra.mrb[44].mxu0 %v3566_v12 }
  0x8a   :  { %712 = vmatprep.mubr.bf16.mxu0 %v3567_v13 }
  0x91   :  { %713 = vmatmul.mubr.bf16.gmra.mrb[48].mxu0 %v3569_v16 }
  0x92   :  { %720 = vmatprep.mubr.bf16.mxu0 %v3570_v17 }
  0x99   :  { %721 = vmatmul.mubr.bf16.gmra.mrb[52].mxu0 %v3572_v19 }
  0x9a   :  { %728 = vmatprep.mubr.bf16.mxu0 %v3573_v20 }
  0xa1   :  { %729 = vmatmul.mubr.bf16.gmra.mrb[56].mxu0 %v3575_v21 }
  0xa2   :  { %736 = vmatprep.mubr.bf16.mxu0 %v3576_v22 }
  0xa9   :  { %737 = vmatmul.mubr.bf16.gmra.mrb[60].mxu0 %v3578_v23 }
 0x104   :  { %v3011_v25 = vpop.f32.mrb[0].mxu0 }
 0x105   :  { %v3012_v26 = vpop.f32.mrb[1].mxu0 }
 0x106   :  { %v3013_v27 = vadd.f32 %v3012_v26, %v3011_v25  ;;  %v3014_v28 = vpop.f32.mrb[2].mxu0 }
 0x107   :  { %v3015_v29 = vpop.f32.mrb[3].mxu0 }
 0x108   :  { %v3016_v30 = vadd.f32 %v3015_v29, %v3014_v28 }
 0x10a   :  { %v956_v31 = vpack.c.bf16 %v3016_v30, %v3013_v27  ;;  %v3588_v30 = vld [vmem:[%s5210_s3] sm:$0xff]  }
 0x10c   :  { %v3017_v32 = vpop.f32.mrb[4].mxu0  ;;  %3307 = vmatprep.mubr.bf16.mxu0 %v956_v31 }
 0x10d   :  { %v3018_v33 = vpop.f32.mrb[5].mxu0 }
 0x10e   :  { %v3019_v34 = vadd.f32 %v3018_v33, %v3017_v32  ;;  %v3020_v35 = vpop.f32.mrb[6].mxu0  ;;  %v3589_v32 = vld [vmem:[%s5210_s3 + $0x48] sm:$0xff]  }
 0x10f   :  { %v3021_v36 = vpop.f32.mrb[7].mxu0 }
 0x110   :  { %v3022_v37 = vadd.f32 %v3021_v36, %v3020_v35  ;;  %v3590_v35 = vld [vmem:[%s5210_s3 + $0x8] sm:$0xff]  }
 0x112   :  { %v957_v38 = vpack.c.bf16 %v3022_v37, %v3019_v34 }
 0x114   :  { %v3023_v39 = vpop.f32.mrb[8].mxu0  ;;  %3308 = vmatmul.mubr.bf16.vlgmr.msra.gmra.mrb[64].mxu0 %v957_v38  ;;  %v3591_v38 = vld [vmem:[%s5210_s3 + $0x50] sm:$0xff]  }
 0x115   :  { %v3024_v40 = vpop.f32.mrb[9].mxu0 }
 0x116   :  { %v3025_v41 = vadd.f32 %v3024_v40, %v3023_v39  ;;  %v3026_v42 = vpop.f32.mrb[10].mxu0 }
 0x117   :  { %v3027_v43 = vpop.f32.mrb[11].mxu0 }
 0x118   :  { %v3028_v44 = vadd.f32 %v3027_v43, %v3026_v42  ;;  %v3593_v43 = vld [vmem:[%s5210_s3 + $0x58] sm:$0xff]  }
 0x11a   :  { %v958_v45 = vpack.c.bf16 %v3028_v44, %v3025_v41  ;;  %v3592_v41 = vld [vmem:[%s5210_s3 + $0x10] sm:$0xff]  }
 0x11c   :  { %v3029_v46 = vpop.f32.mrb[12].mxu0  ;;  %3311 = vmatprep.mubr.bf16.mxu0 %v958_v45 }
 0x11d   :  { %v3030_v47 = vpop.f32.mrb[13].mxu0 }
 0x11e   :  { %v3031_v48 = vadd.f32 %v3030_v47, %v3029_v46  ;;  %v3032_v49 = vpop.f32.mrb[14].mxu0  ;;  %v3594_v46 = vld [vmem:[%s5210_s3 + $0x18] sm:$0xff]  }
 0x11f   :  { %v3033_v50 = vpop.f32.mrb[15].mxu0 }
 0x120   :  { %v3034_v51 = vadd.f32 %v3033_v50, %v3032_v49  ;;  %v3595_v49 = vld [vmem:[%s5210_s3 + $0x60] sm:$0xff]  }
 0x122   :  { %v959_v52 = vpack.c.bf16 %v3034_v51, %v3031_v48 }
 0x124   :  { %v3035_v53 = vpop.f32.mrb[16].mxu0  ;;  %3312 = vmatmul.mubr.bf16.gmra.mrb[68].mxu0 %v959_v52  ;;  %v3596_v52 = vld [vmem:[%s5210_s3 + $0x20] sm:$0xff]  }
 0x125   :  { %v3036_v54 = vpop.f32.mrb[17].mxu0 }
 0x126   :  { %v3037_v55 = vadd.f32 %v3036_v54, %v3035_v53  ;;  %v3038_v56 = vpop.f32.mrb[18].mxu0  ;;  %v3597_v54 = vld [vmem:[%s5210_s3 + $0x68] sm:$0xff]  }
 0x127   :  { %v3039_v57 = vpop.f32.mrb[19].mxu0 }
 0x128   :  { %v3040_v58 = vadd.f32 %v3039_v57, %v3038_v56  ;;  %v3598_v57 = vld [vmem:[%s5210_s3 + $0x28] sm:$0xff]  }
 0x12a   :  { %v960_v59 = vpack.c.bf16 %v3040_v58, %v3037_v55 }
 0x12c   :  { %v3041_v60 = vpop.f32.mrb[20].mxu0  ;;  %3315 = vmatprep.mubr.bf16.mxu0 %v960_v59 }
 0x12d   :  { %v3042_v61 = vpop.f32.mrb[21].mxu0 }
 0x12e   :  { %v3043_v62 = vadd.f32 %v3042_v61, %v3041_v60  ;;  %v3044_v63 = vpop.f32.mrb[22].mxu0  ;;  %v3599_v60 = vld [vmem:[%s5210_s3 + $0x70] sm:$0xff]  }
 0x12f   :  { %v3045_v0 = vpop.f32.mrb[23].mxu0 }
 0x130   :  { %v3046_v1 = vadd.f32 %v3045_v0, %v3044_v63  ;;  %v3600_v63 = vld [vmem:[%s5210_s3 + $0x30] sm:$0xff]  }
 0x132   :  { %v961_v2 = vpack.c.bf16 %v3046_v1, %v3043_v62  ;;  %v3601_v1 = vld [vmem:[%s5210_s3 + $0x78] sm:$0xff]  }
 0x134   :  { %v3047_v3 = vpop.f32.mrb[24].mxu0  ;;  %3316 = vmatmul.mubr.bf16.gmra.mrb[72].mxu0 %v961_v2 }
 0x135   :  { %v3048_v4 = vpop.f32.mrb[25].mxu0 }
 0x136   :  { %v3049_v5 = vadd.f32 %v3048_v4, %v3047_v3  ;;  %v3050_v6 = vpop.f32.mrb[26].mxu0  ;;  %v3602_v4 = vld [vmem:[%s5210_s3 + $0x38] sm:$0xff]  }
 0x137   :  { %v3051_v7 = vpop.f32.mrb[27].mxu0 }
 0x138   :  { %v3052_v8 = vadd.f32 %v3051_v7, %v3050_v6  ;;  %v3606_v7 = vld [vmem:[%s5210_s3 + $0x80] sm:$0xff]  }
 0x13a   :  { %v962_v9 = vpack.c.bf16 %v3052_v8, %v3049_v5 }
 0x13c   :  { %v3053_v10 = vpop.f32.mrb[28].mxu0  ;;  %3319 = vmatprep.mubr.bf16.mxu0 %v962_v9 }
 0x13d   :  { %v3054_v11 = vpop.f32.mrb[29].mxu0 }
 0x13e   :  { %v3055_v12 = vadd.f32 %v3054_v11, %v3053_v10  ;;  %v3056_v13 = vpop.f32.mrb[30].mxu0 }
 0x13f   :  { %v3057_v14 = vpop.f32.mrb[31].mxu0 }
 0x140   :  { %v3058_v15 = vadd.f32 %v3057_v14, %v3056_v13 }
 0x142   :  { %v963_v16 = vpack.c.bf16 %v3058_v15, %v3055_v12 }
 0x144   :  { %v3059_v17 = vpop.f32.mrb[32].mxu0  ;;  %3320 = vmatmul.mubr.bf16.gmra.mrb[76].mxu0 %v963_v16 }
 0x145   :  { %v3060_v18 = vpop.f32.mrb[33].mxu0 }
 0x146   :  { %v3061_v19 = vadd.f32 %v3060_v18, %v3059_v17  ;;  %v3062_v20 = vpop.f32.mrb[34].mxu0 }
 0x147   :  { %v3063_v21 = vpop.f32.mrb[35].mxu0 }
 0x148   :  { %v3064_v22 = vadd.f32 %v3063_v21, %v3062_v20 }
 0x14a   :  { %v964_v23 = vpack.c.bf16 %v3064_v22, %v3061_v19 }
 0x14c   :  { %v3065_v24 = vpop.f32.mrb[36].mxu0  ;;  %3323 = vmatprep.mubr.bf16.mxu1 %v964_v23 }
 0x14d   :  { %v3066_v25 = vpop.f32.mrb[37].mxu0 }
 0x14e   :  { %v3067_v26 = vadd.f32 %v3066_v25, %v3065_v24  ;;  %v3068_v27 = vpop.f32.mrb[38].mxu0  ;;  %v3605_v24 = vld [vmem:[%s5208_s1 + $0x4] ss:$12 sps:$4 sm:$0xff]  }
 0x14f   :  { %v3069_v28 = vpop.f32.mrb[39].mxu0 }
 0x150   :  { %v3070_v29 = vadd.f32 %v3069_v28, %v3068_v27  ;;  %v3607_v27 = vld [vmem:[%s5208_s1 + $0x1c] ss:$12 sps:$4 sm:$0xff]  }
 0x151   :  { %v3612_v28 = vld [vmem:[%s5210_s3 + $0x88] sm:$0xff]  }
 0x152   :  { %v965_v31 = vpack.c.bf16 %v3070_v29, %v3067_v26  ;;  %v3603_v26 = vld [vmem:[%s5208_s1] ss:$12 sps:$4 sm:$0xff]   ;;  %v3619_v29 = vld [vmem:[%s5210_s3 + $0x90] sm:$0xff]  }
 0x154   :  { %v3071_v33 = vpop.f32.mrb[40].mxu0  ;;  %3324 = vmatmul.mubr.bf16.vlgmr.msra.gmra.mrb[0].mxu1 %v965_v31  ;;  %v3610_v31 = vld [vmem:[%s5208_s1 + $0x34] ss:$12 sps:$4 sm:$0xff]  }
 0x155   :  { %v3072_v34 = vpop.f32.mrb[41].mxu0  ;;  %3132 = vmatpush3.bf16.msra.mxu1 %v3588_v30  ;;  %v3609_v30 = vld [vmem:[%s5208_s1 + $0x18] ss:$12 sps:$4 sm:$0xff]  }
 0x156   :  { %v3073_v36 = vadd.f32 %v3072_v34, %v3071_v33  ;;  %v3074_v37 = vpop.f32.mrb[42].mxu0  ;;  %3133 = vmatprep.subr.bf16.mxu1 %v3589_v32  ;;  %v3626_v32 = vld [vmem:[%s5210_s3 + $0x98] sm:$0xff]   ;;  %v3633_v33 = vld [vmem:[%s5210_s3 + $0xa0] sm:$0xff]  }
 0x157   :  { %v3075_v39 = vpop.f32.mrb[43].mxu0  ;;  %v3613_v34 = vld [vmem:[%s5208_s1 + $0x30] ss:$12 sps:$4 sm:$0xff]  }
 0x158   :  { %v3076_v40 = vadd.f32 %v3075_v39, %v3074_v37  ;;  %v3647_v37 = vld [vmem:[%s5210_s3 + $0xb0] sm:$0xff]  }
 0x159   :  { %3134 = vmatpush3.bf16.msra.mxu1 %v3590_v35  ;;  %v3614_v35 = vld [vmem:[%s5208_s1 + $0x4c] ss:$12 sps:$4 sm:$0xff]   ;;  %v3617_v39 = vld [vmem:[%s5208_s1 + $0x64] ss:$12 sps:$4 sm:$0xff]  }
 0x15a   :  { %v966_v42 = vpack.c.bf16 %v3076_v40, %v3073_v36  ;;  %3135 = vmatprep.subr.bf16.mxu1 %v3591_v38  ;;  %v3640_v36 = vld [vmem:[%s5210_s3 + $0xa8] sm:$0xff]   ;;  %v3654_v40 = vld [vmem:[%s5210_s3 + $0xb8] sm:$0xff]  }
 0x15b   :  { %v3616_v38 = vld [vmem:[%s5208_s1 + $0x48] ss:$12 sps:$4 sm:$0xff]  }
 0x15c   :  { %v3077_v44 = vpop.f32.mrb[44].mxu0  ;;  %3327 = vmatprep.mubr.bf16.mxu1 %v966_v42  ;;  %v3621_v42 = vld [vmem:[%s5208_s1 + $0x7c] ss:$12 sps:$4 sm:$0xff]  }
 0x15d   :  { %v3078_v45 = vpop.f32.mrb[45].mxu0  ;;  %3136 = vmatpush3.bf16.msra.mxu1 %v3592_v41  ;;  %v3620_v41 = vld [vmem:[%s5208_s1 + $0x60] ss:$12 sps:$4 sm:$0xff]  }
 0x15e   :  { %v3079_v47 = vadd.f32 %v3078_v45, %v3077_v44  ;;  %v3080_v48 = vpop.f32.mrb[46].mxu0  ;;  %3137 = vmatprep.subr.bf16.mxu1 %v3593_v43  ;;  %v3623_v43 = vld [vmem:[%s5208_s1 + $0x78] ss:$12 sps:$4 sm:$0xff]   ;;  %v3624_v44 = vld [vmem:[%s5208_s1 + $0x94] ss:$12 sps:$4 sm:$0xff]  }
 0x15f   :  { %v3081_v50 = vpop.f32.mrb[47].mxu0  ;;  %v3627_v45 = vld [vmem:[%s5208_s1 + $0x90] ss:$12 sps:$4 sm:$0xff]  }
 0x160   :  { %v3082_v51 = vadd.f32 %v3081_v50, %v3080_v48  ;;  %v3631_v48 = vld [vmem:[%s5208_s1 + $0xc4] ss:$12 sps:$4 sm:$0xff]   ;;  %v3635_v50 = vld [vmem:[%s5208_s1 + $0xdc] ss:$12 sps:$4 sm:$0xff]  }
 0x161   :  { %3138 = vmatpush3.bf16.msra.mxu1 %v3594_v46  ;;  %v3628_v46 = vld [vmem:[%s5208_s1 + $0xac] ss:$12 sps:$4 sm:$0xff]  }
 0x162   :  { %v967_v53 = vpack.c.bf16 %v3082_v51, %v3079_v47  ;;  %3139 = vmatprep.subr.bf16.mxu1 %v3595_v49  ;;  %v3630_v47 = vld [vmem:[%s5208_s1 + $0xa8] ss:$12 sps:$4 sm:$0xff]   ;;  %v3634_v49 = vld [vmem:[%s5208_s1 + $0xc0] ss:$12 sps:$4 sm:$0xff]   ;;  %v3637_v51 = vld [vmem:[%s5208_s1 + $0xd8] ss:$12 sps:$4 sm:$0xff]  }
 0x164   :  { %v3083_v55 = vpop.f32.mrb[48].mxu0  ;;  %3328 = vmatmul.mubr.bf16.gmra.mrb[4].mxu1 %v967_v53  ;;  %v3641_v53 = vld [vmem:[%s5208_s1 + $0xf0] ss:$12 sps:$4 sm:$0xff]  }
 0x165   :  { %v3084_v56 = vpop.f32.mrb[49].mxu0  ;;  %3140 = vmatpush3.bf16.msra.mxu1 %v3596_v52  ;;  %v3638_v52 = vld [vmem:[%s5208_s1 + $0xf4] ss:$12 sps:$4 sm:$0xff]  }
 0x166   :  { %v3085_v58 = vadd.f32 %v3084_v56, %v3083_v55  ;;  %v3086_v59 = vpop.f32.mrb[50].mxu0  ;;  %3141 = vmatprep.subr.bf16.mxu1 %v3597_v54  ;;  %v3642_v54 = vld [vmem:[%s5208_s1 + $0x10c] ss:$12 sps:$4 sm:$0xff]   ;;  %v3644_v55 = vld [vmem:[%s5208_s1 + $0x108] ss:$12 sps:$4 sm:$0xff]  }
 0x167   :  { %v3087_v61 = vpop.f32.mrb[51].mxu0  ;;  %v3645_v56 = vld [vmem:[%s5208_s1 + $0x124] ss:$12 sps:$4 sm:$0xff]  }
 0x168   :  { %v3088_v62 = vadd.f32 %v3087_v61, %v3086_v59  ;;  %v3648_v59 = vld [vmem:[%s5208_s1 + $0x120] ss:$12 sps:$4 sm:$0xff]   ;;  %v3649_v61 = vld [vmem:[%s5208_s1 + $0x13c] ss:$12 sps:$4 sm:$0xff]  }
 0x169   :  { %3142 = vmatpush3.bf16.msra.mxu1 %v3598_v57 }
 0x16a   :  { %v968_v0 = vpack.c.bf16 %v3088_v62, %v3085_v58  ;;  %3143 = vmatprep.subr.bf16.mxu1 %v3599_v60 }
 0x16c   :  { %v3089_v2 = vpop.f32.mrb[52].mxu0  ;;  %3331 = vmatprep.mubr.bf16.mxu1 %v968_v0  ;;  %v3652_v0 = vld [vmem:[%s5208_s1 + $0x154] ss:$12 sps:$4 sm:$0xff]  }
 0x16d   :  { %v3090_v3 = vpop.f32.mrb[53].mxu0  ;;  %3144 = vmatpush3.bf16.msra.mxu1 %v3600_v63  ;;  %v3651_v63 = vld [vmem:[%s5208_s1 + $0x138] ss:$12 sps:$4 sm:$0xff]  }
 0x16e   :  { %v3091_v5 = vadd.f32 %v3090_v3, %v3089_v2  ;;  %v3092_v6 = vpop.f32.mrb[54].mxu0  ;;  %3145 = vmatprep.subr.bf16.mxu1 %v3601_v1  ;;  %v3655_v3 = vld [vmem:[%s5208_s1 + $0x150] ss:$12 sps:$4 sm:$0xff]  }
 0x16f   :  { %v3093_v8 = vpop.f32.mrb[55].mxu0 }
 0x170   :  { %v3094_v9 = vadd.f32 %v3093_v8, %v3092_v6  ;;  %v3659_v8 = vld [vmem:[%s5208_s1 + $0x8] ss:$12 sps:$4 sm:$0xff]  }
 0x171   :  { %3146 = vmatpush3.bf16.msra.mxu1 %v3602_v4 }
 0x172   :  { %v969_v10 = vpack.c.bf16 %v3094_v9, %v3091_v5  ;;  %3339 = vmatprep.subr.bf16.mxu1 %v3606_v7  ;;  %v3656_v5 = vld [vmem:[%s5208_s1 + $0x16c] ss:$12 sps:$4 sm:$0xff]  }
 0x174   :  { %v3095_v11 = vpop.f32.mrb[56].mxu0  ;;  %3332 = vmatmul.mubr.bf16.gmra.mrb[8].mxu1 %v969_v10 }
 0x175   :  { %v3096_v12 = vpop.f32.mrb[57].mxu0 }
 0x176   :  { %v3097_v13 = vadd.f32 %v3096_v12, %v3095_v11  ;;  %v3098_v14 = vpop.f32.mrb[58].mxu0  ;;  %v3660_v11 = vld [vmem:[%s5208_s1 + $0x20] ss:$12 sps:$4 sm:$0xff]  }
 0x177   :  { %v3099_v15 = vpop.f32.mrb[59].mxu0 }
 0x178   :  { %v3100_v16 = vadd.f32 %v3099_v15, %v3098_v14  ;;  %v3662_v15 = vld [vmem:[%s5208_s1 + $0x50] ss:$12 sps:$4 sm:$0xff]  }
 0x17a   :  { %v970_v17 = vpack.c.bf16 %v3100_v16, %v3097_v13  ;;  %v3661_v13 = vld [vmem:[%s5208_s1 + $0x38] ss:$12 sps:$4 sm:$0xff]   ;;  %v3663_v16 = vld [vmem:[%s5208_s1 + $0x68] ss:$12 sps:$4 sm:$0xff]  }
 0x17c   :  { %v3101_v18 = vpop.f32.mrb[60].mxu0  ;;  %3335 = vmatprep.mubr.bf16.mxu1 %v970_v17 }
 0x17d   :  { %v3102_v19 = vpop.f32.mrb[61].mxu0 }
 0x17e   :  { %v3103_v20 = vadd.f32 %v3102_v19, %v3101_v18  ;;  %v3104_v21 = vpop.f32.mrb[62].mxu0  ;;  %v3664_v19 = vld [vmem:[%s5208_s1 + $0x80] ss:$12 sps:$4 sm:$0xff]  }
 0x17f   :  { %v3105_v22 = vpop.f32.mrb[63].mxu0 }
 0x180   :  { %v3106_v23 = vadd.f32 %v3105_v22, %v3104_v21  ;;  %v3665_v21 = vld [vmem:[%s5208_s1 + $0x98] ss:$12 sps:$4 sm:$0xff]  }
 0x182   :  { %v971_v25 = vpack.c.bf16 %v3106_v23, %v3103_v20  ;;  %v3666_v23 = vld [vmem:[%s5208_s1 + $0xb0] ss:$12 sps:$4 sm:$0xff]  }
 0x184   :  { %3336 = vmatmul.mubr.bf16.gmra.mrb[12].mxu1 %v971_v25  ;;  %v3668_v25 = vld [vmem:[%s5208_s1 + $0xe0] ss:$12 sps:$4 sm:$0xff]  }
 0x185   :  { %1629 = vmatprep.mubr.bf16.mxu1 %v3605_v24  ;;  %v3667_v24 = vld [vmem:[%s5208_s1 + $0xc8] ss:$12 sps:$4 sm:$0xff]  }
 0x18c   :  { %1630 = vmatmul.mubr.bf16.vlgmr.msra.gmra.mrb[16].mxu1 %v3603_v26  ;;  %v3669_v26 = vld [vmem:[%s5208_s1 + $0xf8] ss:$12 sps:$4 sm:$0xff]  }
 0x18d   :  { %3340 = vmatpush3.bf16.msra.mxu1 %v3606_v7  ;;  %1637 = vmatprep.mubr.bf16.mxu1 %v3607_v27  ;;  %v3658_v7 = vld [vmem:[%s5208_s1 + $0x168] ss:$12 sps:$4 sm:$0xff]   ;;  %v3670_v27 = vld [vmem:[%s5208_s1 + $0x110] ss:$12 sps:$4 sm:$0xff]  }
 0x18e   :  { %3341 = vmatprep.subr.bf16.mxu1 %v3612_v28 }
 0x191   :  { %3342 = vmatpush3.bf16.msra.mxu1 %v3612_v28  ;;  %v3671_v28 = vld [vmem:[%s5208_s1 + $0x128] ss:$12 sps:$4 sm:$0xff]  }
 0x192   :  { %3343 = vmatprep.subr.bf16.mxu1 %v3619_v29 }
 0x194   :  { %1638 = vmatmul.mubr.bf16.gmra.mrb[20].mxu1 %v3609_v30  ;;  %v3673_v30 = vld [vmem:[%s5208_s1 + $0x158] ss:$12 sps:$4 sm:$0xff]  }
 0x195   :  { %1645 = vmatprep.mubr.bf16.mxu1 %v3610_v31  ;;  %3344 = vmatpush3.bf16.msra.mxu1 %v3619_v29  ;;  %v3672_v29 = vld [vmem:[%s5208_s1 + $0x140] ss:$12 sps:$4 sm:$0xff]   ;;  %v3674_v31 = vld [vmem:[%s5208_s1 + $0x170] ss:$12 sps:$4 sm:$0xff]  }
 0x196   :  { %3345 = vmatprep.subr.bf16.mxu1 %v3626_v32 }
 0x199   :  { %3346 = vmatpush3.bf16.msra.mxu1 %v3626_v32  ;;  %v3675_v32 = vld [vmem:[%s5213_s6] sm:$0xff]  }
 0x19a   :  { %3347 = vmatprep.subr.bf16.mxu1 %v3633_v33  ;;  %3387 = vmatprep.subr.bf16.mxu0 %v3675_v32 }
 0x19b   :  { %3388 = vmatpush3.bf16.msra.mxu0 %v3675_v32 }
 0x19c   :  { %1646 = vmatmul.mubr.bf16.gmra.mrb[24].mxu1 %v3613_v34 }
 0x19d   :  { %1653 = vmatprep.mubr.bf16.mxu1 %v3614_v35  ;;  %3348 = vmatpush3.bf16.msra.mxu1 %v3633_v33  ;;  %v3676_v33 = vld [vmem:[%s5213_s6 + $0x8] sm:$0xff]  }
 0x19e   :  { %3349 = vmatprep.subr.bf16.mxu1 %v3640_v36  ;;  %3389 = vmatprep.subr.bf16.mxu0 %v3676_v33 }
 0x19f   :  { %3390 = vmatpush3.bf16.msra.mxu0 %v3676_v33 }
 0x1a1   :  { %3350 = vmatpush3.bf16.msra.mxu1 %v3640_v36 }
 0x1a2   :  { %3351 = vmatprep.subr.bf16.mxu1 %v3647_v37 }
 0x1a4   :  { %1654 = vmatmul.mubr.bf16.gmra.mrb[28].mxu1 %v3616_v38 }
 0x1a5   :  { %1661 = vmatprep.mubr.bf16.mxu1 %v3617_v39  ;;  %3352 = vmatpush3.bf16.msra.mxu1 %v3647_v37  ;;  %v3677_v39 = vld [vmem:[%s5213_s6 + $0x10] sm:$0xff]  }
 0x1a6   :  { %3353 = vmatprep.subr.bf16.mxu1 %v3654_v40  ;;  %3391 = vmatprep.subr.bf16.mxu0 %v3677_v39 }
 0x1a7   :  { %3392 = vmatpush3.bf16.msra.mxu0 %v3677_v39 }
 0x1a9   :  { %3354 = vmatpush3.bf16.msra.mxu1 %v3654_v40 }
 0x1ac   :  { %1662 = vmatmul.mubr.bf16.gmra.mrb[32].mxu1 %v3620_v41 }
 0x1ad   :  { %1669 = vmatprep.mubr.bf16.mxu1 %v3621_v42 }
 0x1b4   :  { %1670 = vmatmul.mubr.bf16.gmra.mrb[36].mxu1 %v3623_v43  ;;  %v3678_v43 = vld [vmem:[%s5213_s6 + $0x18] sm:$0xff]  }
 0x1b5   :  { %1677 = vmatprep.mubr.bf16.mxu1 %v3624_v44  ;;  %3393 = vmatprep.subr.bf16.mxu0 %v3678_v43 }
 0x1b6   :  { %3394 = vmatpush3.bf16.msra.mxu0 %v3678_v43 }
 0x1bc   :  { %1678 = vmatmul.mubr.bf16.gmra.mrb[40].mxu1 %v3627_v45 }
 0x1bd   :  { %1685 = vmatprep.mubr.bf16.mxu1 %v3628_v46 }
 0x1c4   :  { %1686 = vmatmul.mubr.bf16.gmra.mrb[44].mxu1 %v3630_v47 }
 0x1c5   :  { %1693 = vmatprep.mubr.bf16.mxu1 %v3631_v48 }
 0x1cc   :  { %1694 = vmatmul.mubr.bf16.gmra.mrb[48].mxu1 %v3634_v49  ;;  %v3679_v49 = vld [vmem:[%s5213_s6 + $0x20] sm:$0xff]  }
 0x1cd   :  { %1701 = vmatprep.mubr.bf16.mxu1 %v3635_v50  ;;  %3395 = vmatprep.subr.bf16.mxu0 %v3679_v49 }
 0x1ce   :  { %3396 = vmatpush3.bf16.msra.mxu0 %v3679_v49 }
 0x1d4   :  { %1702 = vmatmul.mubr.bf16.gmra.mrb[52].mxu1 %v3637_v51 }
 0x1d5   :  { %1709 = vmatprep.mubr.bf16.mxu1 %v3638_v52 }
 0x1dc   :  { %1710 = vmatmul.mubr.bf16.gmra.mrb[56].mxu1 %v3641_v53  ;;  %v3680_v53 = vld [vmem:[%s5213_s6 + $0x28] sm:$0xff]  }
 0x1dd   :  { %1717 = vmatprep.mubr.bf16.mxu1 %v3642_v54  ;;  %3397 = vmatprep.subr.bf16.mxu0 %v3680_v53 }
 0x1de   :  { %3398 = vmatpush3.bf16.msra.mxu0 %v3680_v53 }
 0x1e4   :  { %1718 = vmatmul.mubr.bf16.gmra.mrb[60].mxu1 %v3644_v55 }
 0x1e5   :  { %1725 = vmatprep.mubr.bf16.mxu1 %v3645_v56 }
 0x1e7   :  { %v4283_v57 = vpop.f32.mrb[64].mxu0 }
 0x1e8   :  { %v4285_v58 = vpop.f32.mrb[65].mxu0 }
 0x1e9   :  { %v4290_v60 = vpop.f32.mrb[66].mxu0 }
 0x1ea   :  { %v4295_v62 = vpop.f32.mrb[67].mxu0 }
 0x1ec   :  { %1726 = vmatmul.mubr.bf16.gmra.mrb[64].mxu1 %v3648_v59 }
 0x1ed   :  { %1733 = vmatprep.mubr.bf16.mxu1 %v3649_v61 }
 0x1f4   :  { %1734 = vmatmul.mubr.bf16.gmra.mrb[68].mxu1 %v3651_v63 }
 0x1f5   :  { %1741 = vmatprep.mubr.bf16.mxu1 %v3652_v0 }
 0x1f7   :  { %v4303_v1 = vpop.f32.mrb[68].mxu0 }
 0x1f8   :  { %v4305_v2 = vpop.f32.mrb[69].mxu0 }
 0x1f9   :  { %v4310_v4 = vpop.f32.mrb[70].mxu0 }
 0x1fa   :  { %v4315_v6 = vpop.f32.mrb[71].mxu0 }
 0x1fc   :  { %1742 = vmatmul.mubr.bf16.gmra.mrb[72].mxu1 %v3655_v3  ;;  %v3682_v3 = vld [vmem:[%s5213_s6 + $0x38] sm:$0xff]  }
 0x1fd   :  { %1749 = vmatprep.mubr.bf16.mxu1 %v3656_v5 }
 0x204   :  { %1750 = vmatmul.mubr.bf16.gmra.mrb[76].mxu1 %v3658_v7 }
 0x205   :  { %3355 = vmatprep.mubr.bf16.mxu1 %v3659_v8 }
 0x207   :  { %v4323_v9 = vpop.f32.mrb[72].mxu0 }
 0x208   :  { %v4325_v10 = vpop.f32.mrb[73].mxu0 }
 0x209   :  { %v4330_v12 = vpop.f32.mrb[74].mxu0 }
 0x20a   :  { %v4335_v14 = vpop.f32.mrb[75].mxu0 }
 0x20c   :  { %3356 = vmatmul.mubr.bf16.vlgmr.msra.gmra.mrb[80].mxu1 %v3660_v11 }
 0x20d   :  { %3359 = vmatprep.mubr.bf16.mxu1 %v3661_v13 }
 0x214   :  { %3360 = vmatmul.mubr.bf16.gmra.mrb[84].mxu1 %v3662_v15 }
 0x215   :  { %3363 = vmatprep.mubr.bf16.mxu1 %v3663_v16 }
 0x217   :  { %v4343_v17 = vpop.f32.mrb[76].mxu0 }
 0x218   :  { %v4345_v18 = vpop.f32.mrb[77].mxu0 }
 0x219   :  { %v4350_v20 = vpop.f32.mrb[78].mxu0 }
 0x21a   :  { %v4355_v22 = vpop.f32.mrb[79].mxu0 }
 0x21c   :  { %3364 = vmatmul.mubr.bf16.gmra.mrb[88].mxu1 %v3664_v19 }
 0x21d   :  { %3367 = vmatprep.mubr.bf16.mxu1 %v3665_v21 }
 0x224   :  { %3368 = vmatmul.mubr.bf16.gmra.mrb[92].mxu1 %v3666_v23 }
 0x225   :  { %3371 = vmatprep.mubr.bf16.mxu1 %v3667_v24 }
 0x22c   :  { %3372 = vmatmul.mubr.bf16.gmra.mrb[0].mxu1 %v3668_v25 }
 0x22d   :  { %3375 = vmatprep.mubr.bf16.mxu1 %v3669_v26 }
 0x234   :  { %3376 = vmatmul.mubr.bf16.gmra.mrb[4].mxu1 %v3670_v27 }
 0x235   :  { %3379 = vmatprep.mubr.bf16.mxu1 %v3671_v28 }
 0x23c   :  { %3380 = vmatmul.mubr.bf16.gmra.mrb[8].mxu1 %v3672_v29 }
 0x23d   :  { %3383 = vmatprep.mubr.bf16.mxu1 %v3673_v30 }
 0x244   :  { %3384 = vmatmul.mubr.bf16.gmra.mrb[12].mxu1 %v3674_v31 }
 0x25f   :  { %v3147_v34 = vpop.f32.mrb[16].mxu1 }
 0x260   :  { %v3148_v35 = vpop.f32.mrb[17].mxu1 }
 0x261   :  { %v3149_v36 = vadd.f32 %v3148_v35, %v3147_v34  ;;  %v3150_v37 = vpop.f32.mrb[18].mxu1 }
 0x262   :  { %v3151_v38 = vpop.f32.mrb[19].mxu1 }
 0x263   :  { %v3152_v40 = vadd.f32 %v3151_v38, %v3150_v37  ;;  %v4394_v41 = vadd.f32 %v3149_v36, %v4285_v58 }
 0x265   :  { %v4397_v42 = vadd.f32 %v3152_v40, %v4295_v62 }
 0x267   :  { %v3153_v44 = vpop.f32.mrb[20].mxu1 }
 0x268   :  { %v3154_v45 = vpop.f32.mrb[21].mxu1 }
 0x269   :  { %v3155_v46 = vadd.f32 %v3154_v45, %v3153_v44  ;;  %v3156_v47 = vpop.f32.mrb[22].mxu1 }
 0x26a   :  { %v3157_v48 = vpop.f32.mrb[23].mxu1 }
 0x26b   :  { %v3158_v50 = vadd.f32 %v3157_v48, %v3156_v47  ;;  %v4406_v51 = vadd.f32 %v4283_v57, %v3155_v46 }
 0x26d   :  { %v4409_v52 = vadd.f32 %v4290_v60, %v3158_v50  ;;  %v3681_v60 = vld [vmem:[%s5213_s6 + $0x30] sm:$0xff]  }
 0x26e   :  { %3399 = vmatprep.subr.bf16.mxu0 %v3681_v60 }
 0x26f   :  { %v3159_v54 = vpop.f32.mrb[24].mxu1  ;;  %3400 = vmatpush3.bf16.msra.mxu0 %v3681_v60 }
 0x270   :  { %v3160_v55 = vpop.f32.mrb[25].mxu1  ;;  %3401 = vmatprep.subr.bf16.mxu0 %v3682_v3 }
 0x271   :  { %v3161_v56 = vadd.f32 %v3160_v55, %v3159_v54  ;;  %v3162_v58 = vpop.f32.mrb[26].mxu1 }
 0x272   :  { %v3163_v59 = vpop.f32.mrb[27].mxu1 }
 0x273   :  { %v3164_v61 = vadd.f32 %v3163_v59, %v3162_v58  ;;  %v4415_v57 = vadd.f32 %v3161_v56, %v4305_v2  ;;  %3402 = vmatpush3.bf16.msra.mxu0 %v3682_v3 }
 0x275   :  { %v4421_v62 = vadd.f32 %v3164_v61, %v4315_v6 }
 0x277   :  { %v3165_v63 = vpop.f32.mrb[28].mxu1 }
 0x278   :  { %v3166_v0 = vpop.f32.mrb[29].mxu1 }
 0x279   :  { %v3167_v5 = vadd.f32 %v3166_v0, %v3165_v63  ;;  %v3168_v7 = vpop.f32.mrb[30].mxu1 }
 0x27a   :  { %v3169_v8 = vpop.f32.mrb[31].mxu1 }
 0x27b   :  { %v3170_v2 = vadd.f32 %v3169_v8, %v3168_v7  ;;  %v4427_v11 = vadd.f32 %v4303_v1, %v3167_v5 }
 0x27d   :  { %v4430_v6 = vadd.f32 %v4310_v4, %v3170_v2 }
 0x27f   :  { %v3171_v13 = vpop.f32.mrb[32].mxu1 }
 0x280   :  { %v3172_v15 = vpop.f32.mrb[33].mxu1 }
 0x281   :  { %v3173_v16 = vadd.f32 %v3172_v15, %v3171_v13  ;;  %v3174_v19 = vpop.f32.mrb[34].mxu1 }
 0x282   :  { %v3175_v21 = vpop.f32.mrb[35].mxu1 }
 0x283   :  { %v3176_v23 = vadd.f32 %v3175_v21, %v3174_v19  ;;  %v4433_v24 = vadd.f32 %v3173_v16, %v4325_v10 }
 0x285   :  { %v4436_v25 = vadd.f32 %v3176_v23, %v4335_v14 }
 0x287   :  { %v3177_v26 = vpop.f32.mrb[36].mxu1 }
 0x288   :  { %v3178_v27 = vpop.f32.mrb[37].mxu1 }
 0x289   :  { %v3179_v1 = vadd.f32 %v3178_v27, %v3177_v26  ;;  %v3180_v28 = vpop.f32.mrb[38].mxu1 }
 0x28a   :  { %v3181_v29 = vpop.f32.mrb[39].mxu1 }
 0x28b   :  { %v3182_v30 = vadd.f32 %v3181_v29, %v3180_v28  ;;  %v4439_v4 = vadd.f32 %v4323_v9, %v3179_v1 }
 0x28d   :  { %v4442_v31 = vadd.f32 %v4330_v12, %v3182_v30 }
 0x28f   :  { %v3183_v32 = vpop.f32.mrb[40].mxu1 }
 0x290   :  { %v3184_v33 = vpop.f32.mrb[41].mxu1 }
 0x291   :  { %v3185_v34 = vadd.f32 %v3184_v33, %v3183_v32  ;;  %v3186_v10 = vpop.f32.mrb[42].mxu1 }
 0x292   :  { %v3187_v35 = vpop.f32.mrb[43].mxu1 }
 0x293   :  { %v3188_v36 = vadd.f32 %v3187_v35, %v3186_v10  ;;  %v4445_v14 = vadd.f32 %v3185_v34, %v4345_v18 }
 0x295   :  { %v4448_v37 = vadd.f32 %v3188_v36, %v4355_v22 }
 0x297   :  { %v3189_v38 = vpop.f32.mrb[44].mxu1 }
 0x298   :  { %v3190_v39 = vpop.f32.mrb[45].mxu1 }
 0x299   :  { %v3191_v40 = vadd.f32 %v3190_v39, %v3189_v38  ;;  %v3192_v9 = vpop.f32.mrb[46].mxu1 }
 0x29a   :  { %v3193_v43 = vpop.f32.mrb[47].mxu1 }
 0x29b   :  { %v3194_v44 = vadd.f32 %v3193_v43, %v3192_v9  ;;  %v4451_v12 = vadd.f32 %v4343_v17, %v3191_v40 }
 0x29d   :  { %v4454_v45 = vadd.f32 %v4350_v20, %v3194_v44 }
 0x29f   :  { %v3195_v46 = vpop.f32.mrb[48].mxu1 }
 0x2a0   :  { %v3196_v47 = vpop.f32.mrb[49].mxu1 }
 0x2a1   :  { %v4456_v48 = vadd.f32 %v3196_v47, %v3195_v46  ;;  %v3198_v18 = vpop.f32.mrb[50].mxu1  ;;  %v4491_v47 = vld [vmem:[%s5212_s5] ss:$0 sm:$0xff] }
 0x2a2   :  { %v3199_v49 = vpop.f32.mrb[51].mxu1 }
 0x2a3   :  { %v4458_v22 = vadd.f32 %v3199_v49, %v3198_v18 }
 0x2a7   :  { %v3201_v50 = vpop.f32.mrb[52].mxu1 }
 0x2a8   :  { %v3202_v53 = vpop.f32.mrb[53].mxu1 }
 0x2a9   :  { %v4460_v54 = vadd.f32 %v3202_v53, %v3201_v50  ;;  %v3204_v55 = vpop.f32.mrb[54].mxu1 }
 0x2aa   :  { %v3205_v56 = vpop.f32.mrb[55].mxu1 }
 0x2ab   :  { %v4462_v58 = vadd.f32 %v3205_v56, %v3204_v55 }
 0x2af   :  { %v3207_v17 = vpop.f32.mrb[56].mxu1 }
 0x2b0   :  { %v3208_v59 = vpop.f32.mrb[57].mxu1 }
 0x2b1   :  { %v4464_v20 = vadd.f32 %v3208_v59, %v3207_v17  ;;  %v3210_v61 = vpop.f32.mrb[58].mxu1 }
 0x2b2   :  { %v3211_v60 = vpop.f32.mrb[59].mxu1 }
 0x2b3   :  { %v4466_v63 = vadd.f32 %v3211_v60, %v3210_v61 }
 0x2b7   :  { %v3213_v0 = vpop.f32.mrb[60].mxu1 }
 0x2b8   :  { %v3214_v3 = vpop.f32.mrb[61].mxu1 }
 0x2b9   :  { %v4468_v5 = vadd.f32 %v3214_v3, %v3213_v0  ;;  %v3216_v7 = vpop.f32.mrb[62].mxu1 }
 0x2ba   :  { %v3217_v8 = vpop.f32.mrb[63].mxu1 }
 0x2bb   :  { %v4470_v2 = vadd.f32 %v3217_v8, %v3216_v7 }
 0x2bf   :  { %v3219_v13 = vpop.f32.mrb[64].mxu1 }
 0x2c0   :  { %v3220_v15 = vpop.f32.mrb[65].mxu1 }
 0x2c1   :  { %v4472_v16 = vadd.f32 %v3220_v15, %v3219_v13  ;;  %v3222_v19 = vpop.f32.mrb[66].mxu1 }
 0x2c2   :  { %v3223_v21 = vpop.f32.mrb[67].mxu1 }
 0x2c3   :  { %v4474_v23 = vadd.f32 %v3223_v21, %v3222_v19 }
 0x2c7   :  { %v3225_v26 = vpop.f32.mrb[68].mxu1 }
 0x2c8   :  { %v3226_v27 = vpop.f32.mrb[69].mxu1 }
 0x2c9   :  { %v4476_v1 = vadd.f32 %v3226_v27, %v3225_v26  ;;  %v3228_v28 = vpop.f32.mrb[70].mxu1 }
 0x2ca   :  { %v3229_v29 = vpop.f32.mrb[71].mxu1 }
 0x2cb   :  { %v4478_v30 = vadd.f32 %v3229_v29, %v3228_v28 }
 0x2cf   :  { %v3231_v32 = vpop.f32.mrb[72].mxu1 }
 0x2d0   :  { %v3232_v33 = vpop.f32.mrb[73].mxu1 }
 0x2d1   :  { %v4480_v34 = vadd.f32 %v3232_v33, %v3231_v32  ;;  %v3234_v10 = vpop.f32.mrb[74].mxu1 }
 0x2d2   :  { %v3235_v35 = vpop.f32.mrb[75].mxu1 }
 0x2d3   :  { %v4482_v36 = vadd.f32 %v3235_v35, %v3234_v10 }
 0x2d7   :  { %v3237_v38 = vpop.f32.mrb[76].mxu1 }
 0x2d8   :  { %v3238_v39 = vpop.f32.mrb[77].mxu1 }
 0x2d9   :  { %v4484_v40 = vadd.f32 %v3238_v39, %v3237_v38  ;;  %v3240_v9 = vpop.f32.mrb[78].mxu1 }
 0x2da   :  { %v3241_v43 = vpop.f32.mrb[79].mxu1 }
 0x2db   :  { %v4486_v44 = vadd.f32 %v3241_v43, %v3240_v9 }
 0x2df   :  { %v3357_v46 = vpop.f32.mrb[80].mxu1 }
 0x2e0   :  { %v1801_v18 = vadd.f32 %v3357_v46, %v4406_v51  ;;  %v1792_v49 = vpop.f32.mrb[81].mxu1 }
 0x2e1   :  { %v1793_v50 = vadd.f32 %v1792_v49, %v4394_v41  ;;  %v3358_v53 = vpop.f32.mrb[82].mxu1 }
 0x2e2   :  { %v4496_v55 = vadd.f32 %v4491_v47, %v1801_v18  ;;  %v1804_v56 = vadd.f32 %v3358_v53, %v4409_v52  ;;  %v1795_v17 = vpop.f32.mrb[83].mxu1 }
 0x2e3   :  { %v4500_v59 = vadd.f32 %v4491_v47, %v1793_v50  ;;  %v1796_v61 = vadd.f32 %v1795_v17, %v4397_v42 }
 0x2e4   :  { %v1992_v60 = vmin.f32 %v4496_v55, 0.0  ;;  %v4505_v0 = vadd.f32 %v4491_v47, %v1804_v56  ;;  %vm1960_vm0 = vcmp.gt.f32.partialorder %v4496_v55, 0.0 }
 0x2e5   :  { %v1990_v51 = vmin.f32 %v4500_v59, 0.0  ;;  %v4509_v41 = vadd.f32 %v4491_v47, %v1796_v61  ;;  %vm1958_vm2 = vcmp.gt.f32.partialorder %v4500_v59, 0.0 }
 0x2e6   :  { %v2026_v3 = vmul.f32 1.442695, %v1992_v60  ;;  %v1993_v7 = vmin.f32 %v4505_v0, 0.0  ;;  %vm1961_vm1 = vcmp.gt.f32.partialorder %v4505_v0, 0.0 }
 0x2e7   :  { %v2022_v52 = vmul.f32 1.442695, %v1990_v51  ;;  %v1991_v8 = vmin.f32 %v4509_v41, 0.0  ;;  %v3361_v13 = vpop.f32.mrb[84].mxu1  ;;  %vm1959_vm3 = vcmp.gt.f32.partialorder %v4509_v41, 0.0 }
 0x2e8   :  { %3683 = vpow2.f32 %v2026_v3  ;;  %v2028_v15 = vmul.f32 1.442695, %v1993_v7  ;;  %v1817_v42 = vadd.f32 %v3361_v13, %v4427_v11  ;;  %v1808_v19 = vpop.f32.mrb[85].mxu1 }
 0x2e9   :  { %3685 = vpow2.f32 %v2022_v52  ;;  %v2024_v21 = vmul.f32 1.442695, %v1991_v8  ;;  %v1809_v26 = vadd.f32 %v1808_v19, %v4415_v57  ;;  %v3362_v27 = vpop.f32.mrb[86].mxu1 }
 0x2ea   :  { %3687 = vpow2.f32 %v2028_v15  ;;  %v4516_v28 = vadd.f32 %v4491_v47, %v1817_v42  ;;  %v1820_v29 = vadd.f32 %v3362_v27, %v4430_v6  ;;  %v1811_v32 = vpop.f32.mrb[87].mxu1 }
 0x2eb   :  { %3689 = vpow2.f32 %v2024_v21  ;;  %v4520_v33 = vadd.f32 %v4491_v47, %v1809_v26  ;;  %v1812_v10 = vadd.f32 %v1811_v32, %v4421_v62 }
 0x2ec   :  { %v1996_v11 = vmin.f32 %v4516_v28, 0.0  ;;  %v4525_v35 = vadd.f32 %v4491_v47, %v1820_v29  ;;  %vm1964_vm4 = vcmp.gt.f32.partialorder %v4516_v28, 0.0 }
 0x2ed   :  { %v1994_v57 = vmin.f32 %v4520_v33, 0.0  ;;  %v4529_v38 = vadd.f32 %v4491_v47, %v1812_v10  ;;  %vm1962_vm5 = vcmp.gt.f32.partialorder %v4520_v33, 0.0 }
 0x2ee   :  { %v2034_v39 = vmul.f32 1.442695, %v1996_v11  ;;  %v1997_v6 = vmin.f32 %v4525_v35, 0.0  ;;  %vm1965_vm7 = vcmp.gt.f32.partialorder %v4525_v35, 0.0 }
 0x2ef   :  { %v2030_v9 = vmul.f32 1.442695, %v1994_v57  ;;  %v1995_v43 = vmin.f32 %v4529_v38, 0.0  ;;  %v3365_v46 = vpop.f32.mrb[88].mxu1  ;;  %vm1963_vm6 = vcmp.gt.f32.partialorder %v4529_v38, 0.0 }
 0x2f0   :  { %3691 = vpow2.f32 %v2034_v39  ;;  %v2036_v18 = vmul.f32 1.442695, %v1997_v6  ;;  %v1833_v62 = vadd.f32 %v3365_v46, %v4439_v4  ;;  %v1824_v49 = vpop.f32.mrb[89].mxu1 }
 0x2f1   :  { %3693 = vpow2.f32 %v2030_v9  ;;  %v2032_v50 = vmul.f32 1.442695, %v1995_v43  ;;  %v1825_v53 = vadd.f32 %v1824_v49, %v4433_v24  ;;  %v3366_v56 = vpop.f32.mrb[90].mxu1 }
 0x2f2   :  { %v3684_v17 = vpop.eup %3683  ;;  %3695 = vpow2.f32 %v2036_v18  ;;  %v4536_v61 = vadd.f32 %v4491_v47, %v1833_v62  ;;  %v1836_v60 = vadd.f32 %v3366_v56, %v4442_v31  ;;  %v1827_v51 = vpop.f32.mrb[91].mxu1 }
 0x2f3   :  { %v3686_v3 = vpop.eup %3685  ;;  %v2956_v7 = vadd.f32 -1.0, %v3684_v17  ;;  %3697 = vpow2.f32 %v2032_v50  ;;  %v4540_v52 = vadd.f32 %v4491_v47, %v1825_v53  ;;  %v1828_v4 = vadd.f32 %v1827_v51, %v4436_v25 }
 0x2f4   :  { %v3688_v8 = vpop.eup %3687  ;;  %v2000_v24 = vmin.f32 %v4536_v61, 0.0  ;;  %v4545_v13 = vadd.f32 %v4491_v47, %v1836_v60  ;;  %v2954_v26 = vadd.f32 -1.0, %v3686_v3  ;;  %vm1968_vm8 = vcmp.gt.f32.partialorder %v4536_v61, 0.0 }
 0x2f5   :  { %v3690_v15 = vpop.eup %3689  ;;  %v2957_v42 = vadd.f32 -1.0, %v3688_v8  ;;  %v1998_v31 = vmin.f32 %v4540_v52, 0.0  ;;  %v4551_v21 = vadd.f32 %v4491_v47, %v1828_v4  ;;  %v2120_v25 = vsel %vm1960_vm0, %v4496_v55, %v2956_v7 }
 0x2f6   :  { %v2042_v19 = vmul.f32 1.442695, %v2000_v24  ;;  %v2955_v10 = vadd.f32 -1.0, %v3690_v15  ;;  %v2001_v57 = vmin.f32 %v4545_v13, 0.0  ;;  %v2118_v62 = vsel %vm1958_vm2, %v4500_v59, %v2954_v26 }
 0x2f7   :  { %v2121_v27 = vsel %vm1961_vm1, %v4505_v0, %v2957_v42  ;;  %v2038_v29 = vmul.f32 1.442695, %v1998_v31  ;;  %v3369_v32 = vpop.f32.mrb[92].mxu1  ;;  %v1999_v6 = vmin.f32 %v4551_v21, 0.0  ;;  %vm1966_vm9 = vcmp.gt.f32.partialorder %v4540_v52, 0.0 }
 0x2f8   :  { %v2151_v11 = vpack.c.bf16 %v2121_v27, %v2120_v25  ;;  %v1840_v39 = vpop.f32.mrb[93].mxu1  ;;  %v1849_v9 = vadd.f32 %v3369_v32, %v4451_v12  ;;  %3699 = vpow2.f32 %v2042_v19  ;;  %v2119_v49 = vsel %vm1959_vm3, %v4509_v41, %v2955_v10 }
 0x2f9   :  { %v1841_v43 = vadd.f32 %v1840_v39, %v4445_v14  ;;  %v3370_v55 = vpop.f32.mrb[94].mxu1  ;;  %3701 = vpow2.f32 %v2038_v29  ;;  %v2040_v53 = vmul.f32 1.442695, %v1999_v6  ;;  %v2044_v14 = vmul.f32 1.442695, %v2001_v57 }
 0x2fa   :  { %v3692_v46 = vpop.eup %3691  ;;  %v1852_v0 = vadd.f32 %v3370_v55, %v4454_v45  ;;  %v1843_v18 = vpop.f32.mrb[95].mxu1  ;;  %v4569_v60 = vadd.f32 %v4491_v47, %v1849_v9  ;;  %v2150_v51 = vpack.c.bf16 %v2119_v49, %v2118_v62  ;;  %vm1969_vm10 = vcmp.gt.f32.partialorder %v4545_v13, 0.0 }
 0x2fb   :  { %v3694_v50 = vpop.eup %3693  ;;  %v4565_v56 = vadd.f32 %v4491_v47, %v1841_v43  ;;  %v1844_v12 = vadd.f32 %v1843_v18, %v4448_v37  ;;  %3703 = vpow2.f32 %v2040_v53  ;;  %v2960_v8 = vadd.f32 -1.0, %v3692_v46 }
 0x2fc   :  { %v3696_v17 = vpop.eup %3695  ;;  %v4572_v45 = vadd.f32 %v4491_v47, %v1852_v0  ;;  %v2958_v41 = vadd.f32 -1.0, %v3694_v50  ;;  %3403 = vmatprep.mubr.bf16.mxu0 %v2150_v51  ;;  %3705 = vpow2.f32 %v2044_v14  ;;  %v2004_v15 = vmin.f32 %v4569_v60, 0.0 }
 0x2fd   :  { %v3698_v59 = vpop.eup %3697  ;;  %v2002_v3 = vmin.f32 %v4565_v56, 0.0  ;;  %v4578_v37 = vadd.f32 %v4491_v47, %v1844_v12  ;;  %3404 = vmatmul.mubr.bf16.vlgmr.msra.gmra.mrb[80].mxu0 %v2151_v11  ;;  %v2961_v24 = vadd.f32 -1.0, %v3696_v17  ;;  %v2124_v9 = vsel %vm1964_vm4, %v4516_v28, %v2960_v8 }
 0x2fe   :  { %v2959_v4 = vadd.f32 -1.0, %v3698_v59  ;;  %v2005_v42 = vmin.f32 %v4572_v45, 0.0  ;;  %v2122_v27 = vsel %vm1962_vm5, %v4520_v33, %v2958_v41  ;;  %v2050_v43 = vmul.f32 1.442695, %v2004_v15 }
 0x2ff   :  { %v3373_v7 = vpop.f32.mrb[0].mxu1  ;;  %v2003_v31 = vmin.f32 %v4578_v37, 0.0  ;;  %v2046_v19 = vmul.f32 1.442695, %v2002_v3  ;;  %v2125_v33 = vsel %vm1965_vm7, %v4525_v35, %v2961_v24  ;;  %vm1967_vm11 = vcmp.gt.f32.partialorder %v4551_v21, 0.0 }
 0x300   :  { %v3483_v26 = vadd.f32 %v3373_v7, %v4460_v54  ;;  %v1856_v25 = vpop.f32.mrb[1].mxu1  ;;  %v2123_v29 = vsel %vm1963_vm6, %v4529_v38, %v2959_v4  ;;  %v2153_v46 = vpack.c.bf16 %v2125_v33, %v2124_v9  ;;  %v2052_v18 = vmul.f32 1.442695, %v2005_v42 }
 0x301   :  { %v2048_v32 = vmul.f32 1.442695, %v2003_v31  ;;  %v3484_v10 = vadd.f32 %v4456_v48, %v1856_v25  ;;  %v3374_v11 = vpop.f32.mrb[2].mxu1  ;;  %v2152_v57 = vpack.c.bf16 %v2123_v29, %v2122_v27  ;;  %3707 = vpow2.f32 %v2046_v19 }
 0x302   :  { %v4592_v39 = vadd.f32 %v3483_v26, %v4491_v47  ;;  %v3485_v6 = vadd.f32 %v3374_v11, %v4462_v58  ;;  %v1859_v54 = vpop.f32.mrb[3].mxu1  ;;  %v3700_v38 = vpop.eup %3699  ;;  %vm1970_vm12 = vcmp.gt.f32.partialorder %v4565_v56, 0.0  ;;  %vm1972_vm13 = vcmp.gt.f32.partialorder %v4569_v60, 0.0 }
 0x303   :  { %v4600_v55 = vadd.f32 %v3484_v10, %v4491_v47  ;;  %v3486_v48 = vadd.f32 %v4458_v22, %v1859_v54  ;;  %3407 = vmatprep.mubr.bf16.mxu0 %v2152_v57  ;;  %v3702_v0 = vpop.eup %3701  ;;  %3709 = vpow2.f32 %v2048_v32  ;;  %v2964_v42 = vadd.f32 -1.0, %v3700_v38 }
 0x304   :  { %v2008_v58 = vmin.f32 %v4592_v39, 0.0  ;;  %v4605_v62 = vadd.f32 %v3485_v6, %v4491_v47  ;;  %3711 = vpow2.f32 %v2050_v43  ;;  %v2962_v14 = vadd.f32 -1.0, %v3702_v0 }
 0x305   :  { %v2006_v28 = vmin.f32 %v4600_v55, 0.0  ;;  %v4609_v35 = vadd.f32 %v3486_v48, %v4491_v47  ;;  %v3704_v49 = vpop.eup %3703  ;;  %3408 = vmatmul.mubr.bf16.gmra.mrb[84].mxu0 %v2153_v46  ;;  %3713 = vpow2.f32 %v2052_v18  ;;  %v2128_v33 = vsel %vm1968_vm8, %v4536_v61, %v2964_v42 }
 0x306   :  { %v2009_v22 = vmin.f32 %v4605_v62, 0.0  ;;  %v2058_v51 = vmul.f32 1.442695, %v2008_v58  ;;  %v2963_v3 = vadd.f32 -1.0, %v3704_v49  ;;  %v3706_v7 = vpop.eup %3705  ;;  %vm1973_vm14 = vcmp.gt.f32.partialorder %v4572_v45, 0.0 }
 0x307   :  { %v3377_v50 = vpop.f32.mrb[4].mxu1  ;;  %v2007_v53 = vmin.f32 %v4609_v35, 0.0  ;;  %v2054_v4 = vmul.f32 1.442695, %v2006_v28  ;;  %v2965_v11 = vadd.f32 -1.0, %v3706_v7  ;;  %vm1971_vm15 = vcmp.gt.f32.partialorder %v4578_v37, 0.0 }
 0x308   :  { %v3487_v12 = vadd.f32 %v3377_v50, %v4468_v5  ;;  %v1872_v17 = vpop.f32.mrb[5].mxu1  ;;  %v2060_v31 = vmul.f32 1.442695, %v2009_v22  ;;  %3715 = vpow2.f32 %v2058_v51  ;;  %vm1974_vm0 = vcmp.gt.f32.partialorder %v4600_v55, 0.0 }
 0x309   :  { %v3488_v59 = vadd.f32 %v4464_v20, %v1872_v17  ;;  %v3378_v41 = vpop.f32.mrb[6].mxu1  ;;  %v2127_v20 = vsel %vm1967_vm11, %v4551_v21, %v2963_v3  ;;  %v2056_v26 = vmul.f32 1.442695, %v2007_v53  ;;  %3717 = vpow2.f32 %v2054_v4 }
 0x30a   :  { %v4620_v8 = vadd.f32 %v3487_v12, %v4491_v47  ;;  %v3489_v24 = vadd.f32 %v3378_v41, %v4470_v2  ;;  %v1875_v15 = vpop.f32.mrb[7].mxu1  ;;  %v2126_v2 = vsel %vm1966_vm9, %v4540_v52, %v2962_v14  ;;  %3719 = vpow2.f32 %v2060_v31 }
 0x30b   :  { %v4624_v5 = vadd.f32 %v3488_v59, %v4491_v47  ;;  %v3490_v19 = vadd.f32 %v4466_v63, %v1875_v15  ;;  %v2154_v63 = vpack.c.bf16 %v2127_v20, %v2126_v2  ;;  %v3708_v57 = vpop.eup %3707  ;;  %3721 = vpow2.f32 %v2056_v26 }
 0x30c   :  { %v2012_v25 = vmin.f32 %v4620_v8, 0.0  ;;  %v4632_v27 = vadd.f32 %v3489_v24, %v4491_v47  ;;  %v2129_v38 = vsel %vm1969_vm10, %v4545_v13, %v2965_v11  ;;  %v2966_v13 = vadd.f32 -1.0, %v3708_v57 }
 0x30d   :  { %v2010_v29 = vmin.f32 %v4624_v5, 0.0  ;;  %v4639_v32 = vadd.f32 %v3490_v19, %v4491_v47  ;;  %3411 = vmatprep.mubr.bf16.mxu0 %v2154_v63  ;;  %v3710_v9 = vpop.eup %3709  ;;  %v2155_v0 = vpack.c.bf16 %v2129_v38, %v2128_v33  ;;  %vm1975_vm1 = vcmp.gt.f32.partialorder %v4609_v35, 0.0 }
 0x30e   :  { %v2066_v10 = vmul.f32 1.442695, %v2012_v25  ;;  %v2013_v21 = vmin.f32 %v4632_v27, 0.0  ;;  %v3712_v28 = vpop.eup %3711  ;;  %v2967_v17 = vadd.f32 -1.0, %v3710_v9  ;;  %v2130_v59 = vsel %vm1970_vm12, %v4565_v56, %v2966_v13 }
 0x30f   :  { %v2062_v6 = vmul.f32 1.442695, %v2010_v29  ;;  %v2011_v54 = vmin.f32 %v4639_v32, 0.0  ;;  %v3381_v52 = vpop.f32.mrb[8].mxu1  ;;  %v3714_v53 = vpop.eup %3713  ;;  %3412 = vmatmul.mubr.bf16.gmra.mrb[88].mxu0 %v2155_v0  ;;  %v2968_v42 = vadd.f32 -1.0, %v3712_v28  ;;  %vm1976_vm2 = vcmp.gt.f32.partialorder %v4592_v39, 0.0 }
 0x310   :  { %v3491_v43 = vadd.f32 %v3381_v52, %v4476_v1  ;;  %v1888_v48 = vpop.f32.mrb[9].mxu1  ;;  %3723 = vpow2.f32 %v2066_v10  ;;  %v2068_v49 = vmul.f32 1.442695, %v2013_v21  ;;  %vm1977_vm3 = vcmp.gt.f32.partialorder %v4605_v62, 0.0 }
 0x311   :  { %v2064_v46 = vmul.f32 1.442695, %v2011_v54  ;;  %v3492_v18 = vadd.f32 %v4472_v16, %v1888_v48  ;;  %v3382_v58 = vpop.f32.mrb[10].mxu1  ;;  %3725 = vpow2.f32 %v2062_v6  ;;  %v2132_v29 = vsel %vm1972_vm13, %v4569_v60, %v2968_v42 }
 0x312   :  { %v4655_v22 = vadd.f32 %v3491_v43, %v4491_v47  ;;  %v3493_v61 = vadd.f32 %v3382_v58, %v4478_v30  ;;  %v1891_v50 = vpop.f32.mrb[11].mxu1  ;;  %v3716_v4 = vpop.eup %3715  ;;  %vm1980_vm4 = vcmp.gt.f32.partialorder %v4620_v8, 0.0  ;;  %vm1978_vm5 = vcmp.gt.f32.partialorder %v4624_v5, 0.0 }
 0x313   :  { %v4659_v1 = vadd.f32 %v3492_v18, %v4491_v47  ;;  %v3494_v12 = vadd.f32 %v4474_v23, %v1891_v50  ;;  %3727 = vpow2.f32 %v2064_v46  ;;  %v2131_v23 = vsel %vm1971_vm15, %v4578_v37, %v2967_v17  ;;  %v3718_v19 = vpop.eup %3717 }
 0x314   :  { %v2016_v16 = vmin.f32 %v4655_v22, 0.0  ;;  %v4665_v14 = vadd.f32 %v3493_v61, %v4491_v47  ;;  %3729 = vpow2.f32 %v2068_v49  ;;  %v2156_v7 = vpack.c.bf16 %v2131_v23, %v2130_v59  ;;  %v3720_v25 = vpop.eup %3719 }
 0x315   :  { %v2014_v30 = vmin.f32 %v4659_v1, 0.0  ;;  %v4669_v51 = vadd.f32 %v3494_v12, %v4491_v47  ;;  %v2969_v37 = vadd.f32 -1.0, %v3714_v53  ;;  %v3722_v21 = vpop.eup %3721  ;;  %v2970_v33 = vadd.f32 -1.0, %v3718_v19 }
 0x316   :  { %v2074_v41 = vmul.f32 1.442695, %v2016_v16  ;;  %v2017_v3 = vmin.f32 %v4665_v14, 0.0  ;;  %3415 = vmatprep.mubr.bf16.mxu0 %v2156_v7  ;;  %v2971_v48 = vadd.f32 -1.0, %v3722_v21  ;;  %vm1981_vm6 = vcmp.gt.f32.partialorder %v4632_v27, 0.0 }
 0x317   :  { %v2070_v24 = vmul.f32 1.442695, %v2014_v30  ;;  %v2015_v15 = vmin.f32 %v4669_v51, 0.0  ;;  %v3385_v31 = vpop.f32.mrb[12].mxu1  ;;  %vm1979_vm7 = vcmp.gt.f32.partialorder %v4639_v32, 0.0  ;;  %v2134_v28 = vsel %vm1974_vm0, %v4600_v55, %v2970_v33 }
 0x318   :  { %3731 = vpow2.f32 %v2074_v41  ;;  %v2076_v56 = vmul.f32 1.442695, %v2017_v3  ;;  %v3495_v20 = vadd.f32 %v3385_v31, %v4484_v40  ;;  %v1904_v26 = vpop.f32.mrb[13].mxu1  ;;  %v2133_v40 = vsel %vm1973_vm14, %v4572_v45, %v2969_v37  ;;  %v4756_v33 = vld [vmem:[%s5214_s7] ss:$0 sm:$0xff] }
 0x319   :  { %3733 = vpow2.f32 %v2070_v24  ;;  %v2072_v2 = vmul.f32 1.442695, %v2015_v15  ;;  %v3496_v63 = vadd.f32 %v4480_v34, %v1904_v26  ;;  %v3386_v10 = vpop.f32.mrb[14].mxu1  ;;  %v2157_v60 = vpack.c.bf16 %v2133_v40, %v2132_v29 }
 0x31a   :  { %3735 = vpow2.f32 %v2076_v56  ;;  %v4690_v11 = vadd.f32 %v3495_v20, %v4491_v47  ;;  %v3497_v57 = vadd.f32 %v3386_v10, %v4486_v44  ;;  %v1907_v6 = vpop.f32.mrb[15].mxu1  ;;  %v3724_v54 = vpop.eup %3723  ;;  %v2972_v13 = vadd.f32 -1.0, %v3716_v4 }
 0x31b   :  { %3737 = vpow2.f32 %v2072_v2  ;;  %v4694_v34 = vadd.f32 %v3496_v63, %v4491_v47  ;;  %v3498_v52 = vadd.f32 %v4482_v36, %v1907_v6  ;;  %v3726_v38 = vpop.eup %3725  ;;  %3416 = vmatmul.mubr.bf16.gmra.mrb[92].mxu0 %v2157_v60  ;;  %v2973_v12 = vadd.f32 -1.0, %v3720_v25 }
 0x31c   :  { %v2020_v9 = vmin.f32 %v4690_v11, 0.0  ;;  %v4700_v45 = vadd.f32 %v3497_v57, %v4491_v47  ;;  %v2974_v17 = vadd.f32 -1.0, %v3726_v38  ;;  %v2136_v55 = vsel %vm1976_vm2, %v4592_v39, %v2972_v13 }
 0x31d   :  { %v2018_v44 = vmin.f32 %v4694_v34, 0.0  ;;  %v4705_v43 = vadd.f32 %v3498_v52, %v4491_v47  ;;  %v3728_v46 = vpop.eup %3727  ;;  %v2135_v47 = vsel %vm1975_vm1, %v4609_v35, %v2971_v48  ;;  %v2976_v59 = vadd.f32 -1.0, %v3724_v54 }
 0x31e   :  { %v2082_v36 = vmul.f32 1.442695, %v2020_v9  ;;  %v2021_v0 = vmin.f32 %v4700_v45, 0.0  ;;  %v3730_v49 = vpop.eup %3729  ;;  %v2158_v50 = vpack.c.bf16 %v2135_v47, %v2134_v28  ;;  %v2975_v30 = vadd.f32 -1.0, %v3728_v46 }
 0x31f   :  { %v2078_v18 = vmul.f32 1.442695, %v2018_v44  ;;  %v2019_v58 = vmin.f32 %v4705_v43, 0.0  ;;  %v2137_v35 = vsel %vm1977_vm3, %v4605_v62, %v2973_v12  ;;  %v2138_v41 = vsel %vm1978_vm5, %v4624_v5, %v2974_v17 }
 0x320   :  { %3739 = vpow2.f32 %v2082_v36  ;;  %v2084_v61 = vmul.f32 1.442695, %v2021_v0  ;;  %3419 = vmatprep.mubr.bf16.mxu0 %v2158_v50  ;;  %v2977_v3 = vadd.f32 -1.0, %v3730_v49  ;;  %v2159_v4 = vpack.c.bf16 %v2137_v35, %v2136_v55 }
 0x321   :  { %3741 = vpow2.f32 %v2078_v18  ;;  %v2080_v53 = vmul.f32 1.442695, %v2019_v58  ;;  %v2139_v24 = vsel %vm1979_vm7, %v4639_v32, %v2975_v30  ;;  %v2140_v39 = vsel %vm1980_vm4, %v4620_v8, %v2976_v59 }
 0x322   :  { %v3732_v16 = vpop.eup %3731  ;;  %3743 = vpow2.f32 %v2084_v61  ;;  %v2160_v31 = vpack.c.bf16 %v2139_v24, %v2138_v41  ;;  %v2141_v62 = vsel %vm1981_vm6, %v4632_v27, %v2977_v3  ;;  %vm1984_vm8 = vcmp.gt.f32.partialorder %v4655_v22, 0.0 }
 0x323   :  { %v3734_v23 = vpop.eup %3733  ;;  %3745 = vpow2.f32 %v2080_v53  ;;  %v2980_v19 = vadd.f32 -1.0, %v3732_v16  ;;  %vm1985_vm9 = vcmp.gt.f32.partialorder %v4665_v14, 0.0  ;;  %3420 = vmatmul.mubr.bf16.gmra.mrb[96].mxu0 %v2159_v4  ;;  %v2161_v56 = vpack.c.bf16 %v2141_v62, %v2140_v39 }
 0x324   :  { %v3736_v7 = vpop.eup %3735  ;;  %v2978_v15 = vadd.f32 -1.0, %v3734_v23  ;;  %vm1982_vm10 = vcmp.gt.f32.partialorder %v4659_v1, 0.0  ;;  %vm1983_vm11 = vcmp.gt.f32.partialorder %v4669_v51, 0.0  ;;  %3423 = vmatprep.mubr.bf16.mxu0 %v2160_v31  ;;  %vm1988_vm12 = vcmp.gt.f32.partialorder %v4690_v11, 0.0 }
 0x325   :  { %v3738_v42 = vpop.eup %3737  ;;  %v2981_v5 = vadd.f32 -1.0, %v3736_v7  ;;  %v2144_v8 = vsel %vm1984_vm8, %v4655_v22, %v2980_v19  ;;  %vm1989_vm13 = vcmp.gt.f32.partialorder %v4700_v45, 0.0  ;;  %vm1986_vm14 = vcmp.gt.f32.partialorder %v4694_v34, 0.0 }
 0x326   :  { %v2979_v32 = vadd.f32 -1.0, %v3738_v42  ;;  %v2142_v27 = vsel %vm1982_vm10, %v4659_v1, %v2978_v15  ;;  %vm1987_vm15 = vcmp.gt.f32.partialorder %v4705_v43, 0.0  ;;  %v2398_v52 = vlaneseq }
 0x327   :  { %v2145_v37 = vsel %vm1985_vm9, %v4665_v14, %v2981_v5 }
 0x328   :  { %v2143_v20 = vsel %vm1983_vm11, %v4669_v51, %v2979_v32  ;;  %v2163_v26 = vpack.c.bf16 %v2145_v37, %v2144_v8  ;;  %v4751_v9 = vand.u32 127, %v2398_v52 }
 0x329   :  { %v2162_v25 = vpack.c.bf16 %v2143_v20, %v2142_v27 }
 0x32a   :  { %v3740_v2 = vpop.eup %3739  ;;  %vm2400_vm0 = vcmp.lt.s32.totalorder %v4751_v9, 7 }
 0x32b   :  { %v3742_v29 = vpop.eup %3741  ;;  %v2984_v63 = vadd.f32 -1.0, %v3740_v2  ;;  %3424 = vmatmul.mubr.bf16.gmra.mrb[100].mxu0 %v2161_v56 }
 0x32c   :  { %v3744_v10 = vpop.eup %3743  ;;  %v2982_v21 = vadd.f32 -1.0, %v3742_v29  ;;  %3427 = vmatprep.mubr.bf16.mxu0 %v2162_v25 }
 0x32d   :  { %v3746_v40 = vpop.eup %3745  ;;  %v2985_v57 = vadd.f32 -1.0, %v3744_v10  ;;  %v2148_v1 = vsel %vm1988_vm12, %v4690_v11, %v2984_v63 }
 0x32e   :  { %v2983_v22 = vadd.f32 -1.0, %v3746_v40  ;;  %v2146_v51 = vsel %vm1986_vm14, %v4694_v34, %v2982_v21 }
 0x32f   :  { %v2149_v14 = vsel %vm1989_vm13, %v4700_v45, %v2985_v57 }
 0x330   :  { %v2147_v6 = vsel %vm1987_vm15, %v4705_v43, %v2983_v22  ;;  %v2165_v54 = vpack.c.bf16 %v2149_v14, %v2148_v1 }
 0x331   :  { %v2164_v60 = vpack.c.bf16 %v2147_v6, %v2146_v51 }
 0x333   :  { %3428 = vmatmul.mubr.bf16.gmra.mrb[104].mxu0 %v2163_v26 }
 0x334   :  { %3431 = vmatprep.mubr.bf16.mxu0 %v2164_v60 }
 0x33b   :  { %3432 = vmatmul.mubr.bf16.gmra.mrb[108].mxu0 %v2165_v54 }
 0x3d0   :  { %v3405_v11 = vpop.f32.mrb[80].mxu0 }
 0x3d1   :  { %v2280_v34 = vadd.f32 %v3405_v11, %v4756_v33  ;;  %v2271_v45 = vpop.f32.mrb[81].mxu0 }
 0x3d2   :  { %v2272_v38 = vadd.f32 %v4756_v33, %v2271_v45  ;;  %v3406_v44 = vpop.f32.mrb[82].mxu0 }
 0x3d3   :  { %v2283_v43 = vadd.f32 %v3406_v44, %v4756_v33  ;;  %v2274_v48 = vpop.f32.mrb[83].mxu0  ;;  %v4764_v46 = vsel %vm2400_vm0, %v2280_v34, -1e+30 }
 0x3d4   :  { %v2275_v36 = vadd.f32 %v4756_v33, %v2274_v48  ;;  %2437 = vmax.xlane.f32.xlu1 %v4764_v46  ;;  %v4770_v0 = vsel %vm2400_vm0, %v2272_v38, -1e+30 }
 0x3d5   :  { %2433 = vmax.xlane.f32.xlu0 %v4770_v0  ;;  %v4775_v18 = vsel %vm2400_vm0, %v2283_v43, -1e+30 }
 0x3d6   :  { %v4780_v28 = vsel %vm2400_vm0, %v2275_v36, -1e+30 }
 0x3d8   :  { %2439 = vmax.xlane.f32.xlu1 %v4775_v18  ;;  %v3409_v58 = vpop.f32.mrb[84].mxu0 }
 0x3d9   :  { %v2296_v47 = vadd.f32 %v3409_v58, %v4756_v33  ;;  %v2287_v49 = vpop.f32.mrb[85].mxu0  ;;  %2435 = vmax.xlane.f32.xlu0 %v4780_v28 }
 0x3da   :  { %v3410_v61 = vpop.f32.mrb[86].mxu0  ;;  %v2288_v12 = vadd.f32 %v4756_v33, %v2287_v49 }
 0x3db   :  { %v2299_v50 = vadd.f32 %v3410_v61, %v4756_v33  ;;  %v2290_v13 = vpop.f32.mrb[87].mxu0  ;;  %v4787_v53 = vsel %vm2400_vm0, %v2296_v47, -1e+30 }
 0x3dc   :  { %v2291_v17 = vadd.f32 %v4756_v33, %v2290_v13  ;;  %v4799_v55 = vsel %vm2400_vm0, %v2288_v12, -1e+30 }
 0x3dd   :  { %2445 = vmax.xlane.f32.xlu0 %v4787_v53  ;;  %v4794_v16 = vsel %vm2400_vm0, %v2299_v50, -1e+30 }
 0x3de   :  { %2447 = vmax.xlane.f32.xlu1 %v4794_v16  ;;  %v4804_v30 = vsel %vm2400_vm0, %v2291_v17, -1e+30 }
 0x3e1   :  { %2441 = vmax.xlane.f32.xlu0 %v4799_v55 }
 0x3e2   :  { %2443 = vmax.xlane.f32.xlu1 %v4804_v30  ;;  %v3413_v59 = vpop.f32.mrb[88].mxu0 }
 0x3e3   :  { %v2312_v23 = vadd.f32 %v3413_v59, %v4756_v33  ;;  %v2303_v35 = vpop.f32.mrb[89].mxu0 }
 0x3e4   :  { %v3414_v41 = vpop.f32.mrb[90].mxu0  ;;  %v2304_v3 = vadd.f32 %v4756_v33, %v2303_v35 }
 0x3e5   :  { %v2315_v7 = vadd.f32 %v3414_v41, %v4756_v33  ;;  %v2306_v4 = vpop.f32.mrb[91].mxu0  ;;  %v4812_v24 = vsel %vm2400_vm0, %v2312_v23, -1e+30 }
 0x3e6   :  { %2453 = vmax.xlane.f32.xlu0 %v4812_v24  ;;  %v2307_v39 = vadd.f32 %v4756_v33, %v2306_v4  ;;  %v4823_v42 = vsel %vm2400_vm0, %v2304_v3, -1e+30 }
 0x3e7   :  { %v4818_v15 = vsel %vm2400_vm0, %v2315_v7, -1e+30 }
 0x3e8   :  { %2455 = vmax.xlane.f32.xlu1 %v4818_v15  ;;  %v4828_v31 = vsel %vm2400_vm0, %v2307_v39, -1e+30 }
 0x3ea   :  { %2449 = vmax.xlane.f32.xlu0 %v4823_v42 }
 0x3ec   :  { %2451 = vmax.xlane.f32.xlu1 %v4828_v31 }
 0x3ee   :  { %v3417_v62 = vpop.f32.mrb[92].mxu0 }
 0x3ef   :  { %v2328_v19 = vadd.f32 %v3417_v62, %v4756_v33  ;;  %v2319_v5 = vpop.f32.mrb[93].mxu0 }
 0x3f0   :  { %v3418_v56 = vpop.f32.mrb[94].mxu0  ;;  %v2320_v32 = vadd.f32 %v4756_v33, %v2319_v5 }
 0x3f1   :  { %v2331_v8 = vadd.f32 %v3418_v56, %v4756_v33  ;;  %v2322_v37 = vpop.f32.mrb[95].mxu0  ;;  %v4836_v27 = vsel %vm2400_vm0, %v2328_v19, -1e+30 }
 0x3f2   :  { %2461 = vmax.xlane.f32.xlu0 %v4836_v27  ;;  %v2323_v20 = vadd.f32 %v4756_v33, %v2322_v37  ;;  %v4847_v25 = vsel %vm2400_vm0, %v2320_v32, -1e+30 }
 0x3f3   :  { %v4842_v26 = vsel %vm2400_vm0, %v2331_v8, -1e+30 }
 0x3f4   :  { %2463 = vmax.xlane.f32.xlu1 %v4842_v26  ;;  %v4852_v29 = vsel %vm2400_vm0, %v2323_v20, -1e+30 }
 0x3f6   :  { %2457 = vmax.xlane.f32.xlu0 %v4847_v25  ;;  %v3421_v2 = vpop.f32.mrb[96].mxu0 }
 0x3f7   :  { %v2344_v63 = vadd.f32 %v3421_v2, %v4756_v33  ;;  %v2335_v10 = vpop.f32.mrb[97].mxu0 }
 0x3f8   :  { %2459 = vmax.xlane.f32.xlu1 %v4852_v29  ;;  %v3422_v21 = vpop.f32.mrb[98].mxu0  ;;  %v2336_v40 = vadd.f32 %v4756_v33, %v2335_v10 }
 0x3f9   :  { %v2347_v57 = vadd.f32 %v3422_v21, %v4756_v33  ;;  %v2338_v22 = vpop.f32.mrb[99].mxu0  ;;  %v4860_v1 = vsel %vm2400_vm0, %v2344_v63, -1e+30 }
 0x3fa   :  { %2469 = vmax.xlane.f32.xlu0 %v4860_v1  ;;  %v2339_v14 = vadd.f32 %v4756_v33, %v2338_v22  ;;  %v4871_v6 = vsel %vm2400_vm0, %v2336_v40, -1e+30 }
 0x3fb   :  { %v4866_v51 = vsel %vm2400_vm0, %v2347_v57, -1e+30 }
 0x3fc   :  { %2471 = vmax.xlane.f32.xlu1 %v4866_v51  ;;  %v4877_v11 = vsel %vm2400_vm0, %v2339_v14, -1e+30 }
 0x3fe   :  { %v3425_v54 = vpop.f32.mrb[100].mxu0  ;;  %2465 = vmax.xlane.f32.xlu0 %v4871_v6 }
 0x3ff   :  { %v2360_v60 = vadd.f32 %v3425_v54, %v4756_v33  ;;  %v2351_v52 = vpop.f32.mrb[101].mxu0 }
 0x400   :  { %v3426_v34 = vpop.f32.mrb[102].mxu0  ;;  %2467 = vmax.xlane.f32.xlu1 %v4877_v11  ;;  %v2352_v45 = vadd.f32 %v4756_v33, %v2351_v52 }
 0x401   :  { %v2363_v38 = vadd.f32 %v3426_v34, %v4756_v33  ;;  %v2354_v44 = vpop.f32.mrb[103].mxu0  ;;  %v4884_v43 = vsel %vm2400_vm0, %v2360_v60, -1e+30 }
 0x402   :  { %2477 = vmax.xlane.f32.xlu0 %v4884_v43  ;;  %v2355_v48 = vadd.f32 %v4756_v33, %v2354_v44  ;;  %v4895_v58 = vsel %vm2400_vm0, %v2352_v45, -1e+30 }
 0x403   :  { %v4890_v36 = vsel %vm2400_vm0, %v2363_v38, -1e+30 }
 0x404   :  { %2479 = vmax.xlane.f32.xlu1 %v4890_v36  ;;  %v4901_v50 = vsel %vm2400_vm0, %v2355_v48, -1e+30 }
 0x406   :  { %v3429_v47 = vpop.f32.mrb[104].mxu0  ;;  %2473 = vmax.xlane.f32.xlu0 %v4895_v58 }
 0x407   :  { %v2376_v49 = vadd.f32 %v3429_v47, %v4756_v33  ;;  %v2367_v61 = vpop.f32.mrb[105].mxu0 }
 0x408   :  { %v3430_v13 = vpop.f32.mrb[106].mxu0  ;;  %2475 = vmax.xlane.f32.xlu1 %v4901_v50  ;;  %v2368_v12 = vadd.f32 %v4756_v33, %v2367_v61 }
 0x409   :  { %v2379_v17 = vadd.f32 %v3430_v13, %v4756_v33  ;;  %v2370_v59 = vpop.f32.mrb[107].mxu0  ;;  %v4908_v23 = vsel %vm2400_vm0, %v2376_v49, -1e+30 }
 0x40a   :  { %2485 = vmax.xlane.f32.xlu0 %v4908_v23  ;;  %v2371_v35 = vadd.f32 %v4756_v33, %v2370_v59  ;;  %v4919_v3 = vsel %vm2400_vm0, %v2368_v12, -1e+30 }
 0x40b   :  { %v4914_v41 = vsel %vm2400_vm0, %v2379_v17, -1e+30 }
 0x40c   :  { %2487 = vmax.xlane.f32.xlu1 %v4914_v41  ;;  %v4924_v39 = vsel %vm2400_vm0, %v2371_v35, -1e+30 }
 0x40e   :  { %v3433_v7 = vpop.f32.mrb[108].mxu0  ;;  %2481 = vmax.xlane.f32.xlu0 %v4919_v3 }
 0x40f   :  { %v2383_v4 = vpop.f32.mrb[109].mxu0  ;;  %v2392_v56 = vadd.f32 %v3433_v7, %v4756_v33 }
 0x410   :  { %v2384_v62 = vadd.f32 %v4756_v33, %v2383_v4  ;;  %v3434_v19 = vpop.f32.mrb[110].mxu0  ;;  %2483 = vmax.xlane.f32.xlu1 %v4924_v39 }
 0x411   :  { %v2386_v5 = vpop.f32.mrb[111].mxu0  ;;  %v2395_v37 = vadd.f32 %v3434_v19, %v4756_v33  ;;  %v4943_v2 = vsel %vm2400_vm0, %v2392_v56, -1e+30 }
 0x412   :  { %v2387_v32 = vadd.f32 %v4756_v33, %v2386_v5  ;;  %v4932_v8 = vsel %vm2400_vm0, %v2384_v62, -1e+30 }
 0x413   :  { %2489 = vmax.xlane.f32.xlu0 %v4932_v8  ;;  %v4948_v63 = vsel %vm2400_vm0, %v2395_v37, -1e+30 }
 0x414   :  { %v4938_v20 = vsel %vm2400_vm0, %v2387_v32, -1e+30 }
 0x415   :  { %2491 = vmax.xlane.f32.xlu1 %v4938_v20 }
 0x417   :  { %2493 = vmax.xlane.f32.xlu0 %v4943_v2 }
 0x419   :  { %2495 = vmax.xlane.f32.xlu1 %v4948_v63 }
 0x461   :  { %v2438_v10 = vpop.xlane.xlu1 %2437 }
 0x462   :  { %v4952_v33 = vsub.f32 %v4764_v46, %v2438_v10  ;;  %v2434_v21 = vpop.xlane.xlu0 %2433 }
 0x463   :  { %v4955_v40 = vsub.f32 %v4770_v0, %v2434_v21 }
 0x464   :  { %v2533_v57 = vmul.f32 1.442695, %v4952_v33 }
 0x465   :  { %v2529_v22 = vmul.f32 1.442695, %v4955_v40  ;;  %v2440_v14 = vpop.xlane.xlu1 %2439 }
 0x466   :  { %3747 = vpow2.f32 %v2533_v57  ;;  %v4960_v9 = vsub.f32 %v4775_v18, %v2440_v14  ;;  %v2436_v54 = vpop.xlane.xlu0 %2435 }
 0x467   :  { %v4963_v60 = vsub.f32 %v4780_v28, %v2436_v54  ;;  %3749 = vpow2.f32 %v2529_v22 }
 0x468   :  { %v2535_v46 = vmul.f32 1.442695, %v4960_v9 }
 0x469   :  { %v2531_v0 = vmul.f32 1.442695, %v4963_v60 }
 0x46a   :  { %3751 = vpow2.f32 %v2535_v46  ;;  %v2446_v52 = vpop.xlane.xlu0 %2445 }
 0x46b   :  { %v4968_v34 = vsub.f32 %v4787_v53, %v2446_v52  ;;  %v2448_v45 = vpop.xlane.xlu1 %2447  ;;  %3753 = vpow2.f32 %v2531_v0 }
 0x46c   :  { %v4971_v38 = vsub.f32 %v4794_v16, %v2448_v45 }
 0x46d   :  { %v2541_v18 = vmul.f32 1.442695, %v4968_v34 }
 0x46e   :  { %v2543_v28 = vmul.f32 1.442695, %v4971_v38  ;;  %v2442_v44 = vpop.xlane.xlu0 %2441 }
 0x46f   :  { %3755 = vpow2.f32 %v2541_v18  ;;  %v4976_v48 = vsub.f32 %v4799_v55, %v2442_v44  ;;  %v2444_v47 = vpop.xlane.xlu1 %2443 }
 0x470   :  { %v3748_v49 = vpop.eup %3747  ;;  %v4979_v61 = vsub.f32 %v4804_v30, %v2444_v47  ;;  %3757 = vpow2.f32 %v2543_v28 }
 0x471   :  { %v2537_v53 = vmul.f32 1.442695, %v4976_v48  ;;  %2597 = vadd.xlane.f32.xlu0 %v3748_v49  ;;  %v3750_v13 = vpop.eup %3749 }
 0x472   :  { %v2539_v16 = vmul.f32 1.442695, %v4979_v61 }
 0x473   :  { %3759 = vpow2.f32 %v2537_v53  ;;  %v2454_v17 = vpop.xlane.xlu0 %2453 }
 0x474   :  { %v3752_v12 = vpop.eup %3751  ;;  %3761 = vpow2.f32 %v2539_v16  ;;  %v4984_v55 = vsub.f32 %v4812_v24, %v2454_v17 }
 0x475   :  { %2599 = vadd.xlane.f32.xlu1 %v3752_v12  ;;  %2593 = vadd.xlane.f32.xlu0 %v3750_v13  ;;  %v2456_v59 = vpop.xlane.xlu1 %2455  ;;  %v3754_v35 = vpop.eup %3753 }
 0x476   :  { %v2549_v30 = vmul.f32 1.442695, %v4984_v55  ;;  %v4988_v7 = vsub.f32 %v4818_v15, %v2456_v59 }
 0x477   :  { %v2450_v62 = vpop.xlane.xlu0 %2449 }
 0x478   :  { %3763 = vpow2.f32 %v2549_v30  ;;  %v2551_v19 = vmul.f32 1.442695, %v4988_v7  ;;  %v4992_v5 = vsub.f32 %v4823_v42, %v2450_v62 }
 0x479   :  { %v3756_v4 = vpop.eup %3755  ;;  %2595 = vadd.xlane.f32.xlu1 %v3754_v35  ;;  %v2452_v56 = vpop.xlane.xlu1 %2451 }
 0x47a   :  { %2605 = vadd.xlane.f32.xlu0 %v3756_v4  ;;  %v3758_v24 = vpop.eup %3757  ;;  %3765 = vpow2.f32 %v2551_v19  ;;  %v2545_v32 = vmul.f32 1.442695, %v4992_v5  ;;  %v4996_v37 = vsub.f32 %v4828_v31, %v2452_v56 }
 0x47c   :  { %3767 = vpow2.f32 %v2545_v32  ;;  %v2547_v10 = vmul.f32 1.442695, %v4996_v37 }
 0x47d   :  { %v3760_v15 = vpop.eup %3759  ;;  %2607 = vadd.xlane.f32.xlu1 %v3758_v24 }
 0x47e   :  { %2601 = vadd.xlane.f32.xlu0 %v3760_v15  ;;  %v3762_v57 = vpop.eup %3761  ;;  %3769 = vpow2.f32 %v2547_v10 }
 0x47f   :  { %v2462_v21 = vpop.xlane.xlu0 %2461 }
 0x480   :  { %v5000_v42 = vsub.f32 %v4836_v27, %v2462_v21 }
 0x481   :  { %v2464_v22 = vpop.xlane.xlu1 %2463  ;;  %2603 = vadd.xlane.f32.xlu1 %v3762_v57 }
 0x482   :  { %v2557_v14 = vmul.f32 1.442695, %v5000_v42  ;;  %v5004_v54 = vsub.f32 %v4842_v26, %v2464_v22  ;;  %v3764_v46 = vpop.eup %3763 }
 0x483   :  { %v2458_v31 = vpop.xlane.xlu0 %2457  ;;  %2613 = vadd.xlane.f32.xlu0 %v3764_v46 }
 0x484   :  { %3771 = vpow2.f32 %v2557_v14  ;;  %v2559_v0 = vmul.f32 1.442695, %v5004_v54  ;;  %v5008_v52 = vsub.f32 %v4847_v25, %v2458_v31  ;;  %v3766_v18 = vpop.eup %3765 }
 0x485   :  { %v2460_v45 = vpop.xlane.xlu1 %2459  ;;  %2615 = vadd.xlane.f32.xlu1 %v3766_v18 }
 0x486   :  { %3773 = vpow2.f32 %v2559_v0  ;;  %v2553_v27 = vmul.f32 1.442695, %v5008_v52  ;;  %v5012_v28 = vsub.f32 %v4852_v29, %v2460_v45  ;;  %v3768_v26 = vpop.eup %3767 }
 0x487   :  { %v2470_v47 = vpop.xlane.xlu0 %2469  ;;  %2609 = vadd.xlane.f32.xlu0 %v3768_v26 }
 0x488   :  { %3775 = vpow2.f32 %v2553_v27  ;;  %v2555_v44 = vmul.f32 1.442695, %v5012_v28  ;;  %v5016_v49 = vsub.f32 %v4860_v1, %v2470_v47  ;;  %v3770_v25 = vpop.eup %3769 }
 0x489   :  { %v2472_v53 = vpop.xlane.xlu1 %2471  ;;  %2611 = vadd.xlane.f32.xlu1 %v3770_v25 }
 0x48a   :  { %3777 = vpow2.f32 %v2555_v44  ;;  %v2565_v16 = vmul.f32 1.442695, %v5016_v49  ;;  %v5020_v13 = vsub.f32 %v4866_v51, %v2472_v53 }
 0x48b   :  { %v2466_v29 = vpop.xlane.xlu0 %2465 }
 0x48c   :  { %3779 = vpow2.f32 %v2565_v16  ;;  %v2567_v12 = vmul.f32 1.442695, %v5020_v13  ;;  %v5024_v17 = vsub.f32 %v4871_v6, %v2466_v29 }
 0x48d   :  { %v2468_v1 = vpop.xlane.xlu1 %2467 }
 0x48e   :  { %v3772_v59 = vpop.eup %3771  ;;  %3781 = vpow2.f32 %v2567_v12  ;;  %v2561_v35 = vmul.f32 1.442695, %v5024_v17  ;;  %v5028_v30 = vsub.f32 %v4877_v11, %v2468_v1 }
 0x48f   :  { %2621 = vadd.xlane.f32.xlu0 %v3772_v59  ;;  %v2478_v51 = vpop.xlane.xlu0 %2477 }
 0x490   :  { %v3774_v4 = vpop.eup %3773  ;;  %3783 = vpow2.f32 %v2561_v35  ;;  %v2563_v62 = vmul.f32 1.442695, %v5028_v30  ;;  %v5032_v19 = vsub.f32 %v4884_v43, %v2478_v51 }
 0x491   :  { %2623 = vadd.xlane.f32.xlu1 %v3774_v4  ;;  %v2480_v56 = vpop.xlane.xlu1 %2479 }
 0x492   :  { %v3776_v6 = vpop.eup %3775  ;;  %3785 = vpow2.f32 %v2563_v62  ;;  %v2573_v24 = vmul.f32 1.442695, %v5032_v19  ;;  %v5036_v32 = vsub.f32 %v4890_v36, %v2480_v56 }
 0x493   :  { %2617 = vadd.xlane.f32.xlu0 %v3776_v6  ;;  %v2474_v15 = vpop.xlane.xlu0 %2473 }
 0x494   :  { %v3778_v11 = vpop.eup %3777  ;;  %3787 = vpow2.f32 %v2573_v24  ;;  %v2575_v10 = vmul.f32 1.442695, %v5036_v32  ;;  %v5040_v21 = vsub.f32 %v4895_v58, %v2474_v15 }
 0x495   :  { %2619 = vadd.xlane.f32.xlu1 %v3778_v11  ;;  %v2476_v43 = vpop.xlane.xlu1 %2475 }
 0x496   :  { %v3780_v57 = vpop.eup %3779  ;;  %3789 = vpow2.f32 %v2575_v10  ;;  %v2569_v22 = vmul.f32 1.442695, %v5040_v21  ;;  %v5044_v14 = vsub.f32 %v4901_v50, %v2476_v43 }
 0x497   :  { %2629 = vadd.xlane.f32.xlu0 %v3780_v57  ;;  %v2486_v36 = vpop.xlane.xlu0 %2485 }
 0x498   :  { %v3782_v31 = vpop.eup %3781  ;;  %3791 = vpow2.f32 %v2569_v22  ;;  %v2571_v46 = vmul.f32 1.442695, %v5044_v14  ;;  %v5048_v0 = vsub.f32 %v4908_v23, %v2486_v36 }
 0x499   :  { %v2488_v58 = vpop.xlane.xlu1 %2487  ;;  %2631 = vadd.xlane.f32.xlu1 %v3782_v31 }
 0x49a   :  { %v3784_v45 = vpop.eup %3783  ;;  %3793 = vpow2.f32 %v2571_v46  ;;  %v2581_v18 = vmul.f32 1.442695, %v5048_v0  ;;  %v5052_v27 = vsub.f32 %v4914_v41, %v2488_v58 }
 0x49b   :  { %2625 = vadd.xlane.f32.xlu0 %v3784_v45  ;;  %v2482_v50 = vpop.xlane.xlu0 %2481 }
 0x49c   :  { %v3786_v26 = vpop.eup %3785  ;;  %3795 = vpow2.f32 %v2581_v18  ;;  %v2583_v44 = vmul.f32 1.442695, %v5052_v27  ;;  %v5056_v47 = vsub.f32 %v4919_v3, %v2482_v50 }
 0x49d   :  { %v2484_v23 = vpop.xlane.xlu1 %2483  ;;  %2627 = vadd.xlane.f32.xlu1 %v3786_v26 }
 0x49e   :  { %v3788_v25 = vpop.eup %3787  ;;  %3797 = vpow2.f32 %v2583_v44  ;;  %v2577_v53 = vmul.f32 1.442695, %v5056_v47  ;;  %v5060_v16 = vsub.f32 %v4924_v39, %v2484_v23 }
 0x49f   :  { %2637 = vadd.xlane.f32.xlu0 %v3788_v25 }
 0x4a0   :  { %v3790_v41 = vpop.eup %3789  ;;  %3799 = vpow2.f32 %v2577_v53  ;;  %v2579_v29 = vmul.f32 1.442695, %v5060_v16  ;;  %v2490_v12 = vpop.xlane.xlu0 %2489 }
 0x4a1   :  { %v5064_v59 = vsub.f32 %v4932_v8, %v2490_v12  ;;  %2639 = vadd.xlane.f32.xlu1 %v3790_v41 }
 0x4a2   :  { %v3792_v3 = vpop.eup %3791  ;;  %3801 = vpow2.f32 %v2579_v29  ;;  %v2492_v1 = vpop.xlane.xlu1 %2491 }
 0x4a3   :  { %v2585_v35 = vmul.f32 1.442695, %v5064_v59  ;;  %v5068_v4 = vsub.f32 %v4938_v20, %v2492_v1  ;;  %2633 = vadd.xlane.f32.xlu0 %v3792_v3 }
 0x4a4   :  { %v3794_v39 = vpop.eup %3793  ;;  %v2494_v51 = vpop.xlane.xlu0 %2493 }
 0x4a5   :  { %3803 = vpow2.f32 %v2585_v35  ;;  %v2587_v62 = vmul.f32 1.442695, %v5068_v4  ;;  %v5072_v6 = vsub.f32 %v4943_v2, %v2494_v51  ;;  %2635 = vadd.xlane.f32.xlu1 %v3794_v39 }
 0x4a6   :  { %v3796_v8 = vpop.eup %3795  ;;  %v2496_v56 = vpop.xlane.xlu1 %2495 }
 0x4a7   :  { %3805 = vpow2.f32 %v2587_v62  ;;  %v2589_v24 = vmul.f32 1.442695, %v5072_v6  ;;  %v5076_v11 = vsub.f32 %v4948_v63, %v2496_v56  ;;  %2645 = vadd.xlane.f32.xlu0 %v3796_v8 }
 0x4a8   :  { %v3798_v20 = vpop.eup %3797 }
 0x4a9   :  { %3807 = vpow2.f32 %v2589_v24  ;;  %v2591_v15 = vmul.f32 1.442695, %v5076_v11  ;;  %2647 = vadd.xlane.f32.xlu1 %v3798_v20 }
 0x4aa   :  { %v3800_v10 = vpop.eup %3799 }
 0x4ab   :  { %3809 = vpow2.f32 %v2591_v15  ;;  %2641 = vadd.xlane.f32.xlu0 %v3800_v10 }
 0x4ac   :  { %v3802_v2 = vpop.eup %3801 }
 0x4ad   :  { %2643 = vadd.xlane.f32.xlu1 %v3802_v2 }
 0x4af   :  { %v3804_v43 = vpop.eup %3803 }
 0x4b0   :  { %2649 = vadd.xlane.f32.xlu0 %v3804_v43 }
 0x4b1   :  { %v3806_v57 = vpop.eup %3805 }
 0x4b2   :  { %2651 = vadd.xlane.f32.xlu1 %v3806_v57 }
 0x4b3   :  { %v3808_v22 = vpop.eup %3807 }
 0x4b4   :  { %2653 = vadd.xlane.f32.xlu0 %v3808_v22 }
 0x4b5   :  { %v3810_v36 = vpop.eup %3809 }
 0x4b6   :  { %2655 = vadd.xlane.f32.xlu1 %v3810_v36 }
 0x4fe   :  { %v2598_v63 = vpop.xlane.xlu0 %2597 }
 0x4ff   :  { %3811 = vlog2.f32 %v2598_v63 }
 0x502   :  { %v2600_v31 = vpop.xlane.xlu1 %2599  ;;  %v2594_v46 = vpop.xlane.xlu0 %2593 }
 0x503   :  { %3813 = vlog2.f32 %v2600_v31 }
 0x504   :  { %3815 = vlog2.f32 %v2594_v46 }
 0x506   :  { %v2596_v58 = vpop.xlane.xlu1 %2595 }
 0x507   :  { %3817 = vlog2.f32 %v2596_v58  ;;  %v2606_v45 = vpop.xlane.xlu0 %2605 }
 0x508   :  { %3819 = vlog2.f32 %v2606_v45 }
 0x509   :  { %v3812_v18 = vpop.eup %3811 }
 0x50a   :  { %v2662_v50 = vmul.f32 0.6931472, %v3812_v18  ;;  %v2608_v26 = vpop.xlane.xlu1 %2607 }
 0x50b   :  { %3821 = vlog2.f32 %v2608_v26  ;;  %v2602_v44 = vpop.xlane.xlu0 %2601 }
 0x50c   :  { %v2723_v23 = vsub.f32 %v4952_v33, %v2662_v50  ;;  %3823 = vlog2.f32 %v2602_v44 }
 0x50d   :  { %v3814_v25 = vpop.eup %3813 }
 0x50e   :  { %v3816_v53 = vpop.eup %3815  ;;  %2755 = vst [vmem:[%s5215_s8 + $0x10] sm:$0xff] %v2723_v23  ;;  %v2664_v41 = vmul.f32 0.6931472, %v3814_v25  ;;  %v2604_v29 = vpop.xlane.xlu1 %2603 }
 0x50f   :  { %v2658_v12 = vmul.f32 0.6931472, %v3816_v53  ;;  %3825 = vlog2.f32 %v2604_v29 }
 0x510   :  { %v2724_v3 = vsub.f32 %v4960_v9, %v2664_v41  ;;  %v2614_v51 = vpop.xlane.xlu0 %2613 }
 0x511   :  { %v3818_v1 = vpop.eup %3817  ;;  %v2721_v35 = vsub.f32 %v4955_v40, %v2658_v12  ;;  %3827 = vlog2.f32 %v2614_v51 }
 0x512   :  { %v3820_v39 = vpop.eup %3819  ;;  %2756 = vst [vmem:[%s5215_s8 + $0x18] sm:$0xff] %v2724_v3  ;;  %v2660_v33 = vmul.f32 0.6931472, %v3818_v1  ;;  %v2616_v56 = vpop.xlane.xlu1 %2615 }
 0x513   :  { %2753 = vst [vmem:[%s5215_s8] sm:$0xff] %v2721_v35  ;;  %v2670_v62 = vmul.f32 0.6931472, %v3820_v39  ;;  %3829 = vlog2.f32 %v2616_v56 }
 0x514   :  { %v2722_v8 = vsub.f32 %v4963_v60, %v2660_v33  ;;  %v2610_v15 = vpop.xlane.xlu0 %2609 }
 0x515   :  { %v3822_v9 = vpop.eup %3821  ;;  %v2727_v24 = vsub.f32 %v4968_v34, %v2670_v62  ;;  %3831 = vlog2.f32 %v2610_v15 }
 0x516   :  { %v3824_v40 = vpop.eup %3823  ;;  %2754 = vst [vmem:[%s5215_s8 + $0x8] sm:$0xff] %v2722_v8  ;;  %v2672_v20 = vmul.f32 0.6931472, %v3822_v9  ;;  %v2612_v2 = vpop.xlane.xlu1 %2611 }
 0x517   :  { %2759 = vst [vmem:[%s5215_s8 + $0x30] sm:$0xff] %v2727_v24  ;;  %v2666_v10 = vmul.f32 0.6931472, %v3824_v40  ;;  %3833 = vlog2.f32 %v2612_v2 }
 0x518   :  { %v2728_v60 = vsub.f32 %v4971_v38, %v2672_v20 }
 0x519   :  { %v3826_v43 = vpop.eup %3825  ;;  %v2725_v34 = vsub.f32 %v4976_v48, %v2666_v10 }
 0x51a   :  { %2760 = vst [vmem:[%s5215_s8 + $0x38] sm:$0xff] %v2728_v60  ;;  %v2668_v57 = vmul.f32 0.6931472, %v3826_v43 }
 0x51b   :  { %2757 = vst [vmem:[%s5215_s8 + $0x20] sm:$0xff] %v2725_v34  ;;  %v3828_v63 = vpop.eup %3827 }
 0x51c   :  { %v2726_v22 = vsub.f32 %v4979_v61, %v2668_v57  ;;  %v2622_v36 = vpop.xlane.xlu0 %2621  ;;  %v2678_v38 = vmul.f32 0.6931472, %v3828_v63 }
 0x51d   :  { %3835 = vlog2.f32 %v2622_v36  ;;  %v3830_v31 = vpop.eup %3829 }
 0x51e   :  { %2758 = vst [vmem:[%s5215_s8 + $0x28] sm:$0xff] %v2726_v22  ;;  %v2624_v48 = vpop.xlane.xlu1 %2623  ;;  %v2731_v46 = vsub.f32 %v4984_v55, %v2678_v38  ;;  %v2680_v58 = vmul.f32 0.6931472, %v3830_v31 }
 0x51f   :  { %3837 = vlog2.f32 %v2624_v48  ;;  %v3832_v18 = vpop.eup %3831 }
 0x520   :  { %v2618_v45 = vpop.xlane.xlu0 %2617  ;;  %2763 = vst [vmem:[%s5215_s8 + $0x50] sm:$0xff] %v2731_v46  ;;  %v2732_v61 = vsub.f32 %v4988_v7, %v2680_v58  ;;  %v2674_v50 = vmul.f32 0.6931472, %v3832_v18 }
 0x521   :  { %3839 = vlog2.f32 %v2618_v45  ;;  %v3834_v44 = vpop.eup %3833 }
 0x522   :  { %v2620_v26 = vpop.xlane.xlu1 %2619  ;;  %2764 = vst [vmem:[%s5215_s8 + $0x58] sm:$0xff] %v2732_v61  ;;  %v2729_v55 = vsub.f32 %v4992_v5, %v2674_v50  ;;  %v2676_v23 = vmul.f32 0.6931472, %v3834_v44 }
 0x523   :  { %3841 = vlog2.f32 %v2620_v26 }
 0x524   :  { %v2630_v25 = vpop.xlane.xlu0 %2629  ;;  %2761 = vst [vmem:[%s5215_s8 + $0x40] sm:$0xff] %v2729_v55  ;;  %v2730_v53 = vsub.f32 %v4996_v37, %v2676_v23 }
 0x525   :  { %3843 = vlog2.f32 %v2630_v25 }
 0x526   :  { %v2632_v41 = vpop.xlane.xlu1 %2631  ;;  %2762 = vst [vmem:[%s5215_s8 + $0x48] sm:$0xff] %v2730_v53 }
 0x527   :  { %v3836_v7 = vpop.eup %3835  ;;  %3845 = vlog2.f32 %v2632_v41 }
 0x528   :  { %v2686_v29 = vmul.f32 0.6931472, %v3836_v7  ;;  %v2626_v3 = vpop.xlane.xlu0 %2625 }
 0x529   :  { %v3838_v12 = vpop.eup %3837  ;;  %3847 = vlog2.f32 %v2626_v3 }
 0x52a   :  { %v2735_v5 = vsub.f32 %v5000_v42, %v2686_v29  ;;  %v2688_v1 = vmul.f32 0.6931472, %v3838_v12  ;;  %v2628_v39 = vpop.xlane.xlu1 %2627 }
 0x52b   :  { %v3840_v35 = vpop.eup %3839  ;;  %3849 = vlog2.f32 %v2628_v39 }
 0x52c   :  { %2767 = vst [vmem:[%s5215_s8 + $0x70] sm:$0xff] %v2735_v5  ;;  %v2736_v37 = vsub.f32 %v5004_v54, %v2688_v1  ;;  %v2682_v33 = vmul.f32 0.6931472, %v3840_v35  ;;  %v2638_v62 = vpop.xlane.xlu0 %2637 }
 0x52d   :  { %v3842_v51 = vpop.eup %3841  ;;  %3851 = vlog2.f32 %v2638_v62 }
 0x52e   :  { %2768 = vst [vmem:[%s5215_s8 + $0x78] sm:$0xff] %v2736_v37  ;;  %v2733_v42 = vsub.f32 %v5008_v52, %v2682_v33  ;;  %v2684_v8 = vmul.f32 0.6931472, %v3842_v51  ;;  %v2640_v56 = vpop.xlane.xlu1 %2639 }
 0x52f   :  { %v3844_v9 = vpop.eup %3843  ;;  %3853 = vlog2.f32 %v2640_v56 }
 0x530   :  { %2765 = vst [vmem:[%s5215_s8 + $0x60] sm:$0xff] %v2733_v42  ;;  %v2734_v54 = vsub.f32 %v5012_v28, %v2684_v8  ;;  %v2694_v24 = vmul.f32 0.6931472, %v3844_v9  ;;  %v2634_v40 = vpop.xlane.xlu0 %2633 }
 0x531   :  { %v3846_v20 = vpop.eup %3845  ;;  %3855 = vlog2.f32 %v2634_v40 }
 0x532   :  { %2766 = vst [vmem:[%s5215_s8 + $0x68] sm:$0xff] %v2734_v54  ;;  %v2739_v52 = vsub.f32 %v5016_v49, %v2694_v24  ;;  %v2696_v15 = vmul.f32 0.6931472, %v3846_v20  ;;  %v2636_v10 = vpop.xlane.xlu1 %2635 }
 0x533   :  { %v3848_v60 = vpop.eup %3847  ;;  %3857 = vlog2.f32 %v2636_v10 }
 0x534   :  { %2771 = vst [vmem:[%s5215_s8 + $0x90] sm:$0xff] %v2739_v52  ;;  %v2740_v28 = vsub.f32 %v5020_v13, %v2696_v15  ;;  %v2690_v2 = vmul.f32 0.6931472, %v3848_v60  ;;  %v2646_v43 = vpop.xlane.xlu0 %2645 }
 0x535   :  { %v3850_v34 = vpop.eup %3849  ;;  %3859 = vlog2.f32 %v2646_v43 }
 0x536   :  { %2772 = vst [vmem:[%s5215_s8 + $0x98] sm:$0xff] %v2740_v28  ;;  %v2737_v49 = vsub.f32 %v5024_v17, %v2690_v2  ;;  %v2692_v57 = vmul.f32 0.6931472, %v3850_v34  ;;  %v2648_v22 = vpop.xlane.xlu1 %2647 }
 0x537   :  { %v3852_v36 = vpop.eup %3851  ;;  %3861 = vlog2.f32 %v2648_v22 }
 0x538   :  { %2769 = vst [vmem:[%s5215_s8 + $0x80] sm:$0xff] %v2737_v49  ;;  %v2738_v13 = vsub.f32 %v5028_v30, %v2692_v57  ;;  %v2702_v63 = vmul.f32 0.6931472, %v3852_v36  ;;  %v2642_v38 = vpop.xlane.xlu0 %2641 }
 0x539   :  { %v3854_v48 = vpop.eup %3853  ;;  %3863 = vlog2.f32 %v2642_v38 }
 0x53a   :  { %2770 = vst [vmem:[%s5215_s8 + $0x88] sm:$0xff] %v2738_v13  ;;  %v2743_v17 = vsub.f32 %v5032_v19, %v2702_v63  ;;  %v2704_v31 = vmul.f32 0.6931472, %v3854_v48  ;;  %v2644_v46 = vpop.xlane.xlu1 %2643 }
 0x53b   :  { %v3856_v58 = vpop.eup %3855  ;;  %3865 = vlog2.f32 %v2644_v46 }
 0x53c   :  { %2775 = vst [vmem:[%s5215_s8 + $0xb0] sm:$0xff] %v2743_v17  ;;  %v2744_v30 = vsub.f32 %v5036_v32, %v2704_v31  ;;  %v2698_v45 = vmul.f32 0.6931472, %v3856_v58 }
 0x53d   :  { %v3858_v18 = vpop.eup %3857  ;;  %v2650_v61 = vpop.xlane.xlu0 %2649 }
 0x53e   :  { %2776 = vst [vmem:[%s5215_s8 + $0xb8] sm:$0xff] %v2744_v30  ;;  %v2741_v50 = vsub.f32 %v5040_v21, %v2698_v45  ;;  %v2700_v19 = vmul.f32 0.6931472, %v3858_v18  ;;  %3867 = vlog2.f32 %v2650_v61 }
 0x53f   :  { %v3860_v26 = vpop.eup %3859  ;;  %v2652_v44 = vpop.xlane.xlu1 %2651 }
 0x540   :  { %2773 = vst [vmem:[%s5215_s8 + $0xa0] sm:$0xff] %v2741_v50  ;;  %v2742_v55 = vsub.f32 %v5044_v14, %v2700_v19  ;;  %v2710_v32 = vmul.f32 0.6931472, %v3860_v26  ;;  %3869 = vlog2.f32 %v2652_v44 }
 0x541   :  { %v3862_v23 = vpop.eup %3861  ;;  %v2654_v25 = vpop.xlane.xlu0 %2653 }
 0x542   :  { %2774 = vst [vmem:[%s5215_s8 + $0xa8] sm:$0xff] %v2742_v55  ;;  %v2747_v21 = vsub.f32 %v5048_v0, %v2710_v32  ;;  %v2712_v53 = vmul.f32 0.6931472, %v3862_v23  ;;  %3871 = vlog2.f32 %v2654_v25 }
 0x543   :  { %v3864_v7 = vpop.eup %3863  ;;  %v2656_v41 = vpop.xlane.xlu1 %2655 }
 0x544   :  { %2779 = vst [vmem:[%s5215_s8 + $0xd0] sm:$0xff] %v2747_v21  ;;  %v2748_v14 = vsub.f32 %v5052_v27, %v2712_v53  ;;  %v2706_v29 = vmul.f32 0.6931472, %v3864_v7  ;;  %3873 = vlog2.f32 %v2656_v41 }
 0x545   :  { %v3866_v12 = vpop.eup %3865 }
 0x546   :  { %2780 = vst [vmem:[%s5215_s8 + $0xd8] sm:$0xff] %v2748_v14  ;;  %v2745_v3 = vsub.f32 %v5056_v47, %v2706_v29  ;;  %v2708_v0 = vmul.f32 0.6931472, %v3866_v12 }
 0x548   :  { %v3868_v5 = vpop.eup %3867  ;;  %2777 = vst [vmem:[%s5215_s8 + $0xc0] sm:$0xff] %v2745_v3  ;;  %v2746_v1 = vsub.f32 %v5060_v16, %v2708_v0 }
 0x549   :  { %v2714_v35 = vmul.f32 0.6931472, %v3868_v5 }
 0x54a   :  { %v3870_v39 = vpop.eup %3869  ;;  %2778 = vst [vmem:[%s5215_s8 + $0xc8] sm:$0xff] %v2746_v1 }
 0x54b   :  { %v2749_v27 = vsub.f32 %v5064_v59, %v2714_v35  ;;  %v2716_v37 = vmul.f32 0.6931472, %v3870_v39 }
 0x54c   :  { %v3872_v33 = vpop.eup %3871 }
 0x54d   :  { %2781 = vst [vmem:[%s5215_s8 + $0xe0] sm:$0xff] %v2749_v27  ;;  %v2750_v47 = vsub.f32 %v5068_v4, %v2716_v37  ;;  %v2718_v51 = vmul.f32 0.6931472, %v3872_v33 }
 0x54e   :  { %v3874_v62 = vpop.eup %3873 }
 0x54f   :  { %2782 = vst [vmem:[%s5215_s8 + $0xe8] sm:$0xff] %v2750_v47  ;;  %v2751_v16 = vsub.f32 %v5072_v6, %v2718_v51  ;;  %v2720_v42 = vmul.f32 0.6931472, %v3874_v62 }
 0x551   :  { %2783 = vst [vmem:[%s5215_s8 + $0xf0] sm:$0xff] %v2751_v16  ;;  %v2752_v59 = vsub.f32 %v5076_v11, %v2720_v42 }
 0x553   :  { %2784 = vst [vmem:[%s5215_s8 + $0xf8] sm:$0xff] %v2752_v59 }

</bundles_post_ra>
